<compile_context>
chip_gen: v7x
topology: tpu7x:2x2x1
jax: 0.10.0
libtpu: 0.0.40
codegen_flags: <defaults>
</compile_context>

<pallas_src>
import functools

import numpy as np
import jax
import jax.numpy as jnp
from jax import lax
from jax.experimental import pallas as pl
from jax.experimental.pallas import tpu as pltpu

BN_EPS = 1e-5
SLOPE = 0.1                      # LeakyReLU negative slope
LANES = 128                      # TPU lane width
TILE_M = 256                     # MXU-friendly row tile (v6e/v7x: 2x256^2 MXU)
VMEM_LIMIT = 32 * 1024 * 1024    # safe on v5e/v6e/v7x scoped-VMEM budgets


def _round_up(x, m):
    return ((x + m - 1) // m) * m


# --------------------------- Pallas kernels ---------------------------------

def _matmul_stats_kernel(p_ref, w_ref, b_ref, y_ref, stats_ref, *, m_real, tile_m):
    """Pass A: (TM,Kp)bf16 @ (Kp,Cp)bf16 -> f32, + bias, + per-tile BN partials."""
    i = pl.program_id(0)
    y = jnp.dot(p_ref[...], w_ref[...], preferred_element_type=jnp.float32)
    y = y + b_ref[...]
    y_ref[...] = y

    # Mask rows that are pure padding (rows >= m_real) out of the statistics.
    row = i * tile_m + lax.broadcasted_iota(jnp.int32, (tile_m, 1), 0)
    mask = (row < m_real).astype(jnp.float32)          # (TM, 1), lane-broadcast
    ym = y * mask
    s = jnp.sum(ym, axis=0, keepdims=True)             # (1, Cp)  per-channel sum
    ss = jnp.sum(ym * ym, axis=0, keepdims=True)       # (1, Cp)  per-channel sumsq

    # Write an (8, Cp) sublane-aligned partial-stats tile: row0=sum, row1=sumsq.
    ridx = lax.broadcasted_iota(jnp.int32, (8, s.shape[-1]), 0)
    stats_ref[...] = jnp.where(ridx == 0, s, 0.0) + jnp.where(ridx == 1, ss, 0.0)


def _bn_scale_shift(stats, g, beta, m_real):
    """Reduce per-tile partials -> global mean/var -> affine scale/shift."""
    n_tiles = stats.shape[0] // 8
    tot = stats[0:8, :]
    for t in range(1, n_tiles):                         # n_tiles is small & static
        tot = tot + stats[8 * t:8 * (t + 1), :]
    s = tot[0:1, :]
    ss = tot[1:2, :]
    inv_m = 1.0 / float(m_real)
    mean = s * inv_m
    var = jnp.maximum(ss * inv_m - mean * mean, 0.0)    # biased (training) var
    scale = g * lax.rsqrt(var + BN_EPS)                 # rsqrt -> EUP slot
    shift = beta - mean * scale
    return scale, shift


def _bn_lrelu_kernel(y_ref, stats_ref, g_ref, beta_ref, o_ref, *, m_real):
    scale, shift = _bn_scale_shift(stats_ref[...], g_ref[...], beta_ref[...], m_real)
    y = y_ref[...] * scale + shift
    o_ref[...] = jnp.where(y >= 0, y, SLOPE * y)


def _bn_lrelu_add_kernel(y_ref, stats_ref, g_ref, beta_ref, id_ref, o_ref, *, m_real):
    scale, shift = _bn_scale_shift(stats_ref[...], g_ref[...], beta_ref[...], m_real)
    y = y_ref[...] * scale + shift
    o_ref[...] = jnp.where(y >= 0, y, SLOPE * y) + id_ref[...]


def _axis_pool_kernel(p_ref, x_ref, o_ref):
    """One sample: (Lo, L) pooling matrix @ (L, F) slab -> (Lo, F)."""
    o_ref[0] = jnp.dot(p_ref[...], x_ref[0], preferred_element_type=jnp.float32)


# --------------------------- kernel wrappers ---------------------------------

def conv_bn_lrelu(patches, w2, b, g, beta, residual=None):
    """Fused Conv(as matmul) + bias + BatchNorm(train) + LeakyReLU (+ residual).

    patches: (M, K) bf16/f32 im2col rows; w2: (K, Cout) f32; b/g/beta: (Cout,).
    residual: optional (M, Cout) f32.  Returns (M, Cout) f32.
    """
    M, K = patches.shape
    Cout = w2.shape[1]
    Cp = _round_up(Cout, LANES)              # lane-dense output channels
    Kp = _round_up(K, LANES)                 # MXU-aligned contraction dim

    tm = TILE_M
    m8 = _round_up(M, 8)
    if m8 <= tm:
        tm = m8
    Mp = _round_up(M, tm)
    G = Mp // tm

    # Zero-pad operands (padded rows/cols/channels contribute exact zeros).
    p_pad = jnp.pad(patches.astype(jnp.bfloat16), ((0, Mp - M), (0, Kp - K)))
    w_pad = jnp.pad(w2.astype(jnp.bfloat16), ((0, Kp - K), (0, Cp - Cout)))
    b_pad = jnp.pad(b.astype(jnp.float32), (0, Cp - Cout)).reshape(1, Cp)
    g_pad = jnp.pad(g.astype(jnp.float32), (0, Cp - Cout)).reshape(1, Cp)
    beta_pad = jnp.pad(beta.astype(jnp.float32), (0, Cp - Cout)).reshape(1, Cp)

    # ---- Pass A: tiled matmul + bias + per-tile BN partial stats -------------
    y_pad, stats = pl.pallas_call(
        functools.partial(_matmul_stats_kernel, m_real=M, tile_m=tm),
        out_shape=(jax.ShapeDtypeStruct((Mp, Cp), jnp.float32),
                   jax.ShapeDtypeStruct((8 * G, Cp), jnp.float32)),
        grid=(G,),
        in_specs=[
            pl.BlockSpec((tm, Kp), lambda i: (i, 0)),
            pl.BlockSpec((Kp, Cp), lambda i: (0, 0)),
            pl.BlockSpec((1, Cp), lambda i: (0, 0)),
        ],
        out_specs=(
            pl.BlockSpec((tm, Cp), lambda i: (i, 0)),
            pl.BlockSpec((8, Cp), lambda i: (i, 0)),
        ),
        compiler_params=pltpu.CompilerParams(
            dimension_semantics=("parallel",),
            vmem_limit_bytes=VMEM_LIMIT),
        cost_estimate=pl.CostEstimate(
            flops=2 * Mp * Kp * Cp,
            transcendentals=0,
            bytes_accessed=Mp * Kp * 2 + Kp * Cp * 2 + Cp * 4
                           + Mp * Cp * 4 + 8 * G * Cp * 4),
    )(p_pad, w_pad, b_pad)

    # ---- Pass B: global BN scale/shift + LeakyReLU (+ residual) --------------
    if residual is None:
        kernel = functools.partial(_bn_lrelu_kernel, m_real=M)
        args = (y_pad, stats, g_pad, beta_pad)
        in_specs = [
            pl.BlockSpec((tm, Cp), lambda i: (i, 0)),
            pl.BlockSpec((8 * G, Cp), lambda i: (0, 0)),
            pl.BlockSpec((1, Cp), lambda i: (0, 0)),
            pl.BlockSpec((1, Cp), lambda i: (0, 0)),
        ]
    else:
        r_pad = jnp.pad(residual.astype(jnp.float32),
                        ((0, Mp - M), (0, Cp - Cout)))
        kernel = functools.partial(_bn_lrelu_add_kernel, m_real=M)
        args = (y_pad, stats, g_pad, beta_pad, r_pad)
        in_specs = [
            pl.BlockSpec((tm, Cp), lambda i: (i, 0)),
            pl.BlockSpec((8 * G, Cp), lambda i: (0, 0)),
            pl.BlockSpec((1, Cp), lambda i: (0, 0)),
            pl.BlockSpec((1, Cp), lambda i: (0, 0)),
            pl.BlockSpec((tm, Cp), lambda i: (i, 0)),
        ]

    out = pl.pallas_call(
        kernel,
        out_shape=jax.ShapeDtypeStruct((Mp, Cp), jnp.float32),
        grid=(G,),
        in_specs=in_specs,
        out_specs=pl.BlockSpec((tm, Cp), lambda i: (i, 0)),
        compiler_params=pltpu.CompilerParams(
            dimension_semantics=("parallel",),
            vmem_limit_bytes=VMEM_LIMIT),
        cost_estimate=pl.CostEstimate(
            flops=8 * Mp * Cp,
            transcendentals=Cp,
            bytes_accessed=(3 if residual is not None else 2) * Mp * Cp * 4
                           + 8 * G * Cp * 4 + 2 * Cp * 4),
    )(*args)

    return out[:M, :Cout]


def _pool_axis1(x, pool_mat):
    """x: (N, L, F) f32, pool_mat: (Lo, L) -> (N, Lo, F) f32 (per-sample matmul)."""
    N, L, F = x.shape
    Lo = pool_mat.shape[0]
    return pl.pallas_call(
        _axis_pool_kernel,
        out_shape=jax.ShapeDtypeStruct((N, Lo, F), jnp.float32),
        grid=(N,),
        in_specs=[
            pl.BlockSpec((Lo, L), lambda n: (0, 0)),
            pl.BlockSpec((1, L, F), lambda n: (n, 0, 0)),
        ],
        out_specs=pl.BlockSpec((1, Lo, F), lambda n: (n, 0, 0)),
        compiler_params=pltpu.CompilerParams(
            dimension_semantics=("parallel",),
            vmem_limit_bytes=VMEM_LIMIT),
        cost_estimate=pl.CostEstimate(
            flops=2 * N * Lo * L * F,
            transcendentals=0,
            bytes_accessed=N * L * F * 4 + Lo * L * 4 + N * Lo * F * 4),
    )(pool_mat, x)


def avg_pool_separable(x, k, stride, pad):
    """AvgPool2d(k, stride, pad), count_include_pad=True, as two 1-D pool matmuls."""
    N, H, W, C = x.shape
    Ph, Ho = _pool_matrix_1d(H, k, stride, pad)
    Pw, Wo = _pool_matrix_1d(W, k, stride, pad)
    # Pool along H (lane dim = W*C, dense).
    y = _pool_axis1(x.reshape(N, H, W * C), Ph).reshape(N, Ho, W, C)
    # Pool along W (move W to the contraction axis).
    y = jnp.transpose(y, (0, 2, 1, 3)).reshape(N, W, Ho * C)
    y = _pool_axis1(y, Pw).reshape(N, Wo, Ho, C)
    return jnp.transpose(y, (0, 2, 1, 3))   # (N, Ho, Wo, C)


# ------------------------------- glue ----------------------------------------

def _im2col(x, ksize, pad, dilation):
    """x: (N, H, W, C) -> (N*Ho*Wo, ksize*ksize*C), stride 1 (tap-major, C-minor)."""
    N, H, W, C = x.shape
    xp = jnp.pad(x, ((0, 0), (pad, pad), (pad, pad), (0, 0)))
    Ho = H + 2 * pad - dilation * (ksize - 1)
    Wo = W + 2 * pad - dilation * (ksize - 1)
    cols = [xp[:, ky * dilation:ky * dilation + Ho,
               kx * dilation:kx * dilation + Wo, :]
            for ky in range(ksize) for kx in range(ksize)]
    patches = jnp.concatenate(cols, axis=-1)
    return patches.reshape(N * Ho * Wo, ksize * ksize * C), Ho, Wo


def _conv_weight_to_matmul(w):
    """w: (Cout, Cin, kh, kw) -> (kh*kw*Cin, Cout), tap-major / channel-minor."""
    _, _, kh, kw = w.shape
    return jnp.concatenate(
        [w[:, :, ky, kx].T for ky in range(kh) for kx in range(kw)], axis=0)


def _pool_matrix_1d(L, k, stride, pad):
    """1-D factor of AvgPool2d(k, stride, pad) with count_include_pad=True."""
    Lo = (L + 2 * pad - k) // stride + 1
    P = np.zeros((Lo, L), np.float32)
    for i in range(Lo):
        for a in range(k):
            u = i * stride + a - pad
            if 0 <= u < L:
                P[i, u] = 1.0 / k
    return jnp.asarray(P), Lo


# --------------------------- block forward -----------------------------------

def conv_residual_encoder_block(x_nchw, params, dilation_rate=1):
    """Accepts NCHW, runs NHWC internally, returns NCHW."""
    x = jnp.transpose(x_nchw, (0, 2, 3, 1)).astype(jnp.float32)  # (N, H, W, C)

    def conv_stage(inp, name, ksize, pad, dil, residual=None):
        xb = inp.astype(jnp.bfloat16)          # bf16 matmul operands (f32 accum)
        N, H, W, C = inp.shape
        if ksize == 1:
            patches, Ho, Wo = xb.reshape(N * H * W, C), H, W
        else:
            patches, Ho, Wo = _im2col(xb, ksize, pad, dil)
        w2 = _conv_weight_to_matmul(params[name + "_w"])
        out = conv_bn_lrelu(patches, w2,
                            params[name + "_b"],
                            params[name + "_gamma"],
                            params[name + "_beta"],
                            residual=residual)
        return out.reshape(N, Ho, Wo, w2.shape[1])

    dil = dilation_rate

    # skip branch: 1x1 conv -> BN -> LeakyReLU -> AvgPool(4, 4, 1)
    identity = avg_pool_separable(conv_stage(x, "skip", 1, 0, 1), 4, 4, 1)

    # downsample1
    y = conv_stage(x, "d1c1", 3, 1, 1)
    y = avg_pool_separable(y, 4, 2, 1)
    y = conv_stage(y, "d1c2", 3, dil, dil)

    # downsample2 (last conv stage fuses the residual add)
    y = conv_stage(y, "d2c1", 3, dil, dil)
    y = avg_pool_separable(y, 4, 2, 1)
    id_flat = identity.reshape(-1, identity.shape[-1])   # same (N, Ho, Wo) row order
    y = conv_stage(y, "d2c2", 3, dil, dil, residual=id_flat)

    return jnp.transpose(y, (0, 3, 1, 2))   # back to NCHW


# ---------------------- deterministic parameter init -------------------------

def init_params(key, in_channels, out_channels):
    params = {}
    specs = [("d1c1", in_channels, 3), ("d1c2", out_channels, 3),
             ("d2c1", out_channels, 3), ("d2c2", out_channels, 3),
             ("skip", in_channels, 1)]
    keys = jax.random.split(key, len(specs))
    for k_, (name, cin, ks) in zip(keys, specs):
        kw, kb = jax.random.split(k_)
        bound = 1.0 / np.sqrt(cin * ks * ks)
        params[name + "_w"] = jax.random.uniform(
            kw, (out_channels, cin, ks, ks), jnp.float32, -bound, bound)
        params[name + "_b"] = jax.random.uniform(
            kb, (out_channels,), jnp.float32, -bound, bound)
        # PyTorch BatchNorm2d default affine init: weight=1, bias=0.
        params[name + "_gamma"] = jnp.ones((out_channels,), jnp.float32)
        params[name + "_beta"] = jnp.zeros((out_channels,), jnp.float32)
    return params


# ---------------------------- pure-JAX reference -----------------------------

def reference_forward(x, params, dilation_rate=1):
    def conv(x, w, b, pad, dil):
        y = lax.conv_general_dilated(
            x, w, window_strides=(1, 1),
            padding=((pad, pad), (pad, pad)),
            rhs_dilation=(dil, dil),
            dimension_numbers=("NCHW", "OIHW", "NCHW"))
        return y + b[None, :, None, None]

    def bn_lrelu(y, g, beta):
        mean = jnp.mean(y, axis=(0, 2, 3), keepdims=True)
        var = jnp.mean(jnp.square(y - mean), axis=(0, 2, 3), keepdims=True)
        y = (y - mean) / jnp.sqrt(var + BN_EPS) * g[None, :, None, None] \
            + beta[None, :, None, None]
        return jnp.where(y >= 0, y, SLOPE * y)

    def avg_pool(y, k, s, p):
        yp = jnp.pad(y, ((0, 0), (0, 0), (p, p), (p, p)))
        acc = lax.reduce_window(yp, 0.0, lax.add, (1, 1, k, k), (1, 1, s, s), "VALID")
        return acc / (k * k)

    d = dilation_rate
    identity = avg_pool(bn_lrelu(conv(x, params["skip_w"], params["skip_b"], 0, 1),
                                 params["skip_gamma"], params["skip_beta"]), 4, 4, 1)
    y = bn_lrelu(conv(x, params["d1c1_w"], params["d1c1_b"], 1, 1),
                 params["d1c1_gamma"], params["d1c1_beta"])
    y = avg_pool(y, 4, 2, 1)
    y = bn_lrelu(conv(y, params["d1c2_w"], params["d1c2_b"], d, d),
                 params["d1c2_gamma"], params["d1c2_beta"])
    y = bn_lrelu(conv(y, params["d2c1_w"], params["d2c1_b"], d, d),
                 params["d2c1_gamma"], params["d2c1_beta"])
    y = avg_pool(y, 4, 2, 1)
    y = bn_lrelu(conv(y, params["d2c2_w"], params["d2c2_b"], d, d),
                 params["d2c2_gamma"], params["d2c2_beta"])
    return y + identity


# --------------------------------- main ---------------------------------------

if __name__ == "__main__":
    key = jax.random.PRNGKey(0)
    kx, kp = jax.random.split(key)

    N, Cin, Cout, H, W = 2, 4, 8, 16, 16
    x = jax.random.normal(kx, (N, Cin, H, W), jnp.float32)
    params = init_params(kp, Cin, Cout)

    fwd = jax.jit(functools.partial(conv_residual_encoder_block, dilation_rate=1))
    out = jax.block_until_ready(fwd(x, params))

    assert out.shape == (N, Cout, 4, 4), out.shape

    ref = jax.block_until_ready(reference_forward(x, params, dilation_rate=1))
    # Tolerance accounts for bf16 matmul operands (f32 accumulation / BN math).
    max_err = float(jnp.max(jnp.abs(out - ref)))
    assert max_err < 1e-1, f"max abs err too large: {max_err}"

    print("KERNEL_OK")
</pallas_src>

<mosaic_0001>
module attributes {stable_mosaic.version = 11 : i64} {
  func.func @_matmul_stats_kernel(%arg0: i32, %arg1: memref<256x128xbf16, #tpu.memory_space<vmem>>, %arg2: memref<128x128xbf16, #tpu.memory_space<vmem>>, %arg3: memref<1x128xf32, #tpu.memory_space<vmem>>, %arg4: memref<256x128xf32, #tpu.memory_space<vmem>>, %arg5: memref<8x128xf32, #tpu.memory_space<vmem>>) attributes {dimension_semantics = [#tpu.dimension_semantics<parallel>], iteration_bounds = array<i64: 2>, scalar_prefetch = 0 : i64, scratch_operands = 0 : i64, tpu.core_type = #tpu.core_type<tc>, window_params = [{transform_indices = @transform_0, window_bounds = array<i64: 256, 128>}, {pipeline_mode = #tpu.pipeline_mode<synchronous>, transform_indices = @transform_1, window_bounds = array<i64: 128, 128>}, {pipeline_mode = #tpu.pipeline_mode<synchronous>, transform_indices = @transform_2, window_bounds = array<i64: 1, 128>}, {transform_indices = @transform_3, window_bounds = array<i64: 256, 128>}, {transform_indices = @transform_4, window_bounds = array<i64: 8, 128>}]} {
    %c0 = arith.constant 0 : index
    %c0_0 = arith.constant 0 : index
    %0 = vector.load %arg1[%c0, %c0_0] : memref<256x128xbf16, #tpu.memory_space<vmem>>, vector<256x128xbf16>
    %c0_1 = arith.constant 0 : index
    %c0_2 = arith.constant 0 : index
    %1 = vector.load %arg2[%c0_1, %c0_2] : memref<128x128xbf16, #tpu.memory_space<vmem>>, vector<128x128xbf16>
    %cst = arith.constant dense<0.000000e+00> : vector<256x128xf32>
    %2 = tpu.matmul %0, %1, %cst {dimension_numbers = #tpu.dot_dimension_numbers<[1], [0], [0], [1], [0, 0, 1, 1], [], []>} : vector<256x128xbf16>, vector<128x128xbf16>, vector<256x128xf32> -> vector<256x128xf32>
    %c0_3 = arith.constant 0 : index
    %c0_4 = arith.constant 0 : index
    %3 = vector.load %arg3[%c0_3, %c0_4] : memref<1x128xf32, #tpu.memory_space<vmem>>, vector<1x128xf32>
    %4 = vector.broadcast %3 : vector<1x128xf32> to vector<256x128xf32>
    %5 = arith.addf %2, %4 : vector<256x128xf32>
    %c0_5 = arith.constant 0 : index
    %c0_6 = arith.constant 0 : index
    %6 = vector.load %arg4[%c0_5, %c0_6] : memref<256x128xf32, #tpu.memory_space<vmem>>, vector<256x128xf32>
    tpu.vector_store %arg4[%c0_5, %c0_6], %5 {strides = array<i32>} : memref<256x128xf32, #tpu.memory_space<vmem>>, vector<256x128xf32>,
    %c256_i32 = arith.constant 256 : i32
    %7 = arith.muli %arg0, %c256_i32 : i32
    %8 = tpu.iota {dimensions = array<i32: 0>} : vector<256x1xi32>
    %9 = vector.broadcast %7 : i32 to vector<256x1xi32>
    %10 = arith.addi %9, %8 : vector<256x1xi32>
    %c512_i32 = arith.constant 512 : i32
    %11 = vector.broadcast %c512_i32 : i32 to vector<256x1xi32>
    %12 = arith.cmpi slt, %10, %11 : vector<256x1xi32>
    %13 = arith.extui %12 : vector<256x1xi1> to vector<256x1xi32>
    %14 = arith.sitofp %13 : vector<256x1xi32> to vector<256x1xf32>
    %15 = vector.broadcast %14 : vector<256x1xf32> to vector<256x128xf32>
    %16 = arith.mulf %5, %15 : vector<256x128xf32>
    %cst_7 = arith.constant dense<0.000000e+00> : vector<128xf32>
    %17 = vector.multi_reduction <add>, %16, %cst_7 [0] : vector<256x128xf32> to vector<128xf32>
    %18 = vector.shape_cast %17 : vector<128xf32> to vector<1x128xf32>
    %19 = arith.mulf %16, %16 : vector<256x128xf32>
    %cst_8 = arith.constant dense<0.000000e+00> : vector<128xf32>
    %20 = vector.multi_reduction <add>, %19, %cst_8 [0] : vector<256x128xf32> to vector<128xf32>
    %21 = vector.shape_cast %20 : vector<128xf32> to vector<1x128xf32>
    %22 = tpu.iota {dimensions = array<i32: 0>} : vector<8x128xi32>
    %c0_i32 = arith.constant 0 : i32
    %23 = vector.broadcast %c0_i32 : i32 to vector<8x128xi32>
    %24 = arith.cmpi eq, %22, %23 : vector<8x128xi32>
    %cst_9 = arith.constant 0.000000e+00 : f32
    %25 = vector.shape_cast %18 : vector<1x128xf32> to vector<1x128xf32>
    %26 = vector.broadcast %25 : vector<1x128xf32> to vector<8x128xf32>
    %27 = vector.broadcast %cst_9 : f32 to vector<8x128xf32>
    %28 = arith.select %24, %26, %27 : vector<8x128xi1>, vector<8x128xf32>
    %c1_i32 = arith.constant 1 : i32
    %29 = vector.broadcast %c1_i32 : i32 to vector<8x128xi32>
    %30 = arith.cmpi eq, %22, %29 : vector<8x128xi32>
    %cst_10 = arith.constant 0.000000e+00 : f32
    %31 = vector.shape_cast %21 : vector<1x128xf32> to vector<1x128xf32>
    %32 = vector.broadcast %31 : vector<1x128xf32> to vector<8x128xf32>
    %33 = vector.broadcast %cst_10 : f32 to vector<8x128xf32>
    %34 = arith.select %30, %32, %33 : vector<8x128xi1>, vector<8x128xf32>
    %35 = arith.addf %28, %34 : vector<8x128xf32>
    %c0_11 = arith.constant 0 : index
    %c0_12 = arith.constant 0 : index
    %36 = vector.load %arg5[%c0_11, %c0_12] : memref<8x128xf32, #tpu.memory_space<vmem>>, vector<8x128xf32>
    tpu.vector_store %arg5[%c0_11, %c0_12], %35 {strides = array<i32>} : memref<8x128xf32, #tpu.memory_space<vmem>>, vector<8x128xf32>,
    return
  }
  func.func @transform_0(%arg0: i32) -> (i32, i32) {
    %c0_i32 = arith.constant 0 : i32
    %c0_i32_0 = arith.constant 0 : i32
    return %arg0, %c0_i32 : i32, i32
  }
  func.func @transform_1(%arg0: i32) -> (i32, i32) {
    %c0_i32 = arith.constant 0 : i32
    %c0_i32_0 = arith.constant 0 : i32
    %c0_i32_1 = arith.constant 0 : i32
    return %c0_i32, %c0_i32_0 : i32, i32
  }
  func.func @transform_2(%arg0: i32) -> (i32, i32) {
    %c0_i32 = arith.constant 0 : i32
    %c0_i32_0 = arith.constant 0 : i32
    %c0_i32_1 = arith.constant 0 : i32
    return %c0_i32, %c0_i32_0 : i32, i32
  }
  func.func @transform_3(%arg0: i32) -> (i32, i32) {
    %c0_i32 = arith.constant 0 : i32
    %c0_i32_0 = arith.constant 0 : i32
    return %arg0, %c0_i32 : i32, i32
  }
  func.func @transform_4(%arg0: i32) -> (i32, i32) {
    %c0_i32 = arith.constant 0 : i32
    %c0_i32_0 = arith.constant 0 : i32
    return %arg0, %c0_i32 : i32, i32
  }
}

module attributes {stable_mosaic.version = 11 : i64} {
  func.func @_bn_lrelu_kernel(%arg0: i32, %arg1: memref<256x128xf32, #tpu.memory_space<vmem>>, %arg2: memref<16x128xf32, #tpu.memory_space<vmem>>, %arg3: memref<1x128xf32, #tpu.memory_space<vmem>>, %arg4: memref<1x128xf32, #tpu.memory_space<vmem>>, %arg5: memref<256x128xf32, #tpu.memory_space<vmem>>) attributes {dimension_semantics = [#tpu.dimension_semantics<parallel>], iteration_bounds = array<i64: 2>, scalar_prefetch = 0 : i64, scratch_operands = 0 : i64, tpu.core_type = #tpu.core_type<tc>, window_params = [{transform_indices = @transform_0, window_bounds = array<i64: 256, 128>}, {pipeline_mode = #tpu.pipeline_mode<synchronous>, transform_indices = @transform_1, window_bounds = array<i64: 16, 128>}, {pipeline_mode = #tpu.pipeline_mode<synchronous>, transform_indices = @transform_2, window_bounds = array<i64: 1, 128>}, {pipeline_mode = #tpu.pipeline_mode<synchronous>, transform_indices = @transform_3, window_bounds = array<i64: 1, 128>}, {transform_indices = @transform_4, window_bounds = array<i64: 256, 128>}]} {
    %c0 = arith.constant 0 : index
    %c0_0 = arith.constant 0 : index
    %0 = vector.load %arg2[%c0, %c0_0] : memref<16x128xf32, #tpu.memory_space<vmem>>, vector<16x128xf32>
    %c0_1 = arith.constant 0 : index
    %c0_2 = arith.constant 0 : index
    %1 = vector.load %arg3[%c0_1, %c0_2] : memref<1x128xf32, #tpu.memory_space<vmem>>, vector<1x128xf32>
    %c0_3 = arith.constant 0 : index
    %c0_4 = arith.constant 0 : index
    %2 = vector.load %arg4[%c0_3, %c0_4] : memref<1x128xf32, #tpu.memory_space<vmem>>, vector<1x128xf32>
    %3 = vector.extract_strided_slice %0 {offsets = [0, 0], sizes = [8, 128], strides = [1, 1]} : vector<16x128xf32> to vector<8x128xf32>
    %4 = vector.extract_strided_slice %0 {offsets = [8, 0], sizes = [8, 128], strides = [1, 1]} : vector<16x128xf32> to vector<8x128xf32>
    %5 = arith.addf %3, %4 : vector<8x128xf32>
    %6 = vector.extract_strided_slice %5 {offsets = [0, 0], sizes = [1, 128], strides = [1, 1]} : vector<8x128xf32> to vector<1x128xf32>
    %7 = vector.extract_strided_slice %5 {offsets = [1, 0], sizes = [1, 128], strides = [1, 1]} : vector<8x128xf32> to vector<1x128xf32>
    %cst = arith.constant 0.001953125 : f32
    %8 = vector.broadcast %cst : f32 to vector<1x128xf32>
    %9 = arith.mulf %6, %8 : vector<1x128xf32>
    %cst_5 = arith.constant 0.001953125 : f32
    %10 = vector.broadcast %cst_5 : f32 to vector<1x128xf32>
    %11 = arith.mulf %7, %10 : vector<1x128xf32>
    %12 = arith.mulf %9, %9 : vector<1x128xf32>
    %13 = arith.subf %11, %12 : vector<1x128xf32>
    %cst_6 = arith.constant 0.000000e+00 : f32
    %14 = vector.broadcast %cst_6 : f32 to vector<1x128xf32>
    %15 = arith.maximumf %13, %14 : vector<1x128xf32>
    %cst_7 = arith.constant 9.99999974E-6 : f32
    %16 = vector.broadcast %cst_7 : f32 to vector<1x128xf32>
    %17 = arith.addf %15, %16 : vector<1x128xf32>
    %18 = math.rsqrt %17 : vector<1x128xf32>
    %19 = arith.mulf %1, %18 : vector<1x128xf32>
    %20 = arith.mulf %9, %19 : vector<1x128xf32>
    %21 = arith.subf %2, %20 : vector<1x128xf32>
    %c0_8 = arith.constant 0 : index
    %c0_9 = arith.constant 0 : index
    %22 = vector.load %arg1[%c0_8, %c0_9] : memref<256x128xf32, #tpu.memory_space<vmem>>, vector<256x128xf32>
    %23 = vector.broadcast %19 : vector<1x128xf32> to vector<256x128xf32>
    %24 = arith.mulf %22, %23 : vector<256x128xf32>
    %25 = vector.broadcast %21 : vector<1x128xf32> to vector<256x128xf32>
    %26 = arith.addf %24, %25 : vector<256x128xf32>
    %cst_10 = arith.constant 0.000000e+00 : f32
    %27 = vector.broadcast %cst_10 : f32 to vector<256x128xf32>
    %28 = arith.cmpf oge, %26, %27 : vector<256x128xf32>
    %cst_11 = arith.constant 1.000000e-01 : f32
    %29 = vector.broadcast %cst_11 : f32 to vector<256x128xf32>
    %30 = arith.mulf %29, %26 : vector<256x128xf32>
    %31 = arith.select %28, %26, %30 : vector<256x128xi1>, vector<256x128xf32>
    %c0_12 = arith.constant 0 : index
    %c0_13 = arith.constant 0 : index
    %32 = vector.load %arg5[%c0_12, %c0_13] : memref<256x128xf32, #tpu.memory_space<vmem>>, vector<256x128xf32>
    tpu.vector_store %arg5[%c0_12, %c0_13], %31 {strides = array<i32>} : memref<256x128xf32, #tpu.memory_space<vmem>>, vector<256x128xf32>,
    return
  }
  func.func @transform_0(%arg0: i32) -> (i32, i32) {
    %c0_i32 = arith.constant 0 : i32
    %c0_i32_0 = arith.constant 0 : i32
    return %arg0, %c0_i32 : i32, i32
  }
  func.func @transform_1(%arg0: i32) -> (i32, i32) {
    %c0_i32 = arith.constant 0 : i32
    %c0_i32_0 = arith.constant 0 : i32
    %c0_i32_1 = arith.constant 0 : i32
    return %c0_i32, %c0_i32_0 : i32, i32
  }
  func.func @transform_2(%arg0: i32) -> (i32, i32) {
    %c0_i32 = arith.constant 0 : i32
    %c0_i32_0 = arith.constant 0 : i32
    %c0_i32_1 = arith.constant 0 : i32
    return %c0_i32, %c0_i32_0 : i32, i32
  }
  func.func @transform_3(%arg0: i32) -> (i32, i32) {
    %c0_i32 = arith.constant 0 : i32
    %c0_i32_0 = arith.constant 0 : i32
    %c0_i32_1 = arith.constant 0 : i32
    return %c0_i32, %c0_i32_0 : i32, i32
  }
  func.func @transform_4(%arg0: i32) -> (i32, i32) {
    %c0_i32 = arith.constant 0 : i32
    %c0_i32_0 = arith.constant 0 : i32
    return %arg0, %c0_i32 : i32, i32
  }
}

module attributes {stable_mosaic.version = 11 : i64} {
  func.func @_axis_pool_kernel(%arg0: i32, %arg1: memref<8x16xf32, #tpu.memory_space<vmem>>, %arg2: memref<1x16x128xf32, #tpu.memory_space<vmem>>, %arg3: memref<1x8x128xf32, #tpu.memory_space<vmem>>) attributes {dimension_semantics = [#tpu.dimension_semantics<parallel>], iteration_bounds = array<i64: 2>, scalar_prefetch = 0 : i64, scratch_operands = 0 : i64, tpu.core_type = #tpu.core_type<tc>, window_params = [{pipeline_mode = #tpu.pipeline_mode<synchronous>, transform_indices = @transform_0, window_bounds = array<i64: 8, 16>}, {transform_indices = @transform_1, window_bounds = array<i64: 1, 16, 128>}, {transform_indices = @transform_2, window_bounds = array<i64: 1, 8, 128>}]} {
    %c0 = arith.constant 0 : index
    %c0_0 = arith.constant 0 : index
    %0 = vector.load %arg1[%c0, %c0_0] : memref<8x16xf32, #tpu.memory_space<vmem>>, vector<8x16xf32>
    %c0_1 = arith.constant 0 : index
    %c0_2 = arith.constant 0 : index
    %c0_3 = arith.constant 0 : index
    %1 = vector.load %arg2[%c0_1, %c0_2, %c0_3] : memref<1x16x128xf32, #tpu.memory_space<vmem>>, vector<1x16x128xf32>
    %2 = vector.shape_cast %1 : vector<1x16x128xf32> to vector<16x128xf32>
    %cst = arith.constant dense<0.000000e+00> : vector<8x128xf32>
    %3 = tpu.matmul %0, %2, %cst {dimension_numbers = #tpu.dot_dimension_numbers<[1], [0], [0], [1], [0, 0, 1, 1], [], []>} : vector<8x16xf32>, vector<16x128xf32>, vector<8x128xf32> -> vector<8x128xf32>
    %c0_4 = arith.constant 0 : index
    %c0_5 = arith.constant 0 : index
    %c0_6 = arith.constant 0 : index
    %4 = vector.load %arg3[%c0_4, %c0_5, %c0_6] : memref<1x8x128xf32, #tpu.memory_space<vmem>>, vector<1x8x128xf32>
    %5 = vector.shape_cast %4 : vector<1x8x128xf32> to vector<8x128xf32>
    %6 = vector.shape_cast %3 : vector<8x128xf32> to vector<1x8x128xf32>
    tpu.vector_store %arg3[%c0_4, %c0_5, %c0_6], %6 {strides = array<i32>} : memref<1x8x128xf32, #tpu.memory_space<vmem>>, vector<1x8x128xf32>,
    return
  }
  func.func @transform_0(%arg0: i32) -> (i32, i32) {
    %c0_i32 = arith.constant 0 : i32
    %c0_i32_0 = arith.constant 0 : i32
    %c0_i32_1 = arith.constant 0 : i32
    return %c0_i32, %c0_i32_0 : i32, i32
  }
  func.func @transform_1(%arg0: i32) -> (i32, i32, i32) {
    %c0_i32 = arith.constant 0 : i32
    %c0_i32_0 = arith.constant 0 : i32
    %c0_i32_1 = arith.constant 0 : i32
    return %arg0, %c0_i32, %c0_i32_0 : i32, i32, i32
  }
  func.func @transform_2(%arg0: i32) -> (i32, i32, i32) {
    %c0_i32 = arith.constant 0 : i32
    %c0_i32_0 = arith.constant 0 : i32
    %c0_i32_1 = arith.constant 0 : i32
    return %arg0, %c0_i32, %c0_i32_0 : i32, i32, i32
  }
}

module attributes {stable_mosaic.version = 11 : i64} {
  func.func @_axis_pool_kernel(%arg0: i32, %arg1: memref<8x16xf32, #tpu.memory_space<vmem>>, %arg2: memref<1x16x64xf32, #tpu.memory_space<vmem>>, %arg3: memref<1x8x64xf32, #tpu.memory_space<vmem>>) attributes {dimension_semantics = [#tpu.dimension_semantics<parallel>], iteration_bounds = array<i64: 2>, scalar_prefetch = 0 : i64, scratch_operands = 0 : i64, tpu.core_type = #tpu.core_type<tc>, window_params = [{pipeline_mode = #tpu.pipeline_mode<synchronous>, transform_indices = @transform_0, window_bounds = array<i64: 8, 16>}, {transform_indices = @transform_1, window_bounds = array<i64: 1, 16, 64>}, {transform_indices = @transform_2, window_bounds = array<i64: 1, 8, 64>}]} {
    %c0 = arith.constant 0 : index
    %c0_0 = arith.constant 0 : index
    %0 = vector.load %arg1[%c0, %c0_0] : memref<8x16xf32, #tpu.memory_space<vmem>>, vector<8x16xf32>
    %c0_1 = arith.constant 0 : index
    %c0_2 = arith.constant 0 : index
    %c0_3 = arith.constant 0 : index
    %1 = vector.load %arg2[%c0_1, %c0_2, %c0_3] : memref<1x16x64xf32, #tpu.memory_space<vmem>>, vector<1x16x64xf32>
    %2 = vector.shape_cast %1 : vector<1x16x64xf32> to vector<16x64xf32>
    %cst = arith.constant dense<0.000000e+00> : vector<8x64xf32>
    %3 = tpu.matmul %0, %2, %cst {dimension_numbers = #tpu.dot_dimension_numbers<[1], [0], [0], [1], [0, 0, 1, 1], [], []>} : vector<8x16xf32>, vector<16x64xf32>, vector<8x64xf32> -> vector<8x64xf32>
    %c0_4 = arith.constant 0 : index
    %c0_5 = arith.constant 0 : index
    %c0_6 = arith.constant 0 : index
    %4 = vector.load %arg3[%c0_4, %c0_5, %c0_6] : memref<1x8x64xf32, #tpu.memory_space<vmem>>, vector<1x8x64xf32>
    %5 = vector.shape_cast %4 : vector<1x8x64xf32> to vector<8x64xf32>
    %6 = vector.shape_cast %3 : vector<8x64xf32> to vector<1x8x64xf32>
    tpu.vector_store %arg3[%c0_4, %c0_5, %c0_6], %6 {strides = array<i32>} : memref<1x8x64xf32, #tpu.memory_space<vmem>>, vector<1x8x64xf32>,
    return
  }
  func.func @transform_0(%arg0: i32) -> (i32, i32) {
    %c0_i32 = arith.constant 0 : i32
    %c0_i32_0 = arith.constant 0 : i32
    %c0_i32_1 = arith.constant 0 : i32
    return %c0_i32, %c0_i32_0 : i32, i32
  }
  func.func @transform_1(%arg0: i32) -> (i32, i32, i32) {
    %c0_i32 = arith.constant 0 : i32
    %c0_i32_0 = arith.constant 0 : i32
    %c0_i32_1 = arith.constant 0 : i32
    return %arg0, %c0_i32, %c0_i32_0 : i32, i32, i32
  }
  func.func @transform_2(%arg0: i32) -> (i32, i32, i32) {
    %c0_i32 = arith.constant 0 : i32
    %c0_i32_0 = arith.constant 0 : i32
    %c0_i32_1 = arith.constant 0 : i32
    return %arg0, %c0_i32, %c0_i32_0 : i32, i32, i32
  }
}

module attributes {stable_mosaic.version = 11 : i64} {
  func.func @_matmul_stats_kernel(%arg0: i32, %arg1: memref<128x128xbf16, #tpu.memory_space<vmem>>, %arg2: memref<128x128xbf16, #tpu.memory_space<vmem>>, %arg3: memref<1x128xf32, #tpu.memory_space<vmem>>, %arg4: memref<128x128xf32, #tpu.memory_space<vmem>>, %arg5: memref<8x128xf32, #tpu.memory_space<vmem>>) attributes {dimension_semantics = [#tpu.dimension_semantics<parallel>], iteration_bounds = array<i64: 1>, scalar_prefetch = 0 : i64, scratch_operands = 0 : i64, tpu.core_type = #tpu.core_type<tc>, window_params = [{transform_indices = @transform_0, window_bounds = array<i64: 128, 128>}, {pipeline_mode = #tpu.pipeline_mode<synchronous>, transform_indices = @transform_1, window_bounds = array<i64: 128, 128>}, {pipeline_mode = #tpu.pipeline_mode<synchronous>, transform_indices = @transform_2, window_bounds = array<i64: 1, 128>}, {transform_indices = @transform_3, window_bounds = array<i64: 128, 128>}, {transform_indices = @transform_4, window_bounds = array<i64: 8, 128>}]} {
    %c0 = arith.constant 0 : index
    %c0_0 = arith.constant 0 : index
    %0 = vector.load %arg1[%c0, %c0_0] : memref<128x128xbf16, #tpu.memory_space<vmem>>, vector<128x128xbf16>
    %c0_1 = arith.constant 0 : index
    %c0_2 = arith.constant 0 : index
    %1 = vector.load %arg2[%c0_1, %c0_2] : memref<128x128xbf16, #tpu.memory_space<vmem>>, vector<128x128xbf16>
    %cst = arith.constant dense<0.000000e+00> : vector<128x128xf32>
    %2 = tpu.matmul %0, %1, %cst {dimension_numbers = #tpu.dot_dimension_numbers<[1], [0], [0], [1], [0, 0, 1, 1], [], []>} : vector<128x128xbf16>, vector<128x128xbf16>, vector<128x128xf32> -> vector<128x128xf32>
    %c0_3 = arith.constant 0 : index
    %c0_4 = arith.constant 0 : index
    %3 = vector.load %arg3[%c0_3, %c0_4] : memref<1x128xf32, #tpu.memory_space<vmem>>, vector<1x128xf32>
    %4 = vector.broadcast %3 : vector<1x128xf32> to vector<128x128xf32>
    %5 = arith.addf %2, %4 : vector<128x128xf32>
    %c0_5 = arith.constant 0 : index
    %c0_6 = arith.constant 0 : index
    %6 = vector.load %arg4[%c0_5, %c0_6] : memref<128x128xf32, #tpu.memory_space<vmem>>, vector<128x128xf32>
    tpu.vector_store %arg4[%c0_5, %c0_6], %5 {strides = array<i32>} : memref<128x128xf32, #tpu.memory_space<vmem>>, vector<128x128xf32>,
    %c128_i32 = arith.constant 128 : i32
    %7 = arith.muli %arg0, %c128_i32 : i32
    %8 = tpu.iota {dimensions = array<i32: 0>} : vector<128x1xi32>
    %9 = vector.broadcast %7 : i32 to vector<128x1xi32>
    %10 = arith.addi %9, %8 : vector<128x1xi32>
    %c128_i32_7 = arith.constant 128 : i32
    %11 = vector.broadcast %c128_i32_7 : i32 to vector<128x1xi32>
    %12 = arith.cmpi slt, %10, %11 : vector<128x1xi32>
    %13 = arith.extui %12 : vector<128x1xi1> to vector<128x1xi32>
    %14 = arith.sitofp %13 : vector<128x1xi32> to vector<128x1xf32>
    %15 = vector.broadcast %14 : vector<128x1xf32> to vector<128x128xf32>
    %16 = arith.mulf %5, %15 : vector<128x128xf32>
    %cst_8 = arith.constant dense<0.000000e+00> : vector<128xf32>
    %17 = vector.multi_reduction <add>, %16, %cst_8 [0] : vector<128x128xf32> to vector<128xf32>
    %18 = vector.shape_cast %17 : vector<128xf32> to vector<1x128xf32>
    %19 = arith.mulf %16, %16 : vector<128x128xf32>
    %cst_9 = arith.constant dense<0.000000e+00> : vector<128xf32>
    %20 = vector.multi_reduction <add>, %19, %cst_9 [0] : vector<128x128xf32> to vector<128xf32>
    %21 = vector.shape_cast %20 : vector<128xf32> to vector<1x128xf32>
    %22 = tpu.iota {dimensions = array<i32: 0>} : vector<8x128xi32>
    %c0_i32 = arith.constant 0 : i32
    %23 = vector.broadcast %c0_i32 : i32 to vector<8x128xi32>
    %24 = arith.cmpi eq, %22, %23 : vector<8x128xi32>
    %cst_10 = arith.constant 0.000000e+00 : f32
    %25 = vector.shape_cast %18 : vector<1x128xf32> to vector<1x128xf32>
    %26 = vector.broadcast %25 : vector<1x128xf32> to vector<8x128xf32>
    %27 = vector.broadcast %cst_10 : f32 to vector<8x128xf32>
    %28 = arith.select %24, %26, %27 : vector<8x128xi1>, vector<8x128xf32>
    %c1_i32 = arith.constant 1 : i32
    %29 = vector.broadcast %c1_i32 : i32 to vector<8x128xi32>
    %30 = arith.cmpi eq, %22, %29 : vector<8x128xi32>
    %cst_11 = arith.constant 0.000000e+00 : f32
    %31 = vector.shape_cast %21 : vector<1x128xf32> to vector<1x128xf32>
    %32 = vector.broadcast %31 : vector<1x128xf32> to vector<8x128xf32>
    %33 = vector.broadcast %cst_11 : f32 to vector<8x128xf32>
    %34 = arith.select %30, %32, %33 : vector<8x128xi1>, vector<8x128xf32>
    %35 = arith.addf %28, %34 : vector<8x128xf32>
    %c0_12 = arith.constant 0 : index
    %c0_13 = arith.constant 0 : index
    %36 = vector.load %arg5[%c0_12, %c0_13] : memref<8x128xf32, #tpu.memory_space<vmem>>, vector<8x128xf32>
    tpu.vector_store %arg5[%c0_12, %c0_13], %35 {strides = array<i32>} : memref<8x128xf32, #tpu.memory_space<vmem>>, vector<8x128xf32>,
    return
  }
  func.func @transform_0(%arg0: i32) -> (i32, i32) {
    %c0_i32 = arith.constant 0 : i32
    %c0_i32_0 = arith.constant 0 : i32
    return %arg0, %c0_i32 : i32, i32
  }
  func.func @transform_1(%arg0: i32) -> (i32, i32) {
    %c0_i32 = arith.constant 0 : i32
    %c0_i32_0 = arith.constant 0 : i32
    %c0_i32_1 = arith.constant 0 : i32
    return %c0_i32, %c0_i32_0 : i32, i32
  }
  func.func @transform_2(%arg0: i32) -> (i32, i32) {
    %c0_i32 = arith.constant 0 : i32
    %c0_i32_0 = arith.constant 0 : i32
    %c0_i32_1 = arith.constant 0 : i32
    return %c0_i32, %c0_i32_0 : i32, i32
  }
  func.func @transform_3(%arg0: i32) -> (i32, i32) {
    %c0_i32 = arith.constant 0 : i32
    %c0_i32_0 = arith.constant 0 : i32
    return %arg0, %c0_i32 : i32, i32
  }
  func.func @transform_4(%arg0: i32) -> (i32, i32) {
    %c0_i32 = arith.constant 0 : i32
    %c0_i32_0 = arith.constant 0 : i32
    return %arg0, %c0_i32 : i32, i32
  }
}

module attributes {stable_mosaic.version = 11 : i64} {
  func.func @_bn_lrelu_kernel(%arg0: i32, %arg1: memref<128x128xf32, #tpu.memory_space<vmem>>, %arg2: memref<8x128xf32, #tpu.memory_space<vmem>>, %arg3: memref<1x128xf32, #tpu.memory_space<vmem>>, %arg4: memref<1x128xf32, #tpu.memory_space<vmem>>, %arg5: memref<128x128xf32, #tpu.memory_space<vmem>>) attributes {dimension_semantics = [#tpu.dimension_semantics<parallel>], iteration_bounds = array<i64: 1>, scalar_prefetch = 0 : i64, scratch_operands = 0 : i64, tpu.core_type = #tpu.core_type<tc>, window_params = [{transform_indices = @transform_0, window_bounds = array<i64: 128, 128>}, {pipeline_mode = #tpu.pipeline_mode<synchronous>, transform_indices = @transform_1, window_bounds = array<i64: 8, 128>}, {pipeline_mode = #tpu.pipeline_mode<synchronous>, transform_indices = @transform_2, window_bounds = array<i64: 1, 128>}, {pipeline_mode = #tpu.pipeline_mode<synchronous>, transform_indices = @transform_3, window_bounds = array<i64: 1, 128>}, {transform_indices = @transform_4, window_bounds = array<i64: 128, 128>}]} {
    %c0 = arith.constant 0 : index
    %c0_0 = arith.constant 0 : index
    %0 = vector.load %arg2[%c0, %c0_0] : memref<8x128xf32, #tpu.memory_space<vmem>>, vector<8x128xf32>
    %c0_1 = arith.constant 0 : index
    %c0_2 = arith.constant 0 : index
    %1 = vector.load %arg3[%c0_1, %c0_2] : memref<1x128xf32, #tpu.memory_space<vmem>>, vector<1x128xf32>
    %c0_3 = arith.constant 0 : index
    %c0_4 = arith.constant 0 : index
    %2 = vector.load %arg4[%c0_3, %c0_4] : memref<1x128xf32, #tpu.memory_space<vmem>>, vector<1x128xf32>
    %3 = vector.extract_strided_slice %0 {offsets = [0, 0], sizes = [1, 128], strides = [1, 1]} : vector<8x128xf32> to vector<1x128xf32>
    %4 = vector.extract_strided_slice %0 {offsets = [1, 0], sizes = [1, 128], strides = [1, 1]} : vector<8x128xf32> to vector<1x128xf32>
    %cst = arith.constant 7.812500e-03 : f32
    %5 = vector.broadcast %cst : f32 to vector<1x128xf32>
    %6 = arith.mulf %3, %5 : vector<1x128xf32>
    %cst_5 = arith.constant 7.812500e-03 : f32
    %7 = vector.broadcast %cst_5 : f32 to vector<1x128xf32>
    %8 = arith.mulf %4, %7 : vector<1x128xf32>
    %9 = arith.mulf %6, %6 : vector<1x128xf32>
    %10 = arith.subf %8, %9 : vector<1x128xf32>
    %cst_6 = arith.constant 0.000000e+00 : f32
    %11 = vector.broadcast %cst_6 : f32 to vector<1x128xf32>
    %12 = arith.maximumf %10, %11 : vector<1x128xf32>
    %cst_7 = arith.constant 9.99999974E-6 : f32
    %13 = vector.broadcast %cst_7 : f32 to vector<1x128xf32>
    %14 = arith.addf %12, %13 : vector<1x128xf32>
    %15 = math.rsqrt %14 : vector<1x128xf32>
    %16 = arith.mulf %1, %15 : vector<1x128xf32>
    %17 = arith.mulf %6, %16 : vector<1x128xf32>
    %18 = arith.subf %2, %17 : vector<1x128xf32>
    %c0_8 = arith.constant 0 : index
    %c0_9 = arith.constant 0 : index
    %19 = vector.load %arg1[%c0_8, %c0_9] : memref<128x128xf32, #tpu.memory_space<vmem>>, vector<128x128xf32>
    %20 = vector.broadcast %16 : vector<1x128xf32> to vector<128x128xf32>
    %21 = arith.mulf %19, %20 : vector<128x128xf32>
    %22 = vector.broadcast %18 : vector<1x128xf32> to vector<128x128xf32>
    %23 = arith.addf %21, %22 : vector<128x128xf32>
    %cst_10 = arith.constant 0.000000e+00 : f32
    %24 = vector.broadcast %cst_10 : f32 to vector<128x128xf32>
    %25 = arith.cmpf oge, %23, %24 : vector<128x128xf32>
    %cst_11 = arith.constant 1.000000e-01 : f32
    %26 = vector.broadcast %cst_11 : f32 to vector<128x128xf32>
    %27 = arith.mulf %26, %23 : vector<128x128xf32>
    %28 = arith.select %25, %23, %27 : vector<128x128xi1>, vector<128x128xf32>
    %c0_12 = arith.constant 0 : index
    %c0_13 = arith.constant 0 : index
    %29 = vector.load %arg5[%c0_12, %c0_13] : memref<128x128xf32, #tpu.memory_space<vmem>>, vector<128x128xf32>
    tpu.vector_store %arg5[%c0_12, %c0_13], %28 {strides = array<i32>} : memref<128x128xf32, #tpu.memory_space<vmem>>, vector<128x128xf32>,
    return
  }
  func.func @transform_0(%arg0: i32) -> (i32, i32) {
    %c0_i32 = arith.constant 0 : i32
    %c0_i32_0 = arith.constant 0 : i32
    return %arg0, %c0_i32 : i32, i32
  }
  func.func @transform_1(%arg0: i32) -> (i32, i32) {
    %c0_i32 = arith.constant 0 : i32
    %c0_i32_0 = arith.constant 0 : i32
    %c0_i32_1 = arith.constant 0 : i32
    return %c0_i32, %c0_i32_0 : i32, i32
  }
  func.func @transform_2(%arg0: i32) -> (i32, i32) {
    %c0_i32 = arith.constant 0 : i32
    %c0_i32_0 = arith.constant 0 : i32
    %c0_i32_1 = arith.constant 0 : i32
    return %c0_i32, %c0_i32_0 : i32, i32
  }
  func.func @transform_3(%arg0: i32) -> (i32, i32) {
    %c0_i32 = arith.constant 0 : i32
    %c0_i32_0 = arith.constant 0 : i32
    %c0_i32_1 = arith.constant 0 : i32
    return %c0_i32, %c0_i32_0 : i32, i32
  }
  func.func @transform_4(%arg0: i32) -> (i32, i32) {
    %c0_i32 = arith.constant 0 : i32
    %c0_i32_0 = arith.constant 0 : i32
    return %arg0, %c0_i32 : i32, i32
  }
}

module attributes {stable_mosaic.version = 11 : i64} {
  func.func @_axis_pool_kernel(%arg0: i32, %arg1: memref<4x8xf32, #tpu.memory_space<vmem>>, %arg2: memref<1x8x64xf32, #tpu.memory_space<vmem>>, %arg3: memref<1x4x64xf32, #tpu.memory_space<vmem>>) attributes {dimension_semantics = [#tpu.dimension_semantics<parallel>], iteration_bounds = array<i64: 2>, scalar_prefetch = 0 : i64, scratch_operands = 0 : i64, tpu.core_type = #tpu.core_type<tc>, window_params = [{pipeline_mode = #tpu.pipeline_mode<synchronous>, transform_indices = @transform_0, window_bounds = array<i64: 4, 8>}, {transform_indices = @transform_1, window_bounds = array<i64: 1, 8, 64>}, {transform_indices = @transform_2, window_bounds = array<i64: 1, 4, 64>}]} {
    %c0 = arith.constant 0 : index
    %c0_0 = arith.constant 0 : index
    %0 = vector.load %arg1[%c0, %c0_0] : memref<4x8xf32, #tpu.memory_space<vmem>>, vector<4x8xf32>
    %c0_1 = arith.constant 0 : index
    %c0_2 = arith.constant 0 : index
    %c0_3 = arith.constant 0 : index
    %1 = vector.load %arg2[%c0_1, %c0_2, %c0_3] : memref<1x8x64xf32, #tpu.memory_space<vmem>>, vector<1x8x64xf32>
    %2 = vector.shape_cast %1 : vector<1x8x64xf32> to vector<8x64xf32>
    %cst = arith.constant dense<0.000000e+00> : vector<4x64xf32>
    %3 = tpu.matmul %0, %2, %cst {dimension_numbers = #tpu.dot_dimension_numbers<[1], [0], [0], [1], [0, 0, 1, 1], [], []>} : vector<4x8xf32>, vector<8x64xf32>, vector<4x64xf32> -> vector<4x64xf32>
    %c0_4 = arith.constant 0 : index
    %c0_5 = arith.constant 0 : index
    %c0_6 = arith.constant 0 : index
    %4 = vector.load %arg3[%c0_4, %c0_5, %c0_6] : memref<1x4x64xf32, #tpu.memory_space<vmem>>, vector<1x4x64xf32>
    %5 = vector.shape_cast %4 : vector<1x4x64xf32> to vector<4x64xf32>
    %6 = vector.shape_cast %3 : vector<4x64xf32> to vector<1x4x64xf32>
    tpu.vector_store %arg3[%c0_4, %c0_5, %c0_6], %6 {strides = array<i32>} : memref<1x4x64xf32, #tpu.memory_space<vmem>>, vector<1x4x64xf32>,
    return
  }
  func.func @transform_0(%arg0: i32) -> (i32, i32) {
    %c0_i32 = arith.constant 0 : i32
    %c0_i32_0 = arith.constant 0 : i32
    %c0_i32_1 = arith.constant 0 : i32
    return %c0_i32, %c0_i32_0 : i32, i32
  }
  func.func @transform_1(%arg0: i32) -> (i32, i32, i32) {
    %c0_i32 = arith.constant 0 : i32
    %c0_i32_0 = arith.constant 0 : i32
    %c0_i32_1 = arith.constant 0 : i32
    return %arg0, %c0_i32, %c0_i32_0 : i32, i32, i32
  }
  func.func @transform_2(%arg0: i32) -> (i32, i32, i32) {
    %c0_i32 = arith.constant 0 : i32
    %c0_i32_0 = arith.constant 0 : i32
    %c0_i32_1 = arith.constant 0 : i32
    return %arg0, %c0_i32, %c0_i32_0 : i32, i32, i32
  }
}

module attributes {stable_mosaic.version = 11 : i64} {
  func.func @_axis_pool_kernel(%arg0: i32, %arg1: memref<4x8xf32, #tpu.memory_space<vmem>>, %arg2: memref<1x8x32xf32, #tpu.memory_space<vmem>>, %arg3: memref<1x4x32xf32, #tpu.memory_space<vmem>>) attributes {dimension_semantics = [#tpu.dimension_semantics<parallel>], iteration_bounds = array<i64: 2>, scalar_prefetch = 0 : i64, scratch_operands = 0 : i64, tpu.core_type = #tpu.core_type<tc>, window_params = [{pipeline_mode = #tpu.pipeline_mode<synchronous>, transform_indices = @transform_0, window_bounds = array<i64: 4, 8>}, {transform_indices = @transform_1, window_bounds = array<i64: 1, 8, 32>}, {transform_indices = @transform_2, window_bounds = array<i64: 1, 4, 32>}]} {
    %c0 = arith.constant 0 : index
    %c0_0 = arith.constant 0 : index
    %0 = vector.load %arg1[%c0, %c0_0] : memref<4x8xf32, #tpu.memory_space<vmem>>, vector<4x8xf32>
    %c0_1 = arith.constant 0 : index
    %c0_2 = arith.constant 0 : index
    %c0_3 = arith.constant 0 : index
    %1 = vector.load %arg2[%c0_1, %c0_2, %c0_3] : memref<1x8x32xf32, #tpu.memory_space<vmem>>, vector<1x8x32xf32>
    %2 = vector.shape_cast %1 : vector<1x8x32xf32> to vector<8x32xf32>
    %cst = arith.constant dense<0.000000e+00> : vector<4x32xf32>
    %3 = tpu.matmul %0, %2, %cst {dimension_numbers = #tpu.dot_dimension_numbers<[1], [0], [0], [1], [0, 0, 1, 1], [], []>} : vector<4x8xf32>, vector<8x32xf32>, vector<4x32xf32> -> vector<4x32xf32>
    %c0_4 = arith.constant 0 : index
    %c0_5 = arith.constant 0 : index
    %c0_6 = arith.constant 0 : index
    %4 = vector.load %arg3[%c0_4, %c0_5, %c0_6] : memref<1x4x32xf32, #tpu.memory_space<vmem>>, vector<1x4x32xf32>
    %5 = vector.shape_cast %4 : vector<1x4x32xf32> to vector<4x32xf32>
    %6 = vector.shape_cast %3 : vector<4x32xf32> to vector<1x4x32xf32>
    tpu.vector_store %arg3[%c0_4, %c0_5, %c0_6], %6 {strides = array<i32>} : memref<1x4x32xf32, #tpu.memory_space<vmem>>, vector<1x4x32xf32>,
    return
  }
  func.func @transform_0(%arg0: i32) -> (i32, i32) {
    %c0_i32 = arith.constant 0 : i32
    %c0_i32_0 = arith.constant 0 : i32
    %c0_i32_1 = arith.constant 0 : i32
    return %c0_i32, %c0_i32_0 : i32, i32
  }
  func.func @transform_1(%arg0: i32) -> (i32, i32, i32) {
    %c0_i32 = arith.constant 0 : i32
    %c0_i32_0 = arith.constant 0 : i32
    %c0_i32_1 = arith.constant 0 : i32
    return %arg0, %c0_i32, %c0_i32_0 : i32, i32, i32
  }
  func.func @transform_2(%arg0: i32) -> (i32, i32, i32) {
    %c0_i32 = arith.constant 0 : i32
    %c0_i32_0 = arith.constant 0 : i32
    %c0_i32_1 = arith.constant 0 : i32
    return %arg0, %c0_i32, %c0_i32_0 : i32, i32, i32
  }
}

module attributes {stable_mosaic.version = 11 : i64} {
  func.func @_matmul_stats_kernel(%arg0: i32, %arg1: memref<32x128xbf16, #tpu.memory_space<vmem>>, %arg2: memref<128x128xbf16, #tpu.memory_space<vmem>>, %arg3: memref<1x128xf32, #tpu.memory_space<vmem>>, %arg4: memref<32x128xf32, #tpu.memory_space<vmem>>, %arg5: memref<8x128xf32, #tpu.memory_space<vmem>>) attributes {dimension_semantics = [#tpu.dimension_semantics<parallel>], iteration_bounds = array<i64: 1>, scalar_prefetch = 0 : i64, scratch_operands = 0 : i64, tpu.core_type = #tpu.core_type<tc>, window_params = [{transform_indices = @transform_0, window_bounds = array<i64: 32, 128>}, {pipeline_mode = #tpu.pipeline_mode<synchronous>, transform_indices = @transform_1, window_bounds = array<i64: 128, 128>}, {pipeline_mode = #tpu.pipeline_mode<synchronous>, transform_indices = @transform_2, window_bounds = array<i64: 1, 128>}, {transform_indices = @transform_3, window_bounds = array<i64: 32, 128>}, {transform_indices = @transform_4, window_bounds = array<i64: 8, 128>}]} {
    %c0 = arith.constant 0 : index
    %c0_0 = arith.constant 0 : index
    %0 = vector.load %arg1[%c0, %c0_0] : memref<32x128xbf16, #tpu.memory_space<vmem>>, vector<32x128xbf16>
    %c0_1 = arith.constant 0 : index
    %c0_2 = arith.constant 0 : index
    %1 = vector.load %arg2[%c0_1, %c0_2] : memref<128x128xbf16, #tpu.memory_space<vmem>>, vector<128x128xbf16>
    %cst = arith.constant dense<0.000000e+00> : vector<32x128xf32>
    %2 = tpu.matmul %0, %1, %cst {dimension_numbers = #tpu.dot_dimension_numbers<[1], [0], [0], [1], [0, 0, 1, 1], [], []>} : vector<32x128xbf16>, vector<128x128xbf16>, vector<32x128xf32> -> vector<32x128xf32>
    %c0_3 = arith.constant 0 : index
    %c0_4 = arith.constant 0 : index
    %3 = vector.load %arg3[%c0_3, %c0_4] : memref<1x128xf32, #tpu.memory_space<vmem>>, vector<1x128xf32>
    %4 = vector.broadcast %3 : vector<1x128xf32> to vector<32x128xf32>
    %5 = arith.addf %2, %4 : vector<32x128xf32>
    %c0_5 = arith.constant 0 : index
    %c0_6 = arith.constant 0 : index
    %6 = vector.load %arg4[%c0_5, %c0_6] : memref<32x128xf32, #tpu.memory_space<vmem>>, vector<32x128xf32>
    tpu.vector_store %arg4[%c0_5, %c0_6], %5 {strides = array<i32>} : memref<32x128xf32, #tpu.memory_space<vmem>>, vector<32x128xf32>,
    %c32_i32 = arith.constant 32 : i32
    %7 = arith.muli %arg0, %c32_i32 : i32
    %8 = tpu.iota {dimensions = array<i32: 0>} : vector<32x1xi32>
    %9 = vector.broadcast %7 : i32 to vector<32x1xi32>
    %10 = arith.addi %9, %8 : vector<32x1xi32>
    %c32_i32_7 = arith.constant 32 : i32
    %11 = vector.broadcast %c32_i32_7 : i32 to vector<32x1xi32>
    %12 = arith.cmpi slt, %10, %11 : vector<32x1xi32>
    %13 = arith.extui %12 : vector<32x1xi1> to vector<32x1xi32>
    %14 = arith.sitofp %13 : vector<32x1xi32> to vector<32x1xf32>
    %15 = vector.broadcast %14 : vector<32x1xf32> to vector<32x128xf32>
    %16 = arith.mulf %5, %15 : vector<32x128xf32>
    %cst_8 = arith.constant dense<0.000000e+00> : vector<128xf32>
    %17 = vector.multi_reduction <add>, %16, %cst_8 [0] : vector<32x128xf32> to vector<128xf32>
    %18 = vector.shape_cast %17 : vector<128xf32> to vector<1x128xf32>
    %19 = arith.mulf %16, %16 : vector<32x128xf32>
    %cst_9 = arith.constant dense<0.000000e+00> : vector<128xf32>
    %20 = vector.multi_reduction <add>, %19, %cst_9 [0] : vector<32x128xf32> to vector<128xf32>
    %21 = vector.shape_cast %20 : vector<128xf32> to vector<1x128xf32>
    %22 = tpu.iota {dimensions = array<i32: 0>} : vector<8x128xi32>
    %c0_i32 = arith.constant 0 : i32
    %23 = vector.broadcast %c0_i32 : i32 to vector<8x128xi32>
    %24 = arith.cmpi eq, %22, %23 : vector<8x128xi32>
    %cst_10 = arith.constant 0.000000e+00 : f32
    %25 = vector.shape_cast %18 : vector<1x128xf32> to vector<1x128xf32>
    %26 = vector.broadcast %25 : vector<1x128xf32> to vector<8x128xf32>
    %27 = vector.broadcast %cst_10 : f32 to vector<8x128xf32>
    %28 = arith.select %24, %26, %27 : vector<8x128xi1>, vector<8x128xf32>
    %c1_i32 = arith.constant 1 : i32
    %29 = vector.broadcast %c1_i32 : i32 to vector<8x128xi32>
    %30 = arith.cmpi eq, %22, %29 : vector<8x128xi32>
    %cst_11 = arith.constant 0.000000e+00 : f32
    %31 = vector.shape_cast %21 : vector<1x128xf32> to vector<1x128xf32>
    %32 = vector.broadcast %31 : vector<1x128xf32> to vector<8x128xf32>
    %33 = vector.broadcast %cst_11 : f32 to vector<8x128xf32>
    %34 = arith.select %30, %32, %33 : vector<8x128xi1>, vector<8x128xf32>
    %35 = arith.addf %28, %34 : vector<8x128xf32>
    %c0_12 = arith.constant 0 : index
    %c0_13 = arith.constant 0 : index
    %36 = vector.load %arg5[%c0_12, %c0_13] : memref<8x128xf32, #tpu.memory_space<vmem>>, vector<8x128xf32>
    tpu.vector_store %arg5[%c0_12, %c0_13], %35 {strides = array<i32>} : memref<8x128xf32, #tpu.memory_space<vmem>>, vector<8x128xf32>,
    return
  }
  func.func @transform_0(%arg0: i32) -> (i32, i32) {
    %c0_i32 = arith.constant 0 : i32
    %c0_i32_0 = arith.constant 0 : i32
    return %arg0, %c0_i32 : i32, i32
  }
  func.func @transform_1(%arg0: i32) -> (i32, i32) {
    %c0_i32 = arith.constant 0 : i32
    %c0_i32_0 = arith.constant 0 : i32
    %c0_i32_1 = arith.constant 0 : i32
    return %c0_i32, %c0_i32_0 : i32, i32
  }
  func.func @transform_2(%arg0: i32) -> (i32, i32) {
    %c0_i32 = arith.constant 0 : i32
    %c0_i32_0 = arith.constant 0 : i32
    %c0_i32_1 = arith.constant 0 : i32
    return %c0_i32, %c0_i32_0 : i32, i32
  }
  func.func @transform_3(%arg0: i32) -> (i32, i32) {
    %c0_i32 = arith.constant 0 : i32
    %c0_i32_0 = arith.constant 0 : i32
    return %arg0, %c0_i32 : i32, i32
  }
  func.func @transform_4(%arg0: i32) -> (i32, i32) {
    %c0_i32 = arith.constant 0 : i32
    %c0_i32_0 = arith.constant 0 : i32
    return %arg0, %c0_i32 : i32, i32
  }
}

module attributes {stable_mosaic.version = 11 : i64} {
  func.func @_axis_pool_kernel(%arg0: i32, %arg1: memref<4x16xf32, #tpu.memory_space<vmem>>, %arg2: memref<1x16x128xf32, #tpu.memory_space<vmem>>, %arg3: memref<1x4x128xf32, #tpu.memory_space<vmem>>) attributes {dimension_semantics = [#tpu.dimension_semantics<parallel>], iteration_bounds = array<i64: 2>, scalar_prefetch = 0 : i64, scratch_operands = 0 : i64, tpu.core_type = #tpu.core_type<tc>, window_params = [{pipeline_mode = #tpu.pipeline_mode<synchronous>, transform_indices = @transform_0, window_bounds = array<i64: 4, 16>}, {transform_indices = @transform_1, window_bounds = array<i64: 1, 16, 128>}, {transform_indices = @transform_2, window_bounds = array<i64: 1, 4, 128>}]} {
    %c0 = arith.constant 0 : index
    %c0_0 = arith.constant 0 : index
    %0 = vector.load %arg1[%c0, %c0_0] : memref<4x16xf32, #tpu.memory_space<vmem>>, vector<4x16xf32>
    %c0_1 = arith.constant 0 : index
    %c0_2 = arith.constant 0 : index
    %c0_3 = arith.constant 0 : index
    %1 = vector.load %arg2[%c0_1, %c0_2, %c0_3] : memref<1x16x128xf32, #tpu.memory_space<vmem>>, vector<1x16x128xf32>
    %2 = vector.shape_cast %1 : vector<1x16x128xf32> to vector<16x128xf32>
    %cst = arith.constant dense<0.000000e+00> : vector<4x128xf32>
    %3 = tpu.matmul %0, %2, %cst {dimension_numbers = #tpu.dot_dimension_numbers<[1], [0], [0], [1], [0, 0, 1, 1], [], []>} : vector<4x16xf32>, vector<16x128xf32>, vector<4x128xf32> -> vector<4x128xf32>
    %c0_4 = arith.constant 0 : index
    %c0_5 = arith.constant 0 : index
    %c0_6 = arith.constant 0 : index
    %4 = vector.load %arg3[%c0_4, %c0_5, %c0_6] : memref<1x4x128xf32, #tpu.memory_space<vmem>>, vector<1x4x128xf32>
    %5 = vector.shape_cast %4 : vector<1x4x128xf32> to vector<4x128xf32>
    %6 = vector.shape_cast %3 : vector<4x128xf32> to vector<1x4x128xf32>
    tpu.vector_store %arg3[%c0_4, %c0_5, %c0_6], %6 {strides = array<i32>} : memref<1x4x128xf32, #tpu.memory_space<vmem>>, vector<1x4x128xf32>,
    return
  }
  func.func @transform_0(%arg0: i32) -> (i32, i32) {
    %c0_i32 = arith.constant 0 : i32
    %c0_i32_0 = arith.constant 0 : i32
    %c0_i32_1 = arith.constant 0 : i32
    return %c0_i32, %c0_i32_0 : i32, i32
  }
  func.func @transform_1(%arg0: i32) -> (i32, i32, i32) {
    %c0_i32 = arith.constant 0 : i32
    %c0_i32_0 = arith.constant 0 : i32
    %c0_i32_1 = arith.constant 0 : i32
    return %arg0, %c0_i32, %c0_i32_0 : i32, i32, i32
  }
  func.func @transform_2(%arg0: i32) -> (i32, i32, i32) {
    %c0_i32 = arith.constant 0 : i32
    %c0_i32_0 = arith.constant 0 : i32
    %c0_i32_1 = arith.constant 0 : i32
    return %arg0, %c0_i32, %c0_i32_0 : i32, i32, i32
  }
}

module attributes {stable_mosaic.version = 11 : i64} {
  func.func @_axis_pool_kernel(%arg0: i32, %arg1: memref<4x16xf32, #tpu.memory_space<vmem>>, %arg2: memref<1x16x32xf32, #tpu.memory_space<vmem>>, %arg3: memref<1x4x32xf32, #tpu.memory_space<vmem>>) attributes {dimension_semantics = [#tpu.dimension_semantics<parallel>], iteration_bounds = array<i64: 2>, scalar_prefetch = 0 : i64, scratch_operands = 0 : i64, tpu.core_type = #tpu.core_type<tc>, window_params = [{pipeline_mode = #tpu.pipeline_mode<synchronous>, transform_indices = @transform_0, window_bounds = array<i64: 4, 16>}, {transform_indices = @transform_1, window_bounds = array<i64: 1, 16, 32>}, {transform_indices = @transform_2, window_bounds = array<i64: 1, 4, 32>}]} {
    %c0 = arith.constant 0 : index
    %c0_0 = arith.constant 0 : index
    %0 = vector.load %arg1[%c0, %c0_0] : memref<4x16xf32, #tpu.memory_space<vmem>>, vector<4x16xf32>
    %c0_1 = arith.constant 0 : index
    %c0_2 = arith.constant 0 : index
    %c0_3 = arith.constant 0 : index
    %1 = vector.load %arg2[%c0_1, %c0_2, %c0_3] : memref<1x16x32xf32, #tpu.memory_space<vmem>>, vector<1x16x32xf32>
    %2 = vector.shape_cast %1 : vector<1x16x32xf32> to vector<16x32xf32>
    %cst = arith.constant dense<0.000000e+00> : vector<4x32xf32>
    %3 = tpu.matmul %0, %2, %cst {dimension_numbers = #tpu.dot_dimension_numbers<[1], [0], [0], [1], [0, 0, 1, 1], [], []>} : vector<4x16xf32>, vector<16x32xf32>, vector<4x32xf32> -> vector<4x32xf32>
    %c0_4 = arith.constant 0 : index
    %c0_5 = arith.constant 0 : index
    %c0_6 = arith.constant 0 : index
    %4 = vector.load %arg3[%c0_4, %c0_5, %c0_6] : memref<1x4x32xf32, #tpu.memory_space<vmem>>, vector<1x4x32xf32>
    %5 = vector.shape_cast %4 : vector<1x4x32xf32> to vector<4x32xf32>
    %6 = vector.shape_cast %3 : vector<4x32xf32> to vector<1x4x32xf32>
    tpu.vector_store %arg3[%c0_4, %c0_5, %c0_6], %6 {strides = array<i32>} : memref<1x4x32xf32, #tpu.memory_space<vmem>>, vector<1x4x32xf32>,
    return
  }
  func.func @transform_0(%arg0: i32) -> (i32, i32) {
    %c0_i32 = arith.constant 0 : i32
    %c0_i32_0 = arith.constant 0 : i32
    %c0_i32_1 = arith.constant 0 : i32
    return %c0_i32, %c0_i32_0 : i32, i32
  }
  func.func @transform_1(%arg0: i32) -> (i32, i32, i32) {
    %c0_i32 = arith.constant 0 : i32
    %c0_i32_0 = arith.constant 0 : i32
    %c0_i32_1 = arith.constant 0 : i32
    return %arg0, %c0_i32, %c0_i32_0 : i32, i32, i32
  }
  func.func @transform_2(%arg0: i32) -> (i32, i32, i32) {
    %c0_i32 = arith.constant 0 : i32
    %c0_i32_0 = arith.constant 0 : i32
    %c0_i32_1 = arith.constant 0 : i32
    return %arg0, %c0_i32, %c0_i32_0 : i32, i32, i32
  }
}

module attributes {stable_mosaic.version = 11 : i64} {
  func.func @_bn_lrelu_add_kernel(%arg0: i32, %arg1: memref<32x128xf32, #tpu.memory_space<vmem>>, %arg2: memref<8x128xf32, #tpu.memory_space<vmem>>, %arg3: memref<1x128xf32, #tpu.memory_space<vmem>>, %arg4: memref<1x128xf32, #tpu.memory_space<vmem>>, %arg5: memref<32x128xf32, #tpu.memory_space<vmem>>, %arg6: memref<32x128xf32, #tpu.memory_space<vmem>>) attributes {dimension_semantics = [#tpu.dimension_semantics<parallel>], iteration_bounds = array<i64: 1>, scalar_prefetch = 0 : i64, scratch_operands = 0 : i64, tpu.core_type = #tpu.core_type<tc>, window_params = [{transform_indices = @transform_0, window_bounds = array<i64: 32, 128>}, {pipeline_mode = #tpu.pipeline_mode<synchronous>, transform_indices = @transform_1, window_bounds = array<i64: 8, 128>}, {pipeline_mode = #tpu.pipeline_mode<synchronous>, transform_indices = @transform_2, window_bounds = array<i64: 1, 128>}, {pipeline_mode = #tpu.pipeline_mode<synchronous>, transform_indices = @transform_3, window_bounds = array<i64: 1, 128>}, {transform_indices = @transform_4, window_bounds = array<i64: 32, 128>}, {transform_indices = @transform_5, window_bounds = array<i64: 32, 128>}]} {
    %c0 = arith.constant 0 : index
    %c0_0 = arith.constant 0 : index
    %0 = vector.load %arg2[%c0, %c0_0] : memref<8x128xf32, #tpu.memory_space<vmem>>, vector<8x128xf32>
    %c0_1 = arith.constant 0 : index
    %c0_2 = arith.constant 0 : index
    %1 = vector.load %arg3[%c0_1, %c0_2] : memref<1x128xf32, #tpu.memory_space<vmem>>, vector<1x128xf32>
    %c0_3 = arith.constant 0 : index
    %c0_4 = arith.constant 0 : index
    %2 = vector.load %arg4[%c0_3, %c0_4] : memref<1x128xf32, #tpu.memory_space<vmem>>, vector<1x128xf32>
    %3 = vector.extract_strided_slice %0 {offsets = [0, 0], sizes = [1, 128], strides = [1, 1]} : vector<8x128xf32> to vector<1x128xf32>
    %4 = vector.extract_strided_slice %0 {offsets = [1, 0], sizes = [1, 128], strides = [1, 1]} : vector<8x128xf32> to vector<1x128xf32>
    %cst = arith.constant 3.125000e-02 : f32
    %5 = vector.broadcast %cst : f32 to vector<1x128xf32>
    %6 = arith.mulf %3, %5 : vector<1x128xf32>
    %cst_5 = arith.constant 3.125000e-02 : f32
    %7 = vector.broadcast %cst_5 : f32 to vector<1x128xf32>
    %8 = arith.mulf %4, %7 : vector<1x128xf32>
    %9 = arith.mulf %6, %6 : vector<1x128xf32>
    %10 = arith.subf %8, %9 : vector<1x128xf32>
    %cst_6 = arith.constant 0.000000e+00 : f32
    %11 = vector.broadcast %cst_6 : f32 to vector<1x128xf32>
    %12 = arith.maximumf %10, %11 : vector<1x128xf32>
    %cst_7 = arith.constant 9.99999974E-6 : f32
    %13 = vector.broadcast %cst_7 : f32 to vector<1x128xf32>
    %14 = arith.addf %12, %13 : vector<1x128xf32>
    %15 = math.rsqrt %14 : vector<1x128xf32>
    %16 = arith.mulf %1, %15 : vector<1x128xf32>
    %17 = arith.mulf %6, %16 : vector<1x128xf32>
    %18 = arith.subf %2, %17 : vector<1x128xf32>
    %c0_8 = arith.constant 0 : index
    %c0_9 = arith.constant 0 : index
    %19 = vector.load %arg1[%c0_8, %c0_9] : memref<32x128xf32, #tpu.memory_space<vmem>>, vector<32x128xf32>
    %20 = vector.broadcast %16 : vector<1x128xf32> to vector<32x128xf32>
    %21 = arith.mulf %19, %20 : vector<32x128xf32>
    %22 = vector.broadcast %18 : vector<1x128xf32> to vector<32x128xf32>
    %23 = arith.addf %21, %22 : vector<32x128xf32>
    %cst_10 = arith.constant 0.000000e+00 : f32
    %24 = vector.broadcast %cst_10 : f32 to vector<32x128xf32>
    %25 = arith.cmpf oge, %23, %24 : vector<32x128xf32>
    %cst_11 = arith.constant 1.000000e-01 : f32
    %26 = vector.broadcast %cst_11 : f32 to vector<32x128xf32>
    %27 = arith.mulf %26, %23 : vector<32x128xf32>
    %28 = arith.select %25, %23, %27 : vector<32x128xi1>, vector<32x128xf32>
    %c0_12 = arith.constant 0 : index
    %c0_13 = arith.constant 0 : index
    %29 = vector.load %arg5[%c0_12, %c0_13] : memref<32x128xf32, #tpu.memory_space<vmem>>, vector<32x128xf32>
    %30 = arith.addf %28, %29 : vector<32x128xf32>
    %c0_14 = arith.constant 0 : index
    %c0_15 = arith.constant 0 : index
    %31 = vector.load %arg6[%c0_14, %c0_15] : memref<32x128xf32, #tpu.memory_space<vmem>>, vector<32x128xf32>
    tpu.vector_store %arg6[%c0_14, %c0_15], %30 {strides = array<i32>} : memref<32x128xf32, #tpu.memory_space<vmem>>, vector<32x128xf32>,
    return
  }
  func.func @transform_0(%arg0: i32) -> (i32, i32) {
    %c0_i32 = arith.constant 0 : i32
    %c0_i32_0 = arith.constant 0 : i32
    return %arg0, %c0_i32 : i32, i32
  }
  func.func @transform_1(%arg0: i32) -> (i32, i32) {
    %c0_i32 = arith.constant 0 : i32
    %c0_i32_0 = arith.constant 0 : i32
    %c0_i32_1 = arith.constant 0 : i32
    return %c0_i32, %c0_i32_0 : i32, i32
  }
  func.func @transform_2(%arg0: i32) -> (i32, i32) {
    %c0_i32 = arith.constant 0 : i32
    %c0_i32_0 = arith.constant 0 : i32
    %c0_i32_1 = arith.constant 0 : i32
    return %c0_i32, %c0_i32_0 : i32, i32
  }
  func.func @transform_3(%arg0: i32) -> (i32, i32) {
    %c0_i32 = arith.constant 0 : i32
    %c0_i32_0 = arith.constant 0 : i32
    %c0_i32_1 = arith.constant 0 : i32
    return %c0_i32, %c0_i32_0 : i32, i32
  }
  func.func @transform_4(%arg0: i32) -> (i32, i32) {
    %c0_i32 = arith.constant 0 : i32
    %c0_i32_0 = arith.constant 0 : i32
    return %arg0, %c0_i32 : i32, i32
  }
  func.func @transform_5(%arg0: i32) -> (i32, i32) {
    %c0_i32 = arith.constant 0 : i32
    %c0_i32_0 = arith.constant 0 : i32
    return %arg0, %c0_i32 : i32, i32
  }
}

</mosaic_0001>

<bundles_post_ra>
// kernel: conv_residual_encoder_block.21
= control target key start
LH: loop header
LB: loop body
LE: loop exit
PB: predicated region body
PF: predicated region fallthrough
CT: control target
= control target key end

     0   :  { %s583_s15 = smov 0   ;;  %s758_s0 = inlined_call_operand.vmem [shape: f32[512,128], index: 0, kind: input, shape index: {}]   ;;  %s759_s1 = inlined_call_operand.vmem [shape: f32[16,128], index: 1, kind: input, shape index: {}]   ;;  %s760_s2 = inlined_call_operand.vmem [shape: f32[1,128], index: 2, kind: input, shape index: {}]   ;;  %s761_s3 = inlined_call_operand.vmem [shape: f32[1,128], index: 3, kind: input, shape index: {}]   ;;  %s762_s4 = inlined_call_operand.vmem [shape: f32[512,128], index: 4, kind: output, shape index: {}]  }
   0x1 LB: > { %s527_s16 = sadd.s32 4294967295, %s555_s15   ;;  %p531_p0 = scmp.ge.s32.totalorder %s555_s15, 1  ;;  %s555_s15 = sphi %s583_s15, %s14_s15  }
   0x2   : > { %p163_p1 = scmp.lt.s32.totalorder %s555_s15, 3 }
   0x4   : > { %p164_p2 = pnand %p531_p0, %p163_p1 }
   0x5   : > { %v201_v0 = vld [vmem:[%s759_s1] sm:$0xff] (!%p164_p2)  ;;  %v202_v1 = vld [vmem:[%s759_s1 + $0x8] sm:$0xff] (!%p164_p2)  ;;  %v557_v9 = vmov (!%p164_p2), 1966171168   ;;  %v219_v11 = vlaneseq (!%p164_p2)  ;;  %s532_s21 = sshll.u32 (!%p164_p2), %s527_s16, 5 }
   0x6   : > { %167 = sbr.rel (%p164_p2) target bundleno = 85 (0x55), region = 36  ;;  %v205_v2 = vadd.f32 (!%p164_p2), %v202_v1, %v201_v0  ;;  %v217_v10 = vunpack.c.l.s4 (!%p164_p2), %v557_v9  ;;  %p190_p3 = scmp.lt.s32.totalorder (!%p164_p2), %s532_s21, 63  ;;  %v203_v18 = vld [vmem:[%s760_s2] sm:$0x1] (!%p164_p2) }
   0x7   : > { %v220_v13 = vshrl.u32 (!%p164_p2), %v219_v11, 7  ;;  %v204_v21 = vld [vmem:[%s761_s3] sm:$0x1] (!%p164_p2) }
   0x8   : > { %v206_v3 = vmul.f32 (!%p164_p2), 0.001953125, %v205_v2  ;;  %v218_v12 = vunpack.c.0.s8 (!%p164_p2), %v217_v10 }
   0x9   : > { %v270_v20 = vsub.s32 (!%p164_p2), 0, %v220_v13 }
   0xa   : > { %v207_v4 = vmul.f32 (!%p164_p2), %v206_v3, %v206_v3  ;;  %v221_v14 = vsub.s32 (!%p164_p2), %v218_v12, %v220_v13 }
   0xc   : > { %v209_v5 = vrot.slane (!%p164_p2), %v207_v4, 7 }
   0xd   : > { %s764_s21 = smov (!%p190_p3, %s532_s21), 63 }
   0xe   : > { %v211_v6 = vsub.f32 %v206_v3, %v209_v5  ;;  %s533_s22 = sshll.u32 %s764_s21, 3 }
   0xf   : > { %s605_s25 = scalar_lea.vmem %s758_s0, %s533_s22  ;;  %s660_s6 = scalar_lea.vmem %s762_s4, %s533_s22 }
  0x10   : > { %v212_v7 = vmax.f32 %v211_v6, 0.0  ;;  %v235_v23 = vld [vmem:[%s605_s25] sm:$0xff]  ;;  %v236_v24 = vld [vmem:[%s605_s25 + $0x8] sm:$0xff]  ;;  %v237_v25 = vld [vmem:[%s605_s25 + $0x10] sm:$0xff] }
  0x11   : > { %v238_v26 = vld [vmem:[%s605_s25 + $0x18] sm:$0xff]  ;;  %v239_v27 = vld [vmem:[%s605_s25 + $0x20] sm:$0xff]  ;;  %v240_v30 = vld [vmem:[%s605_s25 + $0x28] sm:$0xff] }
  0x12   : > { %v213_v8 = vadd.f32 1e-05, %v212_v7  ;;  %v241_v31 = vld [vmem:[%s605_s25 + $0x30] sm:$0xff]  ;;  %v242_v32 = vld [vmem:[%s605_s25 + $0x38] sm:$0xff]  ;;  %v243_v33 = vld [vmem:[%s605_s25 + $0x40] sm:$0xff] }
  0x13   : > { %v244_v34 = vld [vmem:[%s605_s25 + $0x48] sm:$0xff]  ;;  %v245_v35 = vld [vmem:[%s605_s25 + $0x50] sm:$0xff]  ;;  %v246_v40 = vld [vmem:[%s605_s25 + $0x58] sm:$0xff] }
  0x14   : > { %547 = vrsqrt.f32 %v213_v8  ;;  %v247_v41 = vld [vmem:[%s605_s25 + $0x60] sm:$0xff]  ;;  %v248_v42 = vld [vmem:[%s605_s25 + $0x68] sm:$0xff] }
  0x1e   : > { %v548_v15 = vpop.eup %547 }
  0x1f   : > { %v222_v16 = vrot.slane %v548_v15, %v221_v14 }
  0x21   : > { %v223_v17 = vcombine.high %v222_v16, %v222_v16 }
  0x23   : > { %v230_v19 = vrot.slane %v223_v17, %v221_v14 }
  0x25   : > { %v232_v22 = vmul.f32 %v230_v19, %v203_v18  ;;  %v249_v19 = vld [vmem:[%s605_s25 + $0x70] sm:$0xff] }
  0x27   : > { %v233_v28 = vmul.f32 %v232_v22, %v206_v3  ;;  %v618_v29 = vrot.slane %v232_v22, %v270_v20  ;;  %v250_v22 = vld [vmem:[%s605_s25 + $0x78] sm:$0xff] }
  0x29   : > { %v234_v36 = vsub.f32 %v204_v21, %v233_v28  ;;  %v273_v37 = vmul.f32 %v618_v29, %v235_v23  ;;  %v274_v38 = vmul.f32 %v618_v29, %v236_v24  ;;  %v275_v39 = vmul.f32 %v618_v29, %v237_v25  ;;  %v251_v23 = vld [vmem:[%s605_s25 + $0x80] sm:$0xff] }
  0x2a   : > { %v276_v43 = vmul.f32 %v618_v29, %v238_v26  ;;  %v277_v44 = vmul.f32 %v618_v29, %v239_v27  ;;  %v278_v45 = vmul.f32 %v618_v29, %v240_v30  ;;  %v279_v46 = vmul.f32 %v618_v29, %v241_v31  ;;  %v252_v30 = vld [vmem:[%s605_s25 + $0x88] sm:$0xff] }
  0x2b   : > { %v636_v47 = vrot.slane %v234_v36, %v270_v20  ;;  %v280_v48 = vmul.f32 %v618_v29, %v242_v32  ;;  %v281_v49 = vmul.f32 %v618_v29, %v243_v33  ;;  %v282_v50 = vmul.f32 %v618_v29, %v244_v34  ;;  %v254_v36 = vld [vmem:[%s605_s25 + $0x98] sm:$0xff] }
  0x2c   : > { %v283_v51 = vmul.f32 %v618_v29, %v245_v35  ;;  %v284_v52 = vmul.f32 %v618_v29, %v246_v40  ;;  %v285_v53 = vmul.f32 %v618_v29, %v247_v41  ;;  %v645_v54 = vmul.f32 %v618_v29, %v248_v42  ;;  %v253_v35 = vld [vmem:[%s605_s25 + $0x90] sm:$0xff] }
  0x2d   : > { %v311_v55 = vadd.f32 %v636_v47, %v273_v37  ;;  %v312_v56 = vadd.f32 %v636_v47, %v274_v38  ;;  %v313_v57 = vadd.f32 %v636_v47, %v275_v39  ;;  %v314_v58 = vadd.f32 %v636_v47, %v276_v43 }
  0x2e   : > { %v315_v59 = vadd.f32 %v636_v47, %v277_v44  ;;  %v316_v60 = vadd.f32 %v636_v47, %v278_v45  ;;  %v317_v61 = vadd.f32 %v636_v47, %v279_v46  ;;  %v318_v62 = vadd.f32 %v636_v47, %v280_v48 }
  0x2f   : > { %vm343_vm0 = vcmp.ge.f32.partialorder %v311_v55, 0.0  ;;  %v375_v63 = vmul.f32 0.1, %v311_v55  ;;  %vm344_vm1 = vcmp.ge.f32.partialorder %v312_v56, 0.0  ;;  %v376_v0 = vmul.f32 0.1, %v312_v56 }
  0x30   : > { %vm345_vm2 = vcmp.ge.f32.partialorder %v313_v57, 0.0  ;;  %v377_v1 = vmul.f32 0.1, %v313_v57  ;;  %vm346_vm3 = vcmp.ge.f32.partialorder %v314_v58, 0.0  ;;  %v378_v2 = vmul.f32 0.1, %v314_v58 }
  0x31   : > { %v407_v3 = vsel %vm343_vm0, %v311_v55, %v375_v63  ;;  %v408_v4 = vsel %vm344_vm1, %v312_v56, %v376_v0  ;;  %vm347_vm4 = vcmp.ge.f32.partialorder %v315_v59, 0.0  ;;  %v379_v5 = vmul.f32 0.1, %v315_v59  ;;  %v258_v0 = vld [vmem:[%s605_s25 + $0xb8] sm:$0xff] }
  0x32   : > { %439 = vst [vmem:[%s660_s6] sm:$0xff] %v407_v3  ;;  %440 = vst [vmem:[%s660_s6 + $0x8] sm:$0xff] %v408_v4  ;;  %v409_v6 = vsel %vm345_vm2, %v313_v57, %v377_v1  ;;  %v410_v7 = vsel %vm346_vm3, %v314_v58, %v378_v2  ;;  %vm348_vm5 = vcmp.ge.f32.partialorder %v316_v60, 0.0  ;;  %v380_v8 = vmul.f32 0.1, %v316_v60  ;;  %v259_v1 = vld [vmem:[%s605_s25 + $0xc0] sm:$0xff] }
  0x33   : > { %441 = vst [vmem:[%s660_s6 + $0x10] sm:$0xff] %v409_v6  ;;  %442 = vst [vmem:[%s660_s6 + $0x18] sm:$0xff] %v410_v7  ;;  %v411_v9 = vsel %vm347_vm4, %v315_v59, %v379_v5  ;;  %vm349_vm6 = vcmp.ge.f32.partialorder %v317_v61, 0.0  ;;  %v381_v10 = vmul.f32 0.1, %v317_v61  ;;  %vm350_vm7 = vcmp.ge.f32.partialorder %v318_v62, 0.0 }
  0x34   : > { %443 = vst [vmem:[%s660_s6 + $0x20] sm:$0xff] %v411_v9  ;;  %v412_v11 = vsel %vm348_vm5, %v316_v60, %v380_v8  ;;  %v382_v12 = vmul.f32 0.1, %v318_v62  ;;  %v319_v13 = vadd.f32 %v636_v47, %v281_v49  ;;  %v320_v14 = vadd.f32 %v636_v47, %v282_v50  ;;  %v257_v59 = vld [vmem:[%s605_s25 + $0xb0] sm:$0xff] }
  0x35   : > { %444 = vst [vmem:[%s660_s6 + $0x28] sm:$0xff] %v412_v11  ;;  %v413_v15 = vsel %vm349_vm6, %v317_v61, %v381_v10  ;;  %v321_v16 = vadd.f32 %v636_v47, %v283_v51  ;;  %v322_v17 = vadd.f32 %v636_v47, %v284_v52  ;;  %v323_v18 = vadd.f32 %v636_v47, %v285_v53  ;;  %v255_v52 = vld [vmem:[%s605_s25 + $0xa0] sm:$0xff]  ;;  %v256_v53 = vld [vmem:[%s605_s25 + $0xa8] sm:$0xff] }
  0x36   : > { %445 = vst [vmem:[%s660_s6 + $0x30] sm:$0xff] %v413_v15  ;;  %v414_v20 = vsel %vm350_vm7, %v318_v62, %v382_v12  ;;  %vm351_vm8 = vcmp.ge.f32.partialorder %v319_v13, 0.0  ;;  %v383_v21 = vmul.f32 0.1, %v319_v13  ;;  %vm352_vm9 = vcmp.ge.f32.partialorder %v320_v14, 0.0  ;;  %v260_v12 = vld [vmem:[%s605_s25 + $0xc8] sm:$0xff] }
  0x37   : > { %446 = vst [vmem:[%s660_s6 + $0x38] sm:$0xff] %v414_v20  ;;  %v384_v24 = vmul.f32 0.1, %v320_v14  ;;  %vm353_vm10 = vcmp.ge.f32.partialorder %v321_v16, 0.0  ;;  %v385_v25 = vmul.f32 0.1, %v321_v16  ;;  %v324_v33 = vadd.f32 %v636_v47, %v645_v54 }
  0x38   : > { %vm354_vm11 = vcmp.ge.f32.partialorder %v322_v17, 0.0  ;;  %v415_v26 = vsel %vm351_vm8, %v319_v13, %v383_v21  ;;  %v386_v27 = vmul.f32 0.1, %v322_v17  ;;  %vm355_vm12 = vcmp.ge.f32.partialorder %v323_v18, 0.0 }
  0x39   : > { %v387_v28 = vmul.f32 0.1, %v323_v18  ;;  %447 = vst [vmem:[%s660_s6 + $0x40] sm:$0xff] %v415_v26  ;;  %v416_v31 = vsel %vm352_vm9, %v320_v14, %v384_v24  ;;  %v417_v32 = vsel %vm353_vm10, %v321_v16, %v385_v25  ;;  %v287_v34 = vmul.f32 %v618_v29, %v249_v19  ;;  %v261_v19 = vld [vmem:[%s605_s25 + $0xd0] sm:$0xff]  ;;  %v263_v24 = vld [vmem:[%s605_s25 + $0xe0] sm:$0xff]  ;;  %v264_v25 = vld [vmem:[%s605_s25 + $0xe8] sm:$0xff] }
  0x3a   : > { %448 = vst [vmem:[%s660_s6 + $0x48] sm:$0xff] %v416_v31  ;;  %449 = vst [vmem:[%s660_s6 + $0x50] sm:$0xff] %v417_v32  ;;  %v418_v37 = vsel %vm354_vm11, %v322_v17, %v386_v27  ;;  %v288_v39 = vmul.f32 %v618_v29, %v250_v22  ;;  %v289_v40 = vmul.f32 %v618_v29, %v251_v23  ;;  %vm356_vm13 = vcmp.ge.f32.partialorder %v324_v33, 0.0  ;;  %v262_v23 = vld [vmem:[%s605_s25 + $0xd8] sm:$0xff] }
  0x3b   : > { %v419_v38 = vsel %vm355_vm12, %v323_v18, %v387_v28  ;;  %450 = vst [vmem:[%s660_s6 + $0x58] sm:$0xff] %v418_v37  ;;  %v388_v41 = vmul.f32 0.1, %v324_v33  ;;  %v325_v42 = vadd.f32 %v636_v47, %v287_v34  ;;  %v290_v43 = vmul.f32 %v618_v29, %v252_v30 }
  0x3c   : > { %451 = vst [vmem:[%s660_s6 + $0x60] sm:$0xff] %v419_v38  ;;  %v326_v44 = vadd.f32 %v636_v47, %v288_v39  ;;  %v327_v45 = vadd.f32 %v636_v47, %v289_v40  ;;  %v291_v46 = vmul.f32 %v618_v29, %v253_v35  ;;  %v292_v48 = vmul.f32 %v618_v29, %v254_v36  ;;  %v266_v38 = vld [vmem:[%s605_s25 + $0xf8] sm:$0xff] }
  0x3d   : > { %v420_v49 = vsel %vm356_vm13, %v324_v33, %v388_v41  ;;  %vm357_vm14 = vcmp.ge.f32.partialorder %v325_v42, 0.0  ;;  %v389_v50 = vmul.f32 0.1, %v325_v42  ;;  %v328_v51 = vadd.f32 %v636_v47, %v290_v43  ;;  %v265_v33 = vld [vmem:[%s605_s25 + $0xf0] sm:$0xff] }
  0x3e   : > { %452 = vst [vmem:[%s660_s6 + $0x68] sm:$0xff] %v420_v49  ;;  %vm358_vm15 = vcmp.ge.f32.partialorder %v326_v44, 0.0  ;;  %v390_v54 = vmul.f32 0.1, %v326_v44  ;;  %vm359_vm0 = vcmp.ge.f32.partialorder %v327_v45, 0.0  ;;  %v329_v58 = vadd.f32 %v636_v47, %v291_v46 }
  0x3f   : > { %v391_v55 = vmul.f32 0.1, %v327_v45  ;;  %v421_v56 = vsel %vm357_vm14, %v325_v42, %v389_v50  ;;  %vm360_vm1 = vcmp.ge.f32.partialorder %v328_v51, 0.0  ;;  %v392_v57 = vmul.f32 0.1, %v328_v51 }
  0x40   : > { %453 = vst [vmem:[%s660_s6 + $0x70] sm:$0xff] %v421_v56  ;;  %v422_v60 = vsel %vm358_vm15, %v326_v44, %v390_v54  ;;  %v330_v62 = vadd.f32 %v636_v47, %v292_v48  ;;  %v293_v63 = vmul.f32 %v618_v29, %v255_v52  ;;  %vm361_vm2 = vcmp.ge.f32.partialorder %v329_v58, 0.0 }
  0x41   : > { %v423_v61 = vsel %vm359_vm0, %v327_v45, %v391_v55  ;;  %454 = vst [vmem:[%s660_s6 + $0x78] sm:$0xff] %v422_v60  ;;  %v424_v2 = vsel %vm360_vm1, %v328_v51, %v392_v57  ;;  %v393_v3 = vmul.f32 0.1, %v329_v58  ;;  %v294_v4 = vmul.f32 %v618_v29, %v256_v53 }
  0x42   : > { %455 = vst [vmem:[%s660_s6 + $0x80] sm:$0xff] %v423_v61  ;;  %456 = vst [vmem:[%s660_s6 + $0x88] sm:$0xff] %v424_v2  ;;  %vm362_vm3 = vcmp.ge.f32.partialorder %v330_v62, 0.0  ;;  %v394_v5 = vmul.f32 0.1, %v330_v62  ;;  %v331_v6 = vadd.f32 %v636_v47, %v293_v63  ;;  %v295_v7 = vmul.f32 %v618_v29, %v257_v59 }
  0x43   : > { %v425_v8 = vsel %vm361_vm2, %v329_v58, %v393_v3  ;;  %v332_v9 = vadd.f32 %v636_v47, %v294_v4  ;;  %v296_v10 = vmul.f32 %v618_v29, %v258_v0  ;;  %v297_v11 = vmul.f32 %v618_v29, %v259_v1 }
  0x44   : > { %457 = vst [vmem:[%s660_s6 + $0x90] sm:$0xff] %v425_v8  ;;  %v426_v13 = vsel %vm362_vm3, %v330_v62, %v394_v5  ;;  %vm363_vm4 = vcmp.ge.f32.partialorder %v331_v6, 0.0  ;;  %v395_v14 = vmul.f32 0.1, %v331_v6  ;;  %v333_v15 = vadd.f32 %v636_v47, %v295_v7 }
  0x45   : > { %458 = vst [vmem:[%s660_s6 + $0x98] sm:$0xff] %v426_v13  ;;  %vm364_vm5 = vcmp.ge.f32.partialorder %v332_v9, 0.0  ;;  %v396_v16 = vmul.f32 0.1, %v332_v9  ;;  %v334_v17 = vadd.f32 %v636_v47, %v296_v10  ;;  %v335_v18 = vadd.f32 %v636_v47, %v297_v11 }
  0x46   : > { %v427_v20 = vsel %vm363_vm4, %v331_v6, %v395_v14  ;;  %vm365_vm6 = vcmp.ge.f32.partialorder %v333_v15, 0.0  ;;  %v397_v21 = vmul.f32 0.1, %v333_v15  ;;  %v298_v22 = vmul.f32 %v618_v29, %v260_v12 }
  0x47   : > { %459 = vst [vmem:[%s660_s6 + $0xa0] sm:$0xff] %v427_v20  ;;  %v428_v26 = vsel %vm364_vm5, %v332_v9, %v396_v16  ;;  %vm366_vm7 = vcmp.ge.f32.partialorder %v334_v17, 0.0  ;;  %v398_v27 = vmul.f32 0.1, %v334_v17  ;;  %vm367_vm8 = vcmp.ge.f32.partialorder %v335_v18, 0.0 }
  0x48   : > { %460 = vst [vmem:[%s660_s6 + $0xa8] sm:$0xff] %v428_v26  ;;  %v429_v28 = vsel %vm365_vm6, %v333_v15, %v397_v21  ;;  %v399_v30 = vmul.f32 0.1, %v335_v18  ;;  %v336_v31 = vadd.f32 %v636_v47, %v298_v22  ;;  %v299_v32 = vmul.f32 %v618_v29, %v261_v19 }
  0x49   : > { %461 = vst [vmem:[%s660_s6 + $0xb0] sm:$0xff] %v429_v28  ;;  %v430_v34 = vsel %vm366_vm7, %v334_v17, %v398_v27  ;;  %v300_v35 = vmul.f32 %v618_v29, %v262_v23  ;;  %v301_v36 = vmul.f32 %v618_v29, %v263_v24  ;;  %v302_v37 = vmul.f32 %v618_v29, %v264_v25 }
  0x4a   : > { %462 = vst [vmem:[%s660_s6 + $0xb8] sm:$0xff] %v430_v34  ;;  %v431_v39 = vsel %vm367_vm8, %v335_v18, %v399_v30  ;;  %vm368_vm9 = vcmp.ge.f32.partialorder %v336_v31, 0.0  ;;  %v400_v40 = vmul.f32 0.1, %v336_v31  ;;  %v337_v41 = vadd.f32 %v636_v47, %v299_v32 }
  0x4b   : > { %463 = vst [vmem:[%s660_s6 + $0xc0] sm:$0xff] %v431_v39  ;;  %v338_v42 = vadd.f32 %v636_v47, %v300_v35  ;;  %v339_v43 = vadd.f32 %v636_v47, %v301_v36  ;;  %v340_v44 = vadd.f32 %v636_v47, %v302_v37  ;;  %v303_v45 = vmul.f32 %v618_v29, %v265_v33 }
  0x4c   : > { %v432_v46 = vsel %vm368_vm9, %v336_v31, %v400_v40  ;;  %vm369_vm10 = vcmp.ge.f32.partialorder %v337_v41, 0.0  ;;  %v401_v48 = vmul.f32 0.1, %v337_v41  ;;  %v304_v49 = vmul.f32 %v618_v29, %v266_v38 }
  0x4d   : > { %464 = vst [vmem:[%s660_s6 + $0xc8] sm:$0xff] %v432_v46  ;;  %vm370_vm11 = vcmp.ge.f32.partialorder %v338_v42, 0.0  ;;  %v402_v50 = vmul.f32 0.1, %v338_v42  ;;  %vm371_vm12 = vcmp.ge.f32.partialorder %v339_v43, 0.0  ;;  %vm372_vm13 = vcmp.ge.f32.partialorder %v340_v44, 0.0 }
  0x4e   : > { %v403_v51 = vmul.f32 0.1, %v339_v43  ;;  %v433_v52 = vsel %vm369_vm10, %v337_v41, %v401_v48  ;;  %v404_v53 = vmul.f32 0.1, %v340_v44  ;;  %v341_v54 = vadd.f32 %v636_v47, %v303_v45 }
  0x4f   : > { %465 = vst [vmem:[%s660_s6 + $0xd0] sm:$0xff] %v433_v52  ;;  %v434_v55 = vsel %vm370_vm11, %v338_v42, %v402_v50  ;;  %v342_v57 = vadd.f32 %v636_v47, %v304_v49 }
  0x50   : > { %v435_v56 = vsel %vm371_vm12, %v339_v43, %v403_v51  ;;  %466 = vst [vmem:[%s660_s6 + $0xd8] sm:$0xff] %v434_v55  ;;  %v436_v29 = vsel %vm372_vm13, %v340_v44, %v404_v53  ;;  %vm373_vm14 = vcmp.ge.f32.partialorder %v341_v54, 0.0  ;;  %v405_v58 = vmul.f32 0.1, %v341_v54 }
  0x51   : > { %467 = vst [vmem:[%s660_s6 + $0xe0] sm:$0xff] %v435_v56  ;;  %468 = vst [vmem:[%s660_s6 + $0xe8] sm:$0xff] %v436_v29  ;;  %vm374_vm15 = vcmp.ge.f32.partialorder %v342_v57, 0.0  ;;  %v406_v59 = vmul.f32 0.1, %v342_v57 }
  0x52   : > { %v437_v60 = vsel %vm373_vm14, %v341_v54, %v405_v58 }
  0x53   : > { %469 = vst [vmem:[%s660_s6 + $0xf0] sm:$0xff] %v437_v60  ;;  %v438_v61 = vsel %vm374_vm15, %v342_v57, %v406_v59 }
  0x54   : > { %470 = vst [vmem:[%s660_s6 + $0xf8] sm:$0xff] %v438_v61 }
  0x55 PF: > { %s14_s15 = sadd.s32 1, %s555_s15  }
  0x56   : > { %p11_p4 = scmp.ge.s32.totalorder %s14_s15, 4  }
  0x58   :  { %13 = sbr.rel (!%p11_p4) target bundleno = 1 (0x1), region = 66 }

// kernel: conv_residual_encoder_block.22
= control target key start
LH: loop header
LB: loop body
LE: loop exit
PB: predicated region body
PF: predicated region fallthrough
CT: control target
= control target key end

     0   :  { %s335_s9 = smov 0   ;;  %s355_s0 = inlined_call_operand.vmem [shape: f32[8,16], index: 0, kind: input, shape index: {}]   ;;  %s356_s1 = inlined_call_operand.vmem [shape: f32[2,16,128], index: 1, kind: input, shape index: {}]   ;;  %s357_s2 = inlined_call_operand.vmem [shape: f32[2,8,128], index: 2, kind: output, shape index: {}]  }
   0x1 LB: > { %s273_s10 = sadd.s32 4294967295, %s315_s9   ;;  %p277_p0 = scmp.ge.s32.totalorder %s315_s9, 1  ;;  %s315_s9 = sphi %s335_s9, %s12_s9  }
   0x2   : > { %p112_p1 = scmp.lt.s32.totalorder %s315_s9, 3 }
   0x4   : > { %p113_p2 = pnand %p277_p0, %p112_p1 }
   0x5   : > { %p133_p3 = scmp.lt.s32.totalorder (!%p113_p2), %s273_s10, 1  ;;  %v317_v0 = vmov (!%p113_p2), 0.0|0.0   ;;  %vm318_vm0 = vmmov (!%p113_p2), 0   ;;  %v319_v1 = vmov (!%p113_p2), 0.0   ;;  %v142_v5 = vld [vmem:[%s355_s0] sm:$0xff] (!%p113_p2)  ;;  %vm145_vm1 = vcmask (!%p113_p2), 130048  }
   0x6   : > { %116 = sbr.rel (%p113_p2) target bundleno = 235 (0xeb), region = 28  ;;  %295 = vmatprep.subr.bf16.mxu0 (!%p113_p2), %v317_v0  ;;  %292 = vmatprep.mubr.msk.f32.mxu0 (!%p113_p2), %vm318_vm0, %v319_v1 }
   0xd   : > { %s359_s10 = smov (!%p133_p3, %s273_s10), 1 }
   0xe   : > { %s284_s11 = sshll.u32 %s359_s10, 4  ;;  %s280_s17 = sshll.u32 %s359_s10, 3 }
   0xf   : > { %s137_s14 = scalar_lea.vmem %s356_s1, %s284_s11  ;;  %s141_s20 = scalar_lea.vmem %s357_s2, %s280_s17 }
  0x10   : > { %v143_v2 = vld [vmem:[%s137_s14] sm:$0xff]  ;;  %v144_v3 = vld [vmem:[%s137_s14 + $0x8] sm:$0xff] }
  0x11   : > { %v296_v4 = vpack.c.bf16 %v144_v3, %v143_v2 }
  0x13   : > { %297 = vmatpush3.bf16.msra.mxu0 %v296_v4 }
  0x16   : > { %293 = vmatmul.mubr.msk.f32.vlgmr.msra.gmra.mrb[0].mxu0 %vm145_vm1, %v142_v5 }
  0xe9   : > { %v215_v6 = vpop.f32.mrb[0].mxu0 }
  0xea   : > { %219 = vst [vmem:[%s141_s20] sm:$0xff] %v215_v6  ;;  %v294_v7 = vpop.f32.mrb[1].mxu0 }
  0xeb PF: > { %s12_s9 = sadd.s32 1, %s315_s9  }
  0xec   : > { %p9_p4 = scmp.ge.s32.totalorder %s12_s9, 4  }
  0xee   :  { %11 = sbr.rel (!%p9_p4) target bundleno = 1 (0x1), region = 58 }

// kernel: conv_residual_encoder_block.20
= control target key start
LH: loop header
LB: loop body
LE: loop exit
PB: predicated region body
PF: predicated region fallthrough
CT: control target
= control target key end

     0   :  { %s1224_s15 = smov 0   ;;  %s1597_s0 = inlined_call_operand.vmem [shape: bf16[512,128], index: 0, kind: input, shape index: {}]   ;;  %s1598_s1 = inlined_call_operand.vmem [shape: bf16[128,128], index: 1, kind: input, shape index: {}]   ;;  %s1599_s2 = inlined_call_operand.vmem [shape: f32[1,128], index: 2, kind: input, shape index: {}]   ;;  %s1600_s3 = inlined_call_operand.vmem [shape: f32[512,128], index: 3, kind: output, shape index: {0}]   ;;  %s1601_s4 = inlined_call_operand.vmem [shape: f32[16,128], index: 4, kind: output, shape index: {1}]  }
   0x1 LB: > { %s1230_s16 = sadd.s32 4294967295, %s1196_s15   ;;  %p1003_p0 = scmp.ge.s32.totalorder %s1196_s15, 1  ;;  %s1196_s15 = sphi %s1224_s15, %s15_s15  }
   0x2   : > { %p166_p1 = scmp.lt.s32.totalorder %s1196_s15, 3 }
   0x4   : > { %p167_p2 = pnand %p1003_p0, %p166_p1 }
   0x5   : > { %v1166_v0 = vld [vmem:[%s1598_s1] sm:$0xff] (!%p167_p2)   ;;  %s1004_s19 = sshll.u32 (!%p167_p2), %s1230_s16, 5  ;;  %v1167_v1 = vld [vmem:[%s1598_s1 + $0x8] sm:$0xff] (!%p167_p2)   ;;  %v1168_v2 = vld [vmem:[%s1598_s1 + $0x10] sm:$0xff] (!%p167_p2)   ;;  %v606_v24 = vlaneseq (!%p167_p2)  ;;  %s1034_s12 = sshll.u32 (!%p167_p2), %s1230_s16, 8  ;;  %v1198_v50 = vmov (!%p167_p2), 0.0  }
   0x6   : > { %170 = sbr.rel (%p167_p2) target bundleno = 338 (0x152), region = 32  ;;  %p197_p3 = scmp.lt.s32.totalorder (!%p167_p2), %s1004_s19, 63  ;;  %1093 = vmatprep.subr.bf16.mxu0 (!%p167_p2), %v1166_v0  ;;  %1141 = vmatprep.subr.bf16.mxu1 (!%p167_p2), %v1166_v0  ;;  %v1169_v3 = vld [vmem:[%s1598_s1 + $0x18] sm:$0xff] (!%p167_p2)   ;;  %v1170_v5 = vld [vmem:[%s1598_s1 + $0x20] sm:$0xff] (!%p167_p2)   ;;  %v1171_v6 = vld [vmem:[%s1598_s1 + $0x28] sm:$0xff] (!%p167_p2)   ;;  %v1287_v27 = vstv (!%p167_p2), %s1034_s12 }
   0x7   : > { %1094 = vmatpush3.bf16.msra.mxu0 (!%p167_p2), %v1166_v0  ;;  %1149 = vmatpush3.bf16.msra.mxu1 (!%p167_p2), %v1166_v0  ;;  %v1172_v8 = vld [vmem:[%s1598_s1 + $0x30] sm:$0xff] (!%p167_p2)   ;;  %v1173_v9 = vld [vmem:[%s1598_s1 + $0x38] sm:$0xff] (!%p167_p2)   ;;  %v1283_v25 = vshrl.u32 (!%p167_p2), %v606_v24, 7  ;;  %v1315_v49 = vld [vmem:[%s1599_s2] ss:$0 sm:$0xff] (!%p167_p2)  ;;  %p208_p4 = scmp.lt.s32.totalorder (!%p167_p2), %s1230_s16, 1 }
   0x8   : > { %1095 = vmatprep.subr.bf16.mxu0 (!%p167_p2), %v1167_v1  ;;  %1142 = vmatprep.subr.bf16.mxu1 (!%p167_p2), %v1167_v1 }
   0x9   : > { %v609_v26 = vadd.s32 (!%p167_p2), 16, %v1283_v25  ;;  %v610_v28 = vadd.s32 (!%p167_p2), 24, %v1283_v25  ;;  %v608_v29 = vadd.s32 (!%p167_p2), 8, %v1283_v25  ;;  %v613_v30 = vadd.s32 (!%p167_p2), 48, %v1283_v25 }
   0xa   : > { %v611_v31 = vadd.s32 (!%p167_p2), 32, %v1283_v25  ;;  %v640_v33 = vadd.s32 (!%p167_p2), %v1287_v27, %v1283_v25  ;;  %v614_v37 = vadd.s32 (!%p167_p2), 56, %v1283_v25  ;;  %v612_v38 = vadd.s32 (!%p167_p2), 40, %v1283_v25 }
   0xb   : > { %1096 = vmatpush3.bf16.msra.mxu0 (!%p167_p2), %v1167_v1  ;;  %1150 = vmatpush3.bf16.msra.mxu1 (!%p167_p2), %v1167_v1  ;;  %v642_v32 = vadd.s32 (!%p167_p2), %v1287_v27, %v609_v26  ;;  %v643_v34 = vadd.s32 (!%p167_p2), %v1287_v27, %v610_v28  ;;  %v641_v35 = vadd.s32 (!%p167_p2), %v1287_v27, %v608_v29  ;;  %v617_v40 = vadd.s32 (!%p167_p2), 80, %v1283_v25 }
   0xc   : > { %1097 = vmatprep.subr.bf16.mxu0 (!%p167_p2), %v1168_v2  ;;  %1143 = vmatprep.subr.bf16.mxu1 (!%p167_p2), %v1168_v2  ;;  %v646_v36 = vadd.s32 (!%p167_p2), %v1287_v27, %v613_v30  ;;  %v644_v39 = vadd.s32 (!%p167_p2), %v1287_v27, %v611_v31  ;;  %v615_v41 = vadd.s32 (!%p167_p2), 64, %v1283_v25  ;;  %v618_v42 = vadd.s32 (!%p167_p2), 88, %v1283_v25 }
   0xd   : > { %s1603_s19 = smov (!%p197_p3, %s1004_s19), 63  ;;  %vm674_vm0 = vcmp.lt.s32.totalorder %v642_v32, 512  ;;  %v616_v43 = vadd.s32 72, %v1283_v25  ;;  %vm672_vm1 = vcmp.lt.s32.totalorder %v640_v33, 512  ;;  %vm675_vm2 = vcmp.lt.s32.totalorder %v643_v34, 512  ;;  %s1605_s16 = smov (!%p208_p4, %s1230_s16), 1 }
   0xe   : > { %s1005_s24 = sshll.u32 %s1603_s19, 2  ;;  %vm673_vm3 = vcmp.lt.s32.totalorder %v641_v35, 512  ;;  %vm678_vm4 = vcmp.lt.s32.totalorder %v646_v36, 512  ;;  %v647_v44 = vadd.s32 %v1287_v27, %v614_v37  ;;  %v645_v45 = vadd.s32 %v1287_v27, %v612_v38  ;;  %s1007_s13 = sshll.u32 %s1603_s19, 3 }
   0xf   : > { %s1250_s27 = scalar_lea.vmem %s1597_s0, %s1005_s24  ;;  %1098 = vmatpush3.bf16.msra.mxu0 %v1168_v2  ;;  %1151 = vmatpush3.bf16.msra.mxu1 %v1168_v2  ;;  %v621_v46 = vadd.s32 112, %v1283_v25  ;;  %vm676_vm5 = vcmp.lt.s32.totalorder %v644_v39, 512  ;;  %v650_v47 = vadd.s32 %v1287_v27, %v617_v40  ;;  %v648_v48 = vadd.s32 %v1287_v27, %v615_v41  ;;  %s1334_s20 = scalar_lea.vmem %s1600_s3, %s1007_s13 }
  0x10   : > { %v1174_v4 = vld [vmem:[%s1250_s27] sm:$0xff]   ;;  %1099 = vmatprep.subr.bf16.mxu0 %v1169_v3  ;;  %1144 = vmatprep.subr.bf16.mxu1 %v1169_v3  ;;  %v1175_v10 = vld [vmem:[%s1250_s27 + $0x8] sm:$0xff]   ;;  %v1176_v12 = vld [vmem:[%s1250_s27 + $0x10] sm:$0xff]   ;;  %v1037_v51 = vsel %vm674_vm0, 1.0, %v1198_v50  ;;  %v1035_v52 = vsel %vm672_vm1, 1.0, %v1198_v50  ;;  %v651_v53 = vadd.s32 %v1287_v27, %v618_v42  ;;  %v649_v54 = vadd.s32 %v1287_v27, %v616_v43  ;;  %s1008_s21 = sshll.u32 %s1605_s16, 3 }
  0x11   : > { %1109 = vmatprep.mubr.bf16.mxu0 %v1174_v4  ;;  %v1182_v7 = vld [vmem:[%s1250_s27 + $0x40] sm:$0xff]   ;;  %v1183_v11 = vld [vmem:[%s1250_s27 + $0x48] sm:$0xff]   ;;  %v1184_v13 = vld [vmem:[%s1250_s27 + $0x50] sm:$0xff]   ;;  %v1038_v55 = vsel %vm675_vm2, 1.0, %v1198_v50  ;;  %v1036_v56 = vsel %vm673_vm3, 1.0, %v1198_v50  ;;  %v1328_v57 = vsel %vm678_vm4, 1.0, %v1198_v50  ;;  %v654_v61 = vadd.s32 %v1287_v27, %v621_v46  ;;  %s211_s24 = scalar_lea.vmem %s1601_s4, %s1008_s21 }
  0x12   : > { %1125 = vmatprep.mubr.bf16.mxu1 %v1182_v7  ;;  %v1177_v14 = vld [vmem:[%s1250_s27 + $0x18] sm:$0xff]   ;;  %v1178_v16 = vld [vmem:[%s1250_s27 + $0x20] sm:$0xff]   ;;  %v1179_v18 = vld [vmem:[%s1250_s27 + $0x28] sm:$0xff]   ;;  %v619_v58 = vadd.s32 96, %v1283_v25  ;;  %v1337_v60 = vsel %vm676_vm5, 1.0, %v1198_v50  ;;  %vm679_vm6 = vcmp.lt.s32.totalorder %v647_v44, 512 }
  0x13   : > { %1100 = vmatpush3.bf16.msra.mxu0 %v1169_v3  ;;  %1152 = vmatpush3.bf16.msra.mxu1 %v1169_v3  ;;  %v1185_v15 = vld [vmem:[%s1250_s27 + $0x58] sm:$0xff]   ;;  %v1186_v17 = vld [vmem:[%s1250_s27 + $0x60] sm:$0xff]   ;;  %v1187_v19 = vld [vmem:[%s1250_s27 + $0x68] sm:$0xff]   ;;  %vm677_vm7 = vcmp.lt.s32.totalorder %v645_v45, 512  ;;  %vm682_vm8 = vcmp.lt.s32.totalorder %v650_v47, 512  ;;  %vm680_vm9 = vcmp.lt.s32.totalorder %v648_v48, 512 }
  0x14   : > { %1101 = vmatprep.subr.bf16.mxu0 %v1170_v5  ;;  %1145 = vmatprep.subr.bf16.mxu1 %v1170_v5  ;;  %v1180_v20 = vld [vmem:[%s1250_s27 + $0x30] sm:$0xff]   ;;  %v1181_v22 = vld [vmem:[%s1250_s27 + $0x38] sm:$0xff]   ;;  %vm683_vm10 = vcmp.lt.s32.totalorder %v651_v53, 512  ;;  %vm681_vm11 = vcmp.lt.s32.totalorder %v649_v54, 512  ;;  %vm686_vm12 = vcmp.lt.s32.totalorder %v654_v61, 512 }
  0x15   : > { %v1188_v21 = vld [vmem:[%s1250_s27 + $0x70] sm:$0xff]   ;;  %v1189_v23 = vld [vmem:[%s1250_s27 + $0x78] sm:$0xff]   ;;  %v1389_v26 = vsel %vm681_vm11, 1.0, %v1198_v50  ;;  %v1393_v28 = vsel %vm686_vm12, 1.0, %v1198_v50 }
  0x17   : > { %1102 = vmatpush3.bf16.msra.mxu0 %v1170_v5  ;;  %1153 = vmatpush3.bf16.msra.mxu1 %v1170_v5 }
  0x18   : > { %1103 = vmatprep.subr.bf16.mxu0 %v1171_v6  ;;  %1146 = vmatprep.subr.bf16.mxu1 %v1171_v6 }
  0x1b   : > { %1104 = vmatpush3.bf16.msra.mxu0 %v1171_v6  ;;  %1154 = vmatpush3.bf16.msra.mxu1 %v1171_v6 }
  0x1c   : > { %1105 = vmatprep.subr.bf16.mxu0 %v1172_v8  ;;  %1147 = vmatprep.subr.bf16.mxu1 %v1172_v8 }
  0x1f   : > { %1106 = vmatpush3.bf16.msra.mxu0 %v1172_v8  ;;  %1155 = vmatpush3.bf16.msra.mxu1 %v1172_v8 }
  0x20   : > { %1107 = vmatprep.subr.bf16.mxu0 %v1173_v9  ;;  %1148 = vmatprep.subr.bf16.mxu1 %v1173_v9 }
  0x23   : > { %1108 = vmatpush3.bf16.msra.mxu0 %v1173_v9  ;;  %1156 = vmatpush3.bf16.msra.mxu1 %v1173_v9  ;;  %v652_v9 = vadd.s32 %v1287_v27, %v619_v58 }
  0x25   : > { %vm684_vm13 = vcmp.lt.s32.totalorder %v652_v9, 512 }
  0x26   : > { %1110 = vmatmul.mubr.bf16.vlgmr.msra.gmra.mrb[0].mxu0 %v1175_v10  ;;  %1126 = vmatmul.mubr.bf16.vlgmr.msra.gmra.mrb[0].mxu1 %v1183_v11  ;;  %v622_v10 = vadd.s32 120, %v1283_v25 }
  0x27   : > { %1113 = vmatprep.mubr.bf16.mxu0 %v1176_v12  ;;  %1129 = vmatprep.mubr.bf16.mxu1 %v1184_v13 }
  0x28   : > { %v1396_v29 = vadd.s32 %v1287_v27, %v622_v10 }
  0x2a   : > { %vm687_vm14 = vcmp.lt.s32.totalorder %v1396_v29, 512 }
  0x2e   : > { %1114 = vmatmul.mubr.bf16.gmra.mrb[4].mxu0 %v1177_v14  ;;  %1130 = vmatmul.mubr.bf16.gmra.mrb[4].mxu1 %v1185_v15 }
  0x2f   : > { %1117 = vmatprep.mubr.bf16.mxu0 %v1178_v16  ;;  %1133 = vmatprep.mubr.bf16.mxu1 %v1186_v17  ;;  %v1042_v17 = vsel %vm679_vm6, 1.0, %v1198_v50 }
  0x36   : > { %1118 = vmatmul.mubr.bf16.gmra.mrb[8].mxu0 %v1179_v18  ;;  %1134 = vmatmul.mubr.bf16.gmra.mrb[8].mxu1 %v1187_v19  ;;  %v1040_v18 = vsel %vm677_vm7, 1.0, %v1198_v50  ;;  %v620_v19 = vadd.s32 104, %v1283_v25 }
  0x37   : > { %1121 = vmatprep.mubr.bf16.mxu0 %v1180_v20  ;;  %1137 = vmatprep.mubr.bf16.mxu1 %v1188_v21  ;;  %v1375_v21 = vsel %vm682_vm8, 1.0, %v1198_v50 }
  0x38   : > { %v1400_v38 = vadd.s32 %v1287_v27, %v620_v19 }
  0x3a   : > { %vm685_vm15 = vcmp.lt.s32.totalorder %v1400_v38, 512 }
  0x3e   : > { %1122 = vmatmul.mubr.bf16.gmra.mrb[12].mxu0 %v1181_v22  ;;  %1138 = vmatmul.mubr.bf16.gmra.mrb[12].mxu1 %v1189_v23  ;;  %v1379_v22 = vsel %vm680_vm9, 1.0, %v1198_v50  ;;  %v1383_v23 = vsel %vm683_vm10, 1.0, %v1198_v50 }
  0xf9   : > { %v1111_v59 = vpop.f32.mrb[0].mxu0  ;;  %v1127_v62 = vpop.f32.mrb[0].mxu1 }
  0xfa   : > { %v455_v63 = vadd.f32 %v1111_v59, %v1315_v49  ;;  %v446_v0 = vpop.f32.mrb[1].mxu0  ;;  %v1342_v1 = vadd.f32 %v1127_v62, %v1315_v49  ;;  %v510_v2 = vpop.f32.mrb[1].mxu1  ;;  %v625_v62 = vadd.s32 144, %v1283_v25 }
  0xfb   : > { %v447_v3 = vadd.f32 %v1315_v49, %v446_v0  ;;  %v1112_v4 = vpop.f32.mrb[2].mxu0  ;;  %v1346_v5 = vadd.f32 %v1315_v49, %v510_v2  ;;  %v1128_v6 = vpop.f32.mrb[2].mxu1 }
  0xfc   : > { %575 = vst [vmem:[%s1334_s20 + $0x10] sm:$0xff] %v455_v63  ;;  %v458_v7 = vadd.f32 %v1112_v4, %v1315_v49  ;;  %v449_v8 = vpop.f32.mrb[3].mxu0  ;;  %591 = vst [vmem:[%s1334_s20 + $0x90] sm:$0xff] %v1342_v1  ;;  %v1355_v11 = vadd.f32 %v1128_v6, %v1315_v49  ;;  %v513_v12 = vpop.f32.mrb[3].mxu1  ;;  %v770_v16 = vmul.f32 %v1037_v51, %v455_v63  ;;  %v623_v4 = vadd.s32 128, %v1283_v25 }
  0xfd   : > { %573 = vst [vmem:[%s1334_s20] sm:$0xff] %v447_v3  ;;  %v768_v13 = vmul.f32 %v1035_v52, %v447_v3  ;;  %v450_v14 = vadd.f32 %v1315_v49, %v449_v8  ;;  %589 = vst [vmem:[%s1334_s20 + $0x80] sm:$0xff] %v1346_v5  ;;  %v1362_v15 = vadd.f32 %v1315_v49, %v513_v12  ;;  %v1413_v52 = vsel %vm684_vm13, 1.0, %v1198_v50 }
  0xfe   : > { %576 = vst [vmem:[%s1334_s20 + $0x18] sm:$0xff] %v458_v7  ;;  %592 = vst [vmem:[%s1334_s20 + $0x98] sm:$0xff] %v1355_v11  ;;  %v771_v24 = vmul.f32 %v1038_v55, %v458_v7  ;;  %v839_v35 = vmul.f32 %v770_v16, %v770_v16  ;;  %v624_v12 = vadd.s32 136, %v1283_v25 }
  0xff   : > { %574 = vst [vmem:[%s1334_s20 + $0x8] sm:$0xff] %v450_v14  ;;  %v769_v20 = vmul.f32 %v1036_v56, %v450_v14  ;;  %590 = vst [vmem:[%s1334_s20 + $0x88] sm:$0xff] %v1362_v15  ;;  %v837_v30 = vmul.f32 %v768_v13, %v768_v13 }
 0x100   : > { %v840_v47 = vmul.f32 %v771_v24, %v771_v24 }
 0x101   : > { %v800_v31 = vadd.f32 %v769_v20, %v768_v13  ;;  %v838_v32 = vmul.f32 %v769_v20, %v769_v20  ;;  %v1115_v33 = vpop.f32.mrb[4].mxu0  ;;  %v1131_v34 = vpop.f32.mrb[4].mxu1 }
 0x102   : > { %v471_v36 = vadd.f32 %v1115_v33, %v1315_v49  ;;  %v462_v37 = vpop.f32.mrb[5].mxu0  ;;  %v1403_v39 = vadd.f32 %v1131_v34, %v1315_v49  ;;  %v526_v40 = vpop.f32.mrb[5].mxu1 }
 0x103   : > { %v801_v41 = vadd.f32 %v800_v31, %v770_v16  ;;  %v869_v42 = vadd.f32 %v838_v32, %v837_v30  ;;  %v463_v43 = vadd.f32 %v1315_v49, %v462_v37  ;;  %v1116_v44 = vpop.f32.mrb[6].mxu0  ;;  %v1407_v45 = vadd.f32 %v1315_v49, %v526_v40  ;;  %v1132_v46 = vpop.f32.mrb[6].mxu1 }
 0x104   : > { %579 = vst [vmem:[%s1334_s20 + $0x30] sm:$0xff] %v471_v36  ;;  %v474_v48 = vadd.f32 %v1116_v44, %v1315_v49  ;;  %v465_v51 = vpop.f32.mrb[7].mxu0  ;;  %595 = vst [vmem:[%s1334_s20 + $0xb0] sm:$0xff] %v1403_v39  ;;  %v1418_v53 = vadd.f32 %v1132_v46, %v1315_v49  ;;  %v529_v54 = vpop.f32.mrb[7].mxu1  ;;  %v774_v61 = vmul.f32 %v1328_v57, %v471_v36  ;;  %v626_v57 = vadd.s32 152, %v1283_v25 }
 0x105   : > { %v870_v55 = vadd.f32 %v869_v42, %v839_v35  ;;  %577 = vst [vmem:[%s1334_s20 + $0x20] sm:$0xff] %v463_v43  ;;  %v772_v56 = vmul.f32 %v1337_v60, %v463_v43  ;;  %v802_v58 = vadd.f32 %v801_v41, %v771_v24  ;;  %v466_v59 = vadd.f32 %v1315_v49, %v465_v51 }
 0x106   : > { %593 = vst [vmem:[%s1334_s20 + $0xa0] sm:$0xff] %v1407_v45  ;;  %580 = vst [vmem:[%s1334_s20 + $0x38] sm:$0xff] %v474_v48  ;;  %v775_v3 = vmul.f32 %v1042_v17, %v474_v48  ;;  %v1436_v6 = vadd.f32 %v1315_v49, %v529_v54  ;;  %v843_v14 = vmul.f32 %v774_v61, %v774_v61  ;;  %v1050_v51 = vsel %vm687_vm14, 1.0, %v1198_v50 }
 0x107   : > { %596 = vst [vmem:[%s1334_s20 + $0xb8] sm:$0xff] %v1418_v53  ;;  %v803_v63 = vadd.f32 %v802_v58, %v772_v56  ;;  %v841_v0 = vmul.f32 %v772_v56, %v772_v56  ;;  %v871_v2 = vadd.f32 %v870_v55, %v840_v47  ;;  %578 = vst [vmem:[%s1334_s20 + $0x28] sm:$0xff] %v466_v59  ;;  %v1048_v54 = vsel %vm685_vm15, 1.0, %v1198_v50 }
 0x108   : > { %v773_v60 = vmul.f32 %v1040_v18, %v466_v59  ;;  %v1441_v17 = vadd.s32 %v1287_v27, %v625_v62  ;;  %594 = vst [vmem:[%s1334_s20 + $0xa8] sm:$0xff] %v1436_v6  ;;  %v844_v35 = vmul.f32 %v775_v3, %v775_v3  ;;  %v656_v40 = vadd.s32 %v1287_v27, %v623_v4 }
 0x109   : > { %v872_v7 = vadd.f32 %v871_v2, %v841_v0  ;;  %v1119_v10 = vpop.f32.mrb[8].mxu0  ;;  %v1135_v13 = vpop.f32.mrb[8].mxu1  ;;  %v1456_v41 = vadd.s32 %v1287_v27, %v626_v57  ;;  %v1474_v55 = vadd.s32 %v1287_v27, %v624_v12 }
 0x10a   : > { %v804_v8 = vadd.f32 %v803_v63, %v773_v60  ;;  %v842_v9 = vmul.f32 %v773_v60, %v773_v60  ;;  %v487_v16 = vadd.f32 %v1119_v10, %v1315_v49  ;;  %v478_v18 = vpop.f32.mrb[9].mxu0  ;;  %v1446_v19 = vadd.f32 %v1135_v13, %v1315_v49  ;;  %v542_v20 = vpop.f32.mrb[9].mxu1 }
 0x10b   : > { %v479_v31 = vadd.f32 %v1315_v49, %v478_v18  ;;  %v1120_v32 = vpop.f32.mrb[10].mxu0  ;;  %v1450_v33 = vadd.f32 %v1315_v49, %v542_v20  ;;  %v1136_v34 = vpop.f32.mrb[10].mxu1  ;;  %vm688_vm0 = vcmp.lt.s32.totalorder %v656_v40, 512  ;;  %vm690_vm1 = vcmp.lt.s32.totalorder %v1441_v17, 512 }
 0x10c   : > { %v805_v24 = vadd.f32 %v804_v8, %v774_v61  ;;  %v873_v30 = vadd.f32 %v872_v7, %v842_v9  ;;  %583 = vst [vmem:[%s1334_s20 + $0x50] sm:$0xff] %v487_v16  ;;  %v490_v36 = vadd.f32 %v1120_v32, %v1315_v49  ;;  %v481_v37 = vpop.f32.mrb[11].mxu0  ;;  %599 = vst [vmem:[%s1334_s20 + $0xd0] sm:$0xff] %v1446_v19  ;;  %v545_v42 = vpop.f32.mrb[11].mxu1  ;;  %vm691_vm2 = vcmp.lt.s32.totalorder %v1456_v41, 512 }
 0x10d   : > { %581 = vst [vmem:[%s1334_s20 + $0x40] sm:$0xff] %v479_v31  ;;  %v776_v44 = vmul.f32 %v1379_v22, %v479_v31  ;;  %v482_v47 = vadd.f32 %v1315_v49, %v481_v37  ;;  %597 = vst [vmem:[%s1334_s20 + $0xc0] sm:$0xff] %v1450_v33  ;;  %v778_v48 = vmul.f32 %v1375_v21, %v487_v16  ;;  %v1051_v20 = vsel %vm688_vm0, 1.0, %v1198_v50 }
 0x10e   : > { %v874_v43 = vadd.f32 %v873_v30, %v843_v14  ;;  %v806_v46 = vadd.f32 %v805_v24, %v775_v3  ;;  %584 = vst [vmem:[%s1334_s20 + $0x58] sm:$0xff] %v490_v36  ;;  %v779_v21 = vmul.f32 %v1383_v23, %v490_v36  ;;  %v1480_v29 = vadd.f32 %v1136_v34, %v1315_v49 }
 0x10f   : > { %v845_v56 = vmul.f32 %v776_v44, %v776_v44  ;;  %582 = vst [vmem:[%s1334_s20 + $0x48] sm:$0xff] %v482_v47  ;;  %v777_v59 = vmul.f32 %v1389_v26, %v482_v47  ;;  %v1483_v38 = vadd.f32 %v1315_v49, %v545_v42  ;;  %v847_v2 = vmul.f32 %v778_v48, %v778_v48 }
 0x110   : > { %v807_v22 = vadd.f32 %v806_v46, %v776_v44  ;;  %v875_v58 = vadd.f32 %v874_v43, %v844_v35  ;;  %v627_v3 = vadd.s32 160, %v1283_v25  ;;  %600 = vst [vmem:[%s1334_s20 + $0xd8] sm:$0xff] %v1480_v29  ;;  %v848_v14 = vmul.f32 %v779_v21, %v779_v21 }
 0x111   : > { %v846_v63 = vmul.f32 %v777_v59, %v777_v59  ;;  %v1123_v0 = vpop.f32.mrb[12].mxu0  ;;  %v1139_v26 = vpop.f32.mrb[12].mxu1  ;;  %598 = vst [vmem:[%s1334_s20 + $0xc8] sm:$0xff] %v1483_v38  ;;  %vm689_vm3 = vcmp.lt.s32.totalorder %v1474_v55, 512  ;;  %v629_v36 = vadd.s32 176, %v1283_v25  ;;  %v628_v40 = vadd.s32 168, %v1283_v25 }
 0x112   : > { %v876_v61 = vadd.f32 %v875_v58, %v845_v56  ;;  %v808_v62 = vadd.f32 %v807_v22, %v777_v59  ;;  %v503_v23 = vadd.f32 %v1123_v0, %v1315_v49  ;;  %v494_v60 = vpop.f32.mrb[13].mxu0  ;;  %v1494_v4 = vadd.f32 %v1139_v26, %v1315_v49  ;;  %v558_v57 = vpop.f32.mrb[13].mxu1 }
 0x113   : > { %v495_v9 = vadd.f32 %v1315_v49, %v494_v60  ;;  %v1124_v10 = vpop.f32.mrb[14].mxu0  ;;  %v1498_v12 = vadd.f32 %v1315_v49, %v558_v57  ;;  %v1140_v13 = vpop.f32.mrb[14].mxu1  ;;  %v660_v37 = vadd.s32 %v1287_v27, %v627_v3  ;;  %v784_v47 = vmul.f32 %v1051_v20, %v1346_v5 }
 0x114   : > { %v809_v7 = vadd.f32 %v808_v62, %v778_v48  ;;  %v877_v8 = vadd.f32 %v876_v61, %v846_v63  ;;  %587 = vst [vmem:[%s1334_s20 + $0x70] sm:$0xff] %v503_v23  ;;  %v506_v16 = vadd.f32 %v1124_v10, %v1315_v49  ;;  %v497_v18 = vpop.f32.mrb[15].mxu0  ;;  %603 = vst [vmem:[%s1334_s20 + $0xf0] sm:$0xff] %v1494_v4  ;;  %v561_v24 = vpop.f32.mrb[15].mxu1  ;;  %v630_v48 = vadd.s32 184, %v1283_v25 }
 0x115   : > { %585 = vst [vmem:[%s1334_s20 + $0x60] sm:$0xff] %v495_v9  ;;  %v780_v31 = vmul.f32 %v1413_v52, %v495_v9  ;;  %v498_v34 = vadd.f32 %v1315_v49, %v497_v18  ;;  %601 = vst [vmem:[%s1334_s20 + $0xe0] sm:$0xff] %v1498_v12  ;;  %v782_v35 = vmul.f32 %v1393_v28, %v503_v23  ;;  %vm692_vm4 = vcmp.lt.s32.totalorder %v660_v37, 512 }
 0x116   : > { %v878_v30 = vadd.f32 %v877_v8, %v847_v2  ;;  %v810_v32 = vadd.f32 %v809_v7, %v779_v21  ;;  %588 = vst [vmem:[%s1334_s20 + $0x78] sm:$0xff] %v506_v16  ;;  %v783_v46 = vmul.f32 %v1050_v51, %v506_v16  ;;  %v1521_v28 = vadd.f32 %v1140_v13, %v1315_v49 }
 0x117   : > { %v849_v43 = vmul.f32 %v780_v31, %v780_v31  ;;  %586 = vst [vmem:[%s1334_s20 + $0x68] sm:$0xff] %v498_v34  ;;  %v781_v52 = vmul.f32 %v1048_v54, %v498_v34  ;;  %v1524_v59 = vadd.f32 %v1315_v49, %v561_v24  ;;  %v1052_v21 = vsel %vm689_vm3, 1.0, %v1198_v50 }
 0x118   : > { %v811_v42 = vadd.f32 %v810_v32, %v780_v31  ;;  %v879_v44 = vadd.f32 %v878_v30, %v848_v14  ;;  %v662_v51 = vadd.s32 %v1287_v27, %v629_v36  ;;  %v661_v5 = vadd.s32 %v1287_v27, %v628_v40  ;;  %604 = vst [vmem:[%s1334_s20 + $0xf8] sm:$0xff] %v1521_v28 }
 0x119   : > { %v850_v58 = vmul.f32 %v781_v52, %v781_v52  ;;  %v631_v54 = vadd.s32 192, %v1283_v25  ;;  %v851_v61 = vmul.f32 %v782_v35, %v782_v35  ;;  %602 = vst [vmem:[%s1334_s20 + $0xe8] sm:$0xff] %v1524_v59  ;;  %v1053_v49 = vsel %vm690_vm1, 1.0, %v1198_v50 }
 0x11a   : > { %v880_v22 = vadd.f32 %v879_v44, %v849_v43  ;;  %v812_v56 = vadd.f32 %v811_v42, %v781_v52  ;;  %v853_v55 = vmul.f32 %v784_v47, %v784_v47  ;;  %v1054_v0 = vsel %vm691_vm2, 1.0, %v1198_v50 }
 0x11b   : > { %v663_v26 = vadd.s32 %v1287_v27, %v630_v48  ;;  %v852_v2 = vmul.f32 %v783_v46, %v783_v46  ;;  %v785_v3 = vmul.f32 %v1052_v21, %v1362_v15  ;;  %vm694_vm5 = vcmp.lt.s32.totalorder %v662_v51, 512 }
 0x11c   : > { %v813_v62 = vadd.f32 %v812_v56, %v782_v35  ;;  %v881_v63 = vadd.f32 %v880_v22, %v850_v58  ;;  %v1055_v57 = vsel %vm692_vm4, 1.0, %v1198_v50  ;;  %v664_v7 = vadd.s32 %v1287_v27, %v631_v54 }
 0x11d   : > { %v632_v17 = vadd.s32 200, %v1283_v25  ;;  %v786_v8 = vmul.f32 %v1053_v49, %v1342_v1  ;;  %vm693_vm6 = vcmp.lt.s32.totalorder %v661_v5, 512  ;;  %v787_v41 = vmul.f32 %v1054_v0, %v1355_v11 }
 0x11e   : > { %v882_v23 = vadd.f32 %v881_v63, %v851_v61  ;;  %v814_v60 = vadd.f32 %v813_v62, %v783_v46  ;;  %vm695_vm7 = vcmp.lt.s32.totalorder %v663_v26, 512  ;;  %v633_v13 = vadd.s32 208, %v1283_v25 }
 0x11f   : > { %v634_v14 = vadd.s32 216, %v1283_v25  ;;  %v854_v18 = vmul.f32 %v785_v3, %v785_v3  ;;  %v788_v20 = vmul.f32 %v1055_v57, %v1407_v45  ;;  %v1057_v24 = vsel %vm694_vm5, 1.0, %v1198_v50 }
 0x120   : > { %v815_v9 = vadd.f32 %v814_v60, %v784_v47  ;;  %v883_v10 = vadd.f32 %v882_v23, %v852_v2  ;;  %v1056_v1 = vsel %vm693_vm6, 1.0, %v1198_v50  ;;  %vm696_vm8 = vcmp.lt.s32.totalorder %v664_v7, 512 }
 0x121   : > { %v665_v30 = vadd.s32 %v1287_v27, %v632_v17  ;;  %v855_v31 = vmul.f32 %v786_v8, %v786_v8  ;;  %v635_v34 = vadd.s32 224, %v1283_v25  ;;  %v856_v35 = vmul.f32 %v787_v41, %v787_v41 }
 0x122   : > { %v884_v15 = vadd.f32 %v883_v10, %v853_v55  ;;  %v816_v16 = vadd.f32 %v815_v9, %v785_v3  ;;  %v1058_v36 = vsel %vm695_vm7, 1.0, %v1198_v50  ;;  %v666_v37 = vadd.s32 %v1287_v27, %v633_v13 }
 0x123   : > { %v667_v45 = vadd.s32 %v1287_v27, %v634_v14  ;;  %v857_v43 = vmul.f32 %v788_v20, %v788_v20  ;;  %v789_v44 = vmul.f32 %v1056_v1, %v1436_v6  ;;  %v1059_v52 = vsel %vm696_vm8, 1.0, %v1198_v50 }
 0x124   : > { %v817_v11 = vadd.f32 %v816_v16, %v786_v8  ;;  %v885_v32 = vadd.f32 %v884_v15, %v854_v18  ;;  %vm697_vm9 = vcmp.lt.s32.totalorder %v665_v30, 512  ;;  %v636_v46 = vadd.s32 232, %v1283_v25 }
 0x125   : > { %v790_v47 = vmul.f32 %v1057_v24, %v1403_v39  ;;  %v668_v56 = vadd.s32 %v1287_v27, %v635_v34  ;;  %v791_v58 = vmul.f32 %v1058_v36, %v1418_v53  ;;  %vm698_vm10 = vcmp.lt.s32.totalorder %v666_v37, 512 }
 0x126   : > { %v886_v40 = vadd.f32 %v885_v32, %v855_v31  ;;  %v818_v42 = vadd.f32 %v817_v11, %v787_v41  ;;  %vm699_vm11 = vcmp.lt.s32.totalorder %v667_v45, 512  ;;  %v637_v21 = vadd.s32 240, %v1283_v25 }
 0x127   : > { %v858_v6 = vmul.f32 %v789_v44, %v789_v44  ;;  %v792_v54 = vmul.f32 %v1059_v52, %v1450_v33  ;;  %v1060_v61 = vsel %vm697_vm9, 1.0, %v1198_v50  ;;  %v638_v62 = vadd.s32 248, %v1283_v25 }
 0x128   : > { %v819_v48 = vadd.f32 %v818_v42, %v788_v20  ;;  %v887_v22 = vadd.f32 %v886_v40, %v856_v35  ;;  %v669_v39 = vadd.s32 %v1287_v27, %v636_v46  ;;  %v859_v63 = vmul.f32 %v790_v47, %v790_v47 }
 0x129   : > { %vm700_vm12 = vcmp.lt.s32.totalorder %v668_v56, 512  ;;  %v860_v53 = vmul.f32 %v791_v58, %v791_v58  ;;  %v1061_v0 = vsel %vm698_vm10, 1.0, %v1198_v50  ;;  %v1062_v26 = vsel %vm699_vm11, 1.0, %v1198_v50 }
 0x12a   : > { %v888_v51 = vadd.f32 %v887_v22, %v857_v43  ;;  %v820_v5 = vadd.f32 %v819_v48, %v789_v44  ;;  %v670_v2 = vadd.s32 %v1287_v27, %v637_v21  ;;  %v861_v33 = vmul.f32 %v792_v54, %v792_v54 }
 0x12b   : > { %v793_v3 = vmul.f32 %v1060_v61, %v1483_v38  ;;  %v1063_v57 = vsel %vm700_vm12, 1.0, %v1198_v50  ;;  %v671_v7 = vadd.s32 %v1287_v27, %v638_v62  ;;  %v794_v17 = vmul.f32 %v1061_v0, %v1446_v19 }
 0x12c   : > { %v821_v49 = vadd.f32 %v820_v5, %v790_v47  ;;  %v889_v55 = vadd.f32 %v888_v51, %v858_v6  ;;  %vm701_vm13 = vcmp.lt.s32.totalorder %v669_v39, 512  ;;  %v795_v10 = vmul.f32 %v1062_v26, %v1480_v29 }
 0x12d   : > { %vm702_vm14 = vcmp.lt.s32.totalorder %v670_v2, 512  ;;  %v862_v14 = vmul.f32 %v793_v3, %v793_v3  ;;  %v796_v15 = vmul.f32 %v1063_v57, %v1498_v12  ;;  %v1064_v16 = vsel %vm701_vm13, 1.0, %v1198_v50 }
 0x12e   : > { %v890_v23 = vadd.f32 %v889_v55, %v859_v63  ;;  %v822_v60 = vadd.f32 %v821_v49, %v791_v58  ;;  %v863_v38 = vmul.f32 %v794_v17, %v794_v17  ;;  %vm703_vm15 = vcmp.lt.s32.totalorder %v671_v7, 512 }
 0x12f   : > { %v864_v27 = vmul.f32 %v795_v10, %v795_v10  ;;  %v1065_v19 = vsel %vm702_vm14, 1.0, %v1198_v50  ;;  %v865_v30 = vmul.f32 %v796_v15, %v796_v15  ;;  %v797_v29 = vmul.f32 %v1064_v16, %v1524_v59 }
 0x130   : > { %v823_v8 = vadd.f32 %v822_v60, %v792_v54  ;;  %v891_v9 = vadd.f32 %v890_v23, %v860_v53  ;;  %v1066_v31 = vsel %vm703_vm15, 1.0, %v1198_v50  ;;  %v798_v11 = vmul.f32 %v1065_v19, %v1494_v4 }
 0x131   : > { %v799_v35 = vmul.f32 %v1066_v31, %v1521_v28  ;;  %v866_v37 = vmul.f32 %v797_v29, %v797_v29  ;;  %vm906_vm0 = vcmp.eq.s32.totalorder %v1283_v25, 0  ;;  %vm908_vm1 = vcmp.eq.s32.totalorder %v1283_v25, 1 }
 0x132   : > { %v892_v41 = vadd.f32 %v891_v9, %v861_v33  ;;  %v824_v13 = vadd.f32 %v823_v8, %v793_v3  ;;  %v867_v45 = vmul.f32 %v798_v11, %v798_v11 }
 0x133   : > { %v868_v43 = vmul.f32 %v799_v35, %v799_v35 }
 0x134   : > { %v825_v18 = vadd.f32 %v824_v13, %v794_v17  ;;  %v893_v20 = vadd.f32 %v892_v41, %v862_v14 }
 0x136   : > { %v894_v24 = vadd.f32 %v893_v20, %v863_v38  ;;  %v826_v1 = vadd.f32 %v825_v18, %v795_v10 }
 0x138   : > { %v827_v32 = vadd.f32 %v826_v1, %v796_v15  ;;  %v895_v12 = vadd.f32 %v894_v24, %v864_v27 }
 0x13a   : > { %v896_v34 = vadd.f32 %v895_v12, %v865_v30  ;;  %v828_v36 = vadd.f32 %v827_v32, %v797_v29 }
 0x13c   : > { %v829_v40 = vadd.f32 %v828_v36, %v798_v11  ;;  %v897_v42 = vadd.f32 %v896_v34, %v866_v37 }
 0x13e   : > { %v830_v44 = vadd.f32 %v829_v40, %v799_v35  ;;  %v898_v52 = vadd.f32 %v897_v42, %v867_v45 }
 0x140   : > { %v831_v59 = vrot.slane %v830_v44, 4  ;;  %v899_v46 = vadd.f32 %v898_v52, %v868_v43 }
 0x142   : > { %v832_v50 = vadd.f32 %v831_v59, %v830_v44  ;;  %v900_v47 = vrot.slane %v899_v46, 4 }
 0x144   : > { %v833_v4 = vrot.slane %v832_v50, 2  ;;  %v901_v48 = vadd.f32 %v900_v47, %v899_v46 }
 0x146   : > { %v834_v22 = vadd.f32 %v833_v4, %v832_v50  ;;  %v902_v56 = vrot.slane %v901_v48, 2 }
 0x148   : > { %v835_v28 = vrot.slane %v834_v22, 1  ;;  %v903_v58 = vadd.f32 %v902_v56, %v901_v48 }
 0x14a   : > { %v836_v21 = vadd.f32 %v835_v28, %v834_v22  ;;  %v904_v51 = vrot.slane %v903_v58, 1 }
 0x14c   : > { %v905_v5 = vadd.f32 %v904_v51, %v903_v58  ;;  %v907_v6 = vsel %vm906_vm0, %v836_v21, 0.0 }
 0x14e   : > { %v909_v54 = vsel %vm908_vm1, %v905_v5, 0.0 }
 0x14f   : > { %v910_v61 = vadd.f32 %v909_v54, %v907_v6 }
 0x151   : > { %911 = vst [vmem:[%s211_s24] sm:$0xff] %v910_v61 }
 0x152 PF: > { %s15_s15 = sadd.s32 1, %s1196_s15  }
 0x153   : > { %p12_p5 = scmp.ge.s32.totalorder %s15_s15, 4  }
 0x155   :  { %14 = sbr.rel (!%p12_p5) target bundleno = 1 (0x1), region = 74 }

// kernel: conv_residual_encoder_block.23
= control target key start
LH: loop header
LB: loop body
LE: loop exit
PB: predicated region body
PF: predicated region fallthrough
CT: control target
= control target key end

     0   :  { %s336_s9 = smov 0   ;;  %s356_s0 = inlined_call_operand.vmem [shape: f32[8,16], index: 0, kind: input, shape index: {}]   ;;  %s357_s1 = inlined_call_operand.vmem [shape: f32[2,16,64], index: 1, kind: input, shape index: {}]   ;;  %s358_s2 = inlined_call_operand.vmem [shape: f32[2,8,64], index: 2, kind: output, shape index: {}]  }
   0x1 LB: > { %s274_s10 = sadd.s32 4294967295, %s316_s9   ;;  %p278_p0 = scmp.ge.s32.totalorder %s316_s9, 1  ;;  %s316_s9 = sphi %s336_s9, %s12_s9  }
   0x2   : > { %p112_p1 = scmp.lt.s32.totalorder %s316_s9, 3 }
   0x4   : > { %p113_p2 = pnand %p278_p0, %p112_p1 }
   0x5   : > { %p133_p3 = scmp.lt.s32.totalorder (!%p113_p2), %s274_s10, 1  ;;  %v318_v0 = vmov (!%p113_p2), 0.0|0.0   ;;  %vm319_vm0 = vmmov (!%p113_p2), 0   ;;  %v320_v1 = vmov (!%p113_p2), 0.0   ;;  %v142_v5 = vld [vmem:[%s356_s0] sm:$0xff] (!%p113_p2)  ;;  %vm145_vm1 = vcmask (!%p113_p2), 130048  }
   0x6   : > { %116 = sbr.rel (%p113_p2) target bundleno = 235 (0xeb), region = 28  ;;  %296 = vmatprep.subr.bf16.mxu0 (!%p113_p2), %v318_v0  ;;  %293 = vmatprep.mubr.msk.f32.mxu0 (!%p113_p2), %vm319_vm0, %v320_v1  ;;  %vm219_vm2 = vcmask (!%p113_p2), 523264  }
   0xd   : > { %s360_s10 = smov (!%p133_p3, %s274_s10), 1 }
   0xe   : > { %s285_s11 = sshll.u32 %s360_s10, 4  ;;  %s281_s17 = sshll.u32 %s360_s10, 3 }
   0xf   : > { %s137_s14 = scalar_lea.vmem %s357_s1, %s285_s11  ;;  %s141_s20 = scalar_lea.vmem %s358_s2, %s281_s17 }
  0x10   : > { %v143_v2 = vld [vmem:[%s137_s14] sm:$0xff]  ;;  %v144_v3 = vld [vmem:[%s137_s14 + $0x8] sm:$0xff] }
  0x11   : > { %v297_v4 = vpack.c.bf16 %v144_v3, %v143_v2 }
  0x13   : > { %298 = vmatpush3.bf16.msra.mxu0 %v297_v4 }
  0x16   : > { %294 = vmatmul.mubr.msk.f32.vlgmr.msra.gmra.mrb[0].mxu0 %vm145_vm1, %v142_v5 }
  0xe9   : > { %v215_v6 = vpop.f32.mrb[0].mxu0 }
  0xea   : > { %220 = vst.msk [vmem:[%s141_s20] sm:$0xff] %vm219_vm2, %v215_v6  ;;  %v295_v7 = vpop.f32.mrb[1].mxu0 }
  0xeb PF: > { %s12_s9 = sadd.s32 1, %s316_s9  }
  0xec   : > { %p9_p4 = scmp.ge.s32.totalorder %s12_s9, 4  }
  0xee   :  { %11 = sbr.rel (!%p9_p4) target bundleno = 1 (0x1), region = 58 }

// kernel: conv_residual_encoder_block.25
= control target key start
LH: loop header
LB: loop body
LE: loop exit
PB: predicated region body
PF: predicated region fallthrough
CT: control target
= control target key end

     0   :  { %v180_v7 = vmov 1966171168   ;;  %v33_v9 = vlaneseq  ;;  %s350_s1 = inlined_call_operand.vmem [shape: f32[8,128], index: 1, kind: input, shape index: {}]   ;;  %s351_s2 = inlined_call_operand.vmem [shape: f32[1,128], index: 2, kind: input, shape index: {}]   ;;  %s352_s0 = inlined_call_operand.vmem [shape: f32[128,128], index: 0, kind: input, shape index: {}]   ;;  %s353_s3 = inlined_call_operand.vmem [shape: f32[1,128], index: 3, kind: input, shape index: {}]   ;;  %s354_s4 = inlined_call_operand.vmem [shape: f32[128,128], index: 4, kind: output, shape index: {}]  }
   0x1   :  { %v17_v0 = vld [vmem:[%s350_s1] sm:$0xff]  ;;  %v31_v8 = vunpack.c.l.s4 %v180_v7  ;;  %v50_v22 = vld [vmem:[%s352_s0 + $0x8] sm:$0xff]  ;;  %v51_v23 = vld [vmem:[%s352_s0 + $0x10] sm:$0xff] }
   0x2   :  { %v20_v1 = vmul.f32 0.0078125, %v17_v0  ;;  %v34_v11 = vshrl.u32 %v33_v9, 7  ;;  %v18_v16 = vld [vmem:[%s351_s2] sm:$0x1]  ;;  %v52_v24 = vld [vmem:[%s352_s0 + $0x18] sm:$0xff]  ;;  %v54_v28 = vld [vmem:[%s352_s0 + $0x28] sm:$0xff] }
   0x3   :  { %v32_v10 = vunpack.c.0.s8 %v31_v8  ;;  %v19_v19 = vld [vmem:[%s353_s3] sm:$0x1]  ;;  %v55_v29 = vld [vmem:[%s352_s0 + $0x30] sm:$0xff]  ;;  %v56_v30 = vld [vmem:[%s352_s0 + $0x38] sm:$0xff] }
   0x4   :  { %v21_v2 = vmul.f32 %v20_v1, %v20_v1  ;;  %v68_v18 = vsub.s32 0, %v34_v11  ;;  %v49_v21 = vld [vmem:[%s352_s0] sm:$0xff]  ;;  %v58_v32 = vld [vmem:[%s352_s0 + $0x48] sm:$0xff]  ;;  %v59_v33 = vld [vmem:[%s352_s0 + $0x50] sm:$0xff] }
   0x5   :  { %v35_v12 = vsub.s32 %v32_v10, %v34_v11  ;;  %v53_v25 = vld [vmem:[%s352_s0 + $0x20] sm:$0xff]  ;;  %v60_v38 = vld [vmem:[%s352_s0 + $0x58] sm:$0xff]  ;;  %v62_v40 = vld [vmem:[%s352_s0 + $0x68] sm:$0xff] }
   0x6   :  { %v23_v3 = vrot.slane %v21_v2, 7  ;;  %v57_v31 = vld [vmem:[%s352_s0 + $0x40] sm:$0xff] }
   0x7   :  { %v61_v39 = vld [vmem:[%s352_s0 + $0x60] sm:$0xff] }
   0x8   :  { %v25_v4 = vsub.f32 %v20_v1, %v23_v3 }
   0xa   :  { %v26_v5 = vmax.f32 %v25_v4, 0.0 }
   0xc   :  { %v27_v6 = vadd.f32 1e-05, %v26_v5 }
   0xe   :  { %178 = vrsqrt.f32 %v27_v6 }
  0x18   :  { %v179_v13 = vpop.eup %178 }
  0x19   :  { %v36_v14 = vrot.slane %v179_v13, %v35_v12 }
  0x1b   :  { %v37_v15 = vcombine.high %v36_v14, %v36_v14 }
  0x1d   :  { %v44_v17 = vrot.slane %v37_v15, %v35_v12 }
  0x1f   :  { %v46_v20 = vmul.f32 %v44_v17, %v18_v16 }
  0x21   :  { %v47_v26 = vmul.f32 %v46_v20, %v20_v1  ;;  %v230_v27 = vrot.slane %v46_v20, %v68_v18  ;;  %v64_v20 = vld [vmem:[%s352_s0 + $0x78] sm:$0xff] }
  0x23   :  { %v48_v34 = vsub.f32 %v19_v19, %v47_v26  ;;  %v71_v35 = vmul.f32 %v230_v27, %v49_v21  ;;  %v72_v36 = vmul.f32 %v230_v27, %v50_v22  ;;  %v73_v37 = vmul.f32 %v230_v27, %v51_v23  ;;  %v63_v19 = vld [vmem:[%s352_s0 + $0x70] sm:$0xff] }
  0x24   :  { %v74_v41 = vmul.f32 %v230_v27, %v52_v24  ;;  %v75_v42 = vmul.f32 %v230_v27, %v53_v25  ;;  %v76_v43 = vmul.f32 %v230_v27, %v54_v28  ;;  %v77_v44 = vmul.f32 %v230_v27, %v55_v29 }
  0x25   :  { %v266_v45 = vrot.slane %v48_v34, %v68_v18  ;;  %v78_v46 = vmul.f32 %v230_v27, %v56_v30  ;;  %v79_v47 = vmul.f32 %v230_v27, %v57_v31  ;;  %v80_v48 = vmul.f32 %v230_v27, %v58_v32 }
  0x26   :  { %v81_v49 = vmul.f32 %v230_v27, %v59_v33  ;;  %v82_v50 = vmul.f32 %v230_v27, %v60_v38  ;;  %v83_v51 = vmul.f32 %v230_v27, %v61_v39  ;;  %v275_v52 = vmul.f32 %v230_v27, %v62_v40 }
  0x27   :  { %v93_v53 = vadd.f32 %v266_v45, %v71_v35  ;;  %v94_v54 = vadd.f32 %v266_v45, %v72_v36  ;;  %v95_v55 = vadd.f32 %v266_v45, %v73_v37  ;;  %v96_v56 = vadd.f32 %v266_v45, %v74_v41 }
  0x28   :  { %v97_v57 = vadd.f32 %v266_v45, %v75_v42  ;;  %v98_v58 = vadd.f32 %v266_v45, %v76_v43  ;;  %v99_v59 = vadd.f32 %v266_v45, %v77_v44  ;;  %v100_v60 = vadd.f32 %v266_v45, %v78_v46 }
  0x29   :  { %vm109_vm0 = vcmp.ge.f32.partialorder %v93_v53, 0.0  ;;  %v125_v61 = vmul.f32 0.1, %v93_v53  ;;  %vm110_vm1 = vcmp.ge.f32.partialorder %v94_v54, 0.0  ;;  %v126_v62 = vmul.f32 0.1, %v94_v54 }
  0x2a   :  { %vm111_vm2 = vcmp.ge.f32.partialorder %v95_v55, 0.0  ;;  %v127_v63 = vmul.f32 0.1, %v95_v55  ;;  %vm112_vm3 = vcmp.ge.f32.partialorder %v96_v56, 0.0  ;;  %v128_v0 = vmul.f32 0.1, %v96_v56 }
  0x2b   :  { %v141_v1 = vsel %vm109_vm0, %v93_v53, %v125_v61  ;;  %v142_v2 = vsel %vm110_vm1, %v94_v54, %v126_v62  ;;  %vm113_vm4 = vcmp.ge.f32.partialorder %v97_v57, 0.0  ;;  %v129_v3 = vmul.f32 0.1, %v97_v57 }
  0x2c   :  { %157 = vst [vmem:[%s354_s4] sm:$0xff] %v141_v1  ;;  %158 = vst [vmem:[%s354_s4 + $0x8] sm:$0xff] %v142_v2  ;;  %v143_v4 = vsel %vm111_vm2, %v95_v55, %v127_v63  ;;  %v144_v5 = vsel %vm112_vm3, %v96_v56, %v128_v0  ;;  %vm114_vm5 = vcmp.ge.f32.partialorder %v98_v58, 0.0  ;;  %v130_v6 = vmul.f32 0.1, %v98_v58 }
  0x2d   :  { %159 = vst [vmem:[%s354_s4 + $0x10] sm:$0xff] %v143_v4  ;;  %160 = vst [vmem:[%s354_s4 + $0x18] sm:$0xff] %v144_v5  ;;  %v145_v7 = vsel %vm113_vm4, %v97_v57, %v129_v3  ;;  %vm115_vm6 = vcmp.ge.f32.partialorder %v99_v59, 0.0  ;;  %v131_v8 = vmul.f32 0.1, %v99_v59  ;;  %vm116_vm7 = vcmp.ge.f32.partialorder %v100_v60, 0.0 }
  0x2e   :  { %161 = vst [vmem:[%s354_s4 + $0x20] sm:$0xff] %v145_v7  ;;  %v146_v9 = vsel %vm114_vm5, %v98_v58, %v130_v6  ;;  %v132_v10 = vmul.f32 0.1, %v100_v60  ;;  %v101_v11 = vadd.f32 %v266_v45, %v79_v47  ;;  %v102_v12 = vadd.f32 %v266_v45, %v80_v48 }
  0x2f   :  { %162 = vst [vmem:[%s354_s4 + $0x28] sm:$0xff] %v146_v9  ;;  %v147_v13 = vsel %vm115_vm6, %v99_v59, %v131_v8  ;;  %v103_v14 = vadd.f32 %v266_v45, %v81_v49  ;;  %v104_v15 = vadd.f32 %v266_v45, %v82_v50  ;;  %v105_v16 = vadd.f32 %v266_v45, %v83_v51 }
  0x30   :  { %163 = vst [vmem:[%s354_s4 + $0x30] sm:$0xff] %v147_v13  ;;  %v148_v17 = vsel %vm116_vm7, %v100_v60, %v132_v10  ;;  %vm117_vm8 = vcmp.ge.f32.partialorder %v101_v11, 0.0  ;;  %v133_v18 = vmul.f32 0.1, %v101_v11  ;;  %vm118_vm9 = vcmp.ge.f32.partialorder %v102_v12, 0.0 }
  0x31   :  { %164 = vst [vmem:[%s354_s4 + $0x38] sm:$0xff] %v148_v17  ;;  %v134_v21 = vmul.f32 0.1, %v102_v12  ;;  %vm119_vm10 = vcmp.ge.f32.partialorder %v103_v14, 0.0  ;;  %v135_v22 = vmul.f32 0.1, %v103_v14  ;;  %v106_v29 = vadd.f32 %v266_v45, %v275_v52 }
  0x32   :  { %vm120_vm11 = vcmp.ge.f32.partialorder %v104_v15, 0.0  ;;  %v149_v23 = vsel %vm117_vm8, %v101_v11, %v133_v18  ;;  %v136_v24 = vmul.f32 0.1, %v104_v15  ;;  %vm121_vm12 = vcmp.ge.f32.partialorder %v105_v16, 0.0 }
  0x33   :  { %v137_v25 = vmul.f32 0.1, %v105_v16  ;;  %165 = vst [vmem:[%s354_s4 + $0x40] sm:$0xff] %v149_v23  ;;  %v150_v26 = vsel %vm118_vm9, %v102_v12, %v134_v21  ;;  %v151_v28 = vsel %vm119_vm10, %v103_v14, %v135_v22  ;;  %v85_v30 = vmul.f32 %v230_v27, %v63_v19 }
  0x34   :  { %166 = vst [vmem:[%s354_s4 + $0x48] sm:$0xff] %v150_v26  ;;  %167 = vst [vmem:[%s354_s4 + $0x50] sm:$0xff] %v151_v28  ;;  %v152_v31 = vsel %vm120_vm11, %v104_v15, %v136_v24  ;;  %v86_v33 = vmul.f32 %v230_v27, %v64_v20  ;;  %vm122_vm13 = vcmp.ge.f32.partialorder %v106_v29, 0.0  ;;  %v138_v34 = vmul.f32 0.1, %v106_v29 }
  0x35   :  { %v153_v32 = vsel %vm121_vm12, %v105_v16, %v137_v25  ;;  %168 = vst [vmem:[%s354_s4 + $0x58] sm:$0xff] %v152_v31  ;;  %v107_v35 = vadd.f32 %v266_v45, %v85_v30 }
  0x36   :  { %169 = vst [vmem:[%s354_s4 + $0x60] sm:$0xff] %v153_v32  ;;  %v108_v36 = vadd.f32 %v266_v45, %v86_v33  ;;  %v154_v37 = vsel %vm122_vm13, %v106_v29, %v138_v34 }
  0x37   :  { %vm123_vm14 = vcmp.ge.f32.partialorder %v107_v35, 0.0  ;;  %v139_v38 = vmul.f32 0.1, %v107_v35  ;;  %170 = vst [vmem:[%s354_s4 + $0x68] sm:$0xff] %v154_v37 }
  0x38   :  { %vm124_vm15 = vcmp.ge.f32.partialorder %v108_v36, 0.0  ;;  %v140_v27 = vmul.f32 0.1, %v108_v36 }
  0x39   :  { %v155_v39 = vsel %vm123_vm14, %v107_v35, %v139_v38 }
  0x3a   :  { %171 = vst [vmem:[%s354_s4 + $0x70] sm:$0xff] %v155_v39  ;;  %v156_v40 = vsel %vm124_vm15, %v108_v36, %v140_v27 }
  0x3b   :  { %172 = vst [vmem:[%s354_s4 + $0x78] sm:$0xff] %v156_v40 }

// kernel: conv_residual_encoder_block.24
= control target key start
LH: loop header
LB: loop body
LE: loop exit
PB: predicated region body
PF: predicated region fallthrough
CT: control target
= control target key end

     0   :  { %s672_s1 = inlined_call_operand.vmem [shape: bf16[128,128], index: 1, kind: input, shape index: {}]   ;;  %s673_s0 = inlined_call_operand.vmem [shape: bf16[128,128], index: 0, kind: input, shape index: {}]   ;;  %s674_s2 = inlined_call_operand.vmem [shape: f32[1,128], index: 2, kind: input, shape index: {}]   ;;  %s675_s3 = inlined_call_operand.vmem [shape: f32[128,128], index: 3, kind: output, shape index: {0}]   ;;  %s676_s4 = inlined_call_operand.vmem [shape: f32[8,128], index: 4, kind: output, shape index: {1}]  }
   0x1   :  { %v517_v0 = vld [vmem:[%s672_s1] sm:$0xff]   ;;  %v518_v1 = vld [vmem:[%s672_s1 + $0x8] sm:$0xff]   ;;  %v519_v2 = vld [vmem:[%s672_s1 + $0x10] sm:$0xff]  }
   0x2   :  { %469 = vmatprep.subr.bf16.mxu0 %v517_v0  ;;  %501 = vmatprep.subr.bf16.mxu1 %v517_v0  ;;  %v520_v3 = vld [vmem:[%s672_s1 + $0x18] sm:$0xff]   ;;  %v525_v4 = vld [vmem:[%s673_s0] sm:$0xff]   ;;  %v522_v7 = vld [vmem:[%s672_s1 + $0x28] sm:$0xff]  }
   0x3   :  { %470 = vmatpush3.bf16.msra.mxu0 %v517_v0  ;;  %509 = vmatpush3.bf16.msra.mxu1 %v517_v0  ;;  %v521_v5 = vld [vmem:[%s672_s1 + $0x20] sm:$0xff]   ;;  %v523_v8 = vld [vmem:[%s672_s1 + $0x30] sm:$0xff]   ;;  %v524_v9 = vld [vmem:[%s672_s1 + $0x38] sm:$0xff]  }
   0x4   :  { %471 = vmatprep.subr.bf16.mxu0 %v518_v1  ;;  %502 = vmatprep.subr.bf16.mxu1 %v518_v1  ;;  %v529_v6 = vld [vmem:[%s673_s0 + $0x20] sm:$0xff]   ;;  %v526_v10 = vld [vmem:[%s673_s0 + $0x8] sm:$0xff]   ;;  %v527_v12 = vld [vmem:[%s673_s0 + $0x10] sm:$0xff]  }
   0x5   :  { %485 = vmatprep.mubr.bf16.mxu0 %v525_v4  ;;  %493 = vmatprep.mubr.bf16.mxu1 %v529_v6  ;;  %v530_v11 = vld [vmem:[%s673_s0 + $0x28] sm:$0xff]   ;;  %v531_v13 = vld [vmem:[%s673_s0 + $0x30] sm:$0xff]   ;;  %v528_v14 = vld [vmem:[%s673_s0 + $0x18] sm:$0xff]  }
   0x6   :  { %v532_v15 = vld [vmem:[%s673_s0 + $0x38] sm:$0xff]   ;;  %v436_v16 = vld [vmem:[%s674_s2] ss:$0 sm:$0xff] }
   0x7   :  { %472 = vmatpush3.bf16.msra.mxu0 %v518_v1  ;;  %510 = vmatpush3.bf16.msra.mxu1 %v518_v1 }
   0x8   :  { %473 = vmatprep.subr.bf16.mxu0 %v519_v2  ;;  %503 = vmatprep.subr.bf16.mxu1 %v519_v2 }
   0xb   :  { %474 = vmatpush3.bf16.msra.mxu0 %v519_v2  ;;  %511 = vmatpush3.bf16.msra.mxu1 %v519_v2 }
   0xc   :  { %475 = vmatprep.subr.bf16.mxu0 %v520_v3  ;;  %504 = vmatprep.subr.bf16.mxu1 %v520_v3 }
   0xf   :  { %476 = vmatpush3.bf16.msra.mxu0 %v520_v3  ;;  %512 = vmatpush3.bf16.msra.mxu1 %v520_v3 }
  0x10   :  { %477 = vmatprep.subr.bf16.mxu0 %v521_v5  ;;  %505 = vmatprep.subr.bf16.mxu1 %v521_v5 }
  0x13   :  { %478 = vmatpush3.bf16.msra.mxu0 %v521_v5  ;;  %513 = vmatpush3.bf16.msra.mxu1 %v521_v5 }
  0x14   :  { %479 = vmatprep.subr.bf16.mxu0 %v522_v7  ;;  %506 = vmatprep.subr.bf16.mxu1 %v522_v7 }
  0x17   :  { %480 = vmatpush3.bf16.msra.mxu0 %v522_v7  ;;  %514 = vmatpush3.bf16.msra.mxu1 %v522_v7 }
  0x18   :  { %481 = vmatprep.subr.bf16.mxu0 %v523_v8  ;;  %507 = vmatprep.subr.bf16.mxu1 %v523_v8 }
  0x1b   :  { %482 = vmatpush3.bf16.msra.mxu0 %v523_v8  ;;  %515 = vmatpush3.bf16.msra.mxu1 %v523_v8 }
  0x1c   :  { %483 = vmatprep.subr.bf16.mxu0 %v524_v9  ;;  %508 = vmatprep.subr.bf16.mxu1 %v524_v9 }
  0x1f   :  { %484 = vmatpush3.bf16.msra.mxu0 %v524_v9  ;;  %516 = vmatpush3.bf16.msra.mxu1 %v524_v9 }
  0x22   :  { %486 = vmatmul.mubr.bf16.vlgmr.msra.gmra.mrb[0].mxu0 %v526_v10  ;;  %494 = vmatmul.mubr.bf16.vlgmr.msra.gmra.mrb[0].mxu1 %v530_v11 }
  0x23   :  { %489 = vmatprep.mubr.bf16.mxu0 %v527_v12  ;;  %497 = vmatprep.mubr.bf16.mxu1 %v531_v13 }
  0x2a   :  { %490 = vmatmul.mubr.bf16.gmra.mrb[4].mxu0 %v528_v14  ;;  %498 = vmatmul.mubr.bf16.gmra.mrb[4].mxu1 %v532_v15 }
  0xf5   :  { %v487_v17 = vpop.f32.mrb[0].mxu0  ;;  %v495_v18 = vpop.f32.mrb[0].mxu1 }
  0xf6   :  { %v195_v19 = vadd.f32 %v487_v17, %v436_v16  ;;  %v186_v20 = vpop.f32.mrb[1].mxu0  ;;  %v609_v21 = vadd.f32 %v495_v18, %v436_v16  ;;  %v218_v22 = vpop.f32.mrb[1].mxu1 }
  0xf7   :  { %v187_v23 = vadd.f32 %v436_v16, %v186_v20  ;;  %v488_v24 = vpop.f32.mrb[2].mxu0  ;;  %v219_v25 = vadd.f32 %v436_v16, %v218_v22  ;;  %v496_v26 = vpop.f32.mrb[2].mxu1 }
  0xf8   :  { %251 = vst [vmem:[%s675_s3 + $0x10] sm:$0xff] %v195_v19  ;;  %v198_v27 = vadd.f32 %v488_v24, %v436_v16  ;;  %v189_v28 = vpop.f32.mrb[3].mxu0  ;;  %259 = vst [vmem:[%s675_s3 + $0x50] sm:$0xff] %v609_v21  ;;  %v618_v29 = vadd.f32 %v496_v26, %v436_v16  ;;  %v221_v30 = vpop.f32.mrb[3].mxu1  ;;  %v387_v36 = vmul.f32 %v195_v19, %v195_v19 }
  0xf9   :  { %249 = vst [vmem:[%s675_s3] sm:$0xff] %v187_v23  ;;  %v190_v31 = vadd.f32 %v436_v16, %v189_v28  ;;  %257 = vst [vmem:[%s675_s3 + $0x40] sm:$0xff] %v219_v25  ;;  %v222_v32 = vadd.f32 %v436_v16, %v221_v30  ;;  %v385_v33 = vmul.f32 %v187_v23, %v187_v23 }
  0xfa   :  { %252 = vst [vmem:[%s675_s3 + $0x18] sm:$0xff] %v198_v27  ;;  %260 = vst [vmem:[%s675_s3 + $0x58] sm:$0xff] %v618_v29  ;;  %v388_v41 = vmul.f32 %v198_v27, %v198_v27  ;;  %v393_v6 = vmul.f32 %v219_v25, %v219_v25  ;;  %v395_v12 = vmul.f32 %v609_v21, %v609_v21 }
  0xfb   :  { %250 = vst [vmem:[%s675_s3 + $0x8] sm:$0xff] %v190_v31  ;;  %v364_v34 = vadd.f32 %v190_v31, %v187_v23  ;;  %v386_v35 = vmul.f32 %v190_v31, %v190_v31  ;;  %258 = vst [vmem:[%s675_s3 + $0x48] sm:$0xff] %v222_v32  ;;  %v394_v11 = vmul.f32 %v222_v32, %v222_v32 }
  0xfc   :  { %v396_v15 = vmul.f32 %v618_v29, %v618_v29 }
  0xfd   :  { %v365_v37 = vadd.f32 %v364_v34, %v195_v19  ;;  %v401_v38 = vadd.f32 %v386_v35, %v385_v33  ;;  %v491_v39 = vpop.f32.mrb[4].mxu0  ;;  %v499_v40 = vpop.f32.mrb[4].mxu1  ;;  %v266_v35 = vlaneseq }
  0xfe   :  { %v211_v42 = vadd.f32 %v491_v39, %v436_v16  ;;  %v202_v43 = vpop.f32.mrb[5].mxu0  ;;  %v243_v44 = vadd.f32 %v499_v40, %v436_v16  ;;  %v234_v45 = vpop.f32.mrb[5].mxu1 }
  0xff   :  { %v402_v46 = vadd.f32 %v401_v38, %v387_v36  ;;  %v203_v47 = vadd.f32 %v436_v16, %v202_v43  ;;  %v366_v48 = vadd.f32 %v365_v37, %v198_v27  ;;  %v492_v49 = vpop.f32.mrb[6].mxu0  ;;  %v235_v50 = vadd.f32 %v436_v16, %v234_v45  ;;  %v500_v51 = vpop.f32.mrb[6].mxu1 }
 0x100   :  { %255 = vst [vmem:[%s675_s3 + $0x30] sm:$0xff] %v211_v42  ;;  %v214_v52 = vadd.f32 %v492_v49, %v436_v16  ;;  %v205_v53 = vpop.f32.mrb[7].mxu0  ;;  %263 = vst [vmem:[%s675_s3 + $0x70] sm:$0xff] %v243_v44  ;;  %v246_v54 = vadd.f32 %v500_v51, %v436_v16  ;;  %v237_v55 = vpop.f32.mrb[7].mxu1  ;;  %v391_v0 = vmul.f32 %v211_v42, %v211_v42  ;;  %v267_v39 = vshrl.u32 %v266_v35, 7 }
 0x101   :  { %253 = vst [vmem:[%s675_s3 + $0x20] sm:$0xff] %v203_v47  ;;  %v367_v56 = vadd.f32 %v366_v48, %v203_v47  ;;  %v389_v57 = vmul.f32 %v203_v47, %v203_v47  ;;  %v403_v58 = vadd.f32 %v402_v46, %v388_v41  ;;  %v206_v59 = vadd.f32 %v436_v16, %v205_v53 }
 0x102   :  { %261 = vst [vmem:[%s675_s3 + $0x60] sm:$0xff] %v235_v50  ;;  %256 = vst [vmem:[%s675_s3 + $0x38] sm:$0xff] %v214_v52  ;;  %v238_v60 = vadd.f32 %v436_v16, %v237_v55  ;;  %v392_v3 = vmul.f32 %v214_v52, %v214_v52  ;;  %v397_v18 = vmul.f32 %v235_v50, %v235_v50  ;;  %vm422_vm0 = vcmp.eq.s32.totalorder %v267_v39, 0 }
 0x103   :  { %264 = vst [vmem:[%s675_s3 + $0x78] sm:$0xff] %v246_v54  ;;  %v404_v61 = vadd.f32 %v403_v58, %v389_v57  ;;  %254 = vst [vmem:[%s675_s3 + $0x28] sm:$0xff] %v206_v59  ;;  %v368_v62 = vadd.f32 %v367_v56, %v206_v59  ;;  %v390_v63 = vmul.f32 %v206_v59, %v206_v59  ;;  %vm424_vm1 = vcmp.eq.s32.totalorder %v267_v39, 1 }
 0x104   :  { %262 = vst [vmem:[%s675_s3 + $0x68] sm:$0xff] %v238_v60  ;;  %v398_v24 = vmul.f32 %v238_v60, %v238_v60  ;;  %v400_v28 = vmul.f32 %v246_v54, %v246_v54 }
 0x105   :  { %v369_v1 = vadd.f32 %v368_v62, %v211_v42  ;;  %v405_v2 = vadd.f32 %v404_v61, %v390_v63 }
 0x107   :  { %v406_v4 = vadd.f32 %v405_v2, %v391_v0  ;;  %v370_v5 = vadd.f32 %v369_v1, %v214_v52 }
 0x109   :  { %v371_v7 = vadd.f32 %v370_v5, %v219_v25  ;;  %v407_v8 = vadd.f32 %v406_v4, %v392_v3  ;;  %v399_v25 = vmul.f32 %v243_v44, %v243_v44 }
 0x10b   :  { %v408_v9 = vadd.f32 %v407_v8, %v393_v6  ;;  %v372_v10 = vadd.f32 %v371_v7, %v222_v32 }
 0x10d   :  { %v373_v13 = vadd.f32 %v372_v10, %v609_v21  ;;  %v409_v14 = vadd.f32 %v408_v9, %v394_v11 }
 0x10f   :  { %v410_v16 = vadd.f32 %v409_v14, %v395_v12  ;;  %v374_v17 = vadd.f32 %v373_v13, %v618_v29 }
 0x111   :  { %v375_v19 = vadd.f32 %v374_v17, %v235_v50  ;;  %v411_v20 = vadd.f32 %v410_v16, %v396_v15 }
 0x113   :  { %v412_v22 = vadd.f32 %v411_v20, %v397_v18  ;;  %v376_v23 = vadd.f32 %v375_v19, %v238_v60 }
 0x115   :  { %v377_v26 = vadd.f32 %v376_v23, %v243_v44  ;;  %v413_v27 = vadd.f32 %v412_v22, %v398_v24 }
 0x117   :  { %v378_v30 = vadd.f32 %v377_v26, %v246_v54  ;;  %v414_v31 = vadd.f32 %v413_v27, %v399_v25 }
 0x119   :  { %v379_v21 = vrot.slane %v378_v30, 4  ;;  %v415_v32 = vadd.f32 %v414_v31, %v400_v28 }
 0x11b   :  { %v380_v33 = vadd.f32 %v379_v21, %v378_v30  ;;  %v416_v34 = vrot.slane %v415_v32, 4 }
 0x11d   :  { %v381_v36 = vrot.slane %v380_v33, 2  ;;  %v417_v37 = vadd.f32 %v416_v34, %v415_v32 }
 0x11f   :  { %v382_v29 = vadd.f32 %v381_v36, %v380_v33  ;;  %v418_v38 = vrot.slane %v417_v37, 2 }
 0x121   :  { %v383_v40 = vrot.slane %v382_v29, 1  ;;  %v419_v41 = vadd.f32 %v418_v38, %v417_v37 }
 0x123   :  { %v384_v42 = vadd.f32 %v383_v40, %v382_v29  ;;  %v420_v43 = vrot.slane %v419_v41, 1 }
 0x125   :  { %v421_v44 = vadd.f32 %v420_v43, %v419_v41  ;;  %v423_v45 = vsel %vm422_vm0, %v384_v42, 0.0 }
 0x127   :  { %v425_v46 = vsel %vm424_vm1, %v421_v44, 0.0 }
 0x128   :  { %v426_v47 = vadd.f32 %v425_v46, %v423_v45 }
 0x12a   :  { %427 = vst [vmem:[%s676_s4] sm:$0xff] %v426_v47 }

// kernel: conv_residual_encoder_block.28
= control target key start
LH: loop header
LB: loop body
LE: loop exit
PB: predicated region body
PF: predicated region fallthrough
CT: control target
= control target key end

     0   :  { %s322_s9 = smov 0   ;;  %s336_s0 = inlined_call_operand.vmem [shape: f32[4,8], index: 0, kind: input, shape index: {}]   ;;  %s337_s1 = inlined_call_operand.vmem [shape: f32[2,8,64], index: 1, kind: input, shape index: {}]   ;;  %s338_s2 = inlined_call_operand.vmem [shape: f32[2,4,64], index: 2, kind: output, shape index: {}]  }
   0x1 LB: > { %s270_s10 = sadd.s32 4294967295, %s303_s9   ;;  %p274_p0 = scmp.ge.s32.totalorder %s303_s9, 1  ;;  %s303_s9 = sphi %s322_s9, %s12_s9  }
   0x2   : > { %p111_p1 = scmp.lt.s32.totalorder %s303_s9, 3 }
   0x4   : > { %p112_p2 = pnand %p274_p0, %p111_p1 }
   0x5   : > { %p131_p3 = scmp.lt.s32.totalorder (!%p112_p2), %s270_s10, 1  ;;  %v305_v0 = vmov (!%p112_p2), 0.0   ;;  %vm306_vm0 = vmmov (!%p112_p2), 0   ;;  %v139_v1 = vld [vmem:[%s336_s0] sm:$0xf] (!%p112_p2)  ;;  %vm141_vm1 = vcmask (!%p112_p2), 64512  }
   0x6   : > { %115 = sbr.rel (%p112_p2) target bundleno = 231 (0xe7), region = 28  ;;  %282 = vmatprep.subr.mxu0 (!%p112_p2), %v305_v0  ;;  %284 = vmatprep.mubr.msk.f32.mxu0 (!%p112_p2), %vm306_vm0, %v305_v0  ;;  %vm215_vm2 = vcmask (!%p112_p2), 519168  }
   0xd   : > { %s340_s10 = smov (!%p131_p3, %s270_s10), 1 }
   0xe   : > { %s275_s11 = sshll.u32 %s340_s10, 3  ;;  %s276_s17 = sshll.u32 %s340_s10, 2 }
   0xf   : > { %s134_s14 = scalar_lea.vmem %s337_s1, %s275_s11  ;;  %s138_s20 = scalar_lea.vmem %s338_s2, %s276_s17 }
  0x10   : > { %v140_v2 = vld [vmem:[%s134_s14] sm:$0xff] }
  0x11   : > { %283 = vmatpush3.msra.mxu0 %v140_v2 }
  0x12   : > { %285 = vmatmul.mubr.msk.f32.vlgmr.msra.gmra.mrb[0].mxu0 %vm141_vm1, %v139_v1 }
  0xe5   : > { %v211_v3 = vpop.f32.mrb[0].mxu0 }
  0xe6   : > { %216 = vst.msk [vmem:[%s138_s20] sm:$0xf] %vm215_vm2, %v211_v3  ;;  %v286_v4 = vpop.f32.mrb[1].mxu0 }
  0xe7 PF: > { %s12_s9 = sadd.s32 1, %s303_s9  }
  0xe8   : > { %p9_p4 = scmp.ge.s32.totalorder %s12_s9, 4  }
  0xea   :  { %11 = sbr.rel (!%p9_p4) target bundleno = 1 (0x1), region = 58 }

// kernel: conv_residual_encoder_block.29
= control target key start
LH: loop header
LB: loop body
LE: loop exit
PB: predicated region body
PF: predicated region fallthrough
CT: control target
= control target key end

     0   :  { %s322_s9 = smov 0   ;;  %s336_s0 = inlined_call_operand.vmem [shape: f32[4,8], index: 0, kind: input, shape index: {}]   ;;  %s337_s1 = inlined_call_operand.vmem [shape: f32[2,8,32], index: 1, kind: input, shape index: {}]   ;;  %s338_s2 = inlined_call_operand.vmem [shape: f32[2,4,32], index: 2, kind: output, shape index: {}]  }
   0x1 LB: > { %s270_s10 = sadd.s32 4294967295, %s303_s9   ;;  %p274_p0 = scmp.ge.s32.totalorder %s303_s9, 1  ;;  %s303_s9 = sphi %s322_s9, %s12_s9  }
   0x2   : > { %p111_p1 = scmp.lt.s32.totalorder %s303_s9, 3 }
   0x4   : > { %p112_p2 = pnand %p274_p0, %p111_p1 }
   0x5   : > { %p131_p3 = scmp.lt.s32.totalorder (!%p112_p2), %s270_s10, 1  ;;  %v305_v0 = vmov (!%p112_p2), 0.0   ;;  %vm306_vm0 = vmmov (!%p112_p2), 0   ;;  %v139_v1 = vld [vmem:[%s336_s0] sm:$0xf] (!%p112_p2)  ;;  %vm141_vm1 = vcmask (!%p112_p2), 64512  }
   0x6   : > { %115 = sbr.rel (%p112_p2) target bundleno = 231 (0xe7), region = 28  ;;  %282 = vmatprep.subr.mxu0 (!%p112_p2), %v305_v0  ;;  %284 = vmatprep.mubr.msk.f32.mxu0 (!%p112_p2), %vm306_vm0, %v305_v0  ;;  %vm215_vm2 = vcmask (!%p112_p2), 257024  }
   0xd   : > { %s340_s10 = smov (!%p131_p3, %s270_s10), 1 }
   0xe   : > { %s275_s11 = sshll.u32 %s340_s10, 3  ;;  %s276_s17 = sshll.u32 %s340_s10, 2 }
   0xf   : > { %s134_s14 = scalar_lea.vmem %s337_s1, %s275_s11  ;;  %s138_s20 = scalar_lea.vmem %s338_s2, %s276_s17 }
  0x10   : > { %v140_v2 = vld [vmem:[%s134_s14] sm:$0xff] }
  0x11   : > { %283 = vmatpush3.msra.mxu0 %v140_v2 }
  0x12   : > { %285 = vmatmul.mubr.msk.f32.vlgmr.msra.gmra.mrb[0].mxu0 %vm141_vm1, %v139_v1 }
  0xe5   : > { %v211_v3 = vpop.f32.mrb[0].mxu0 }
  0xe6   : > { %216 = vst.msk [vmem:[%s138_s20] sm:$0xf] %vm215_vm2, %v211_v3  ;;  %v286_v4 = vpop.f32.mrb[1].mxu0 }
  0xe7 PF: > { %s12_s9 = sadd.s32 1, %s303_s9  }
  0xe8   : > { %p9_p4 = scmp.ge.s32.totalorder %s12_s9, 4  }
  0xea   :  { %11 = sbr.rel (!%p9_p4) target bundleno = 1 (0x1), region = 58 }

// kernel: conv_residual_encoder_block.30
= control target key start
LH: loop header
LB: loop body
LE: loop exit
PB: predicated region body
PF: predicated region fallthrough
CT: control target
= control target key end

     0   :  { %v158_v32 = vlaneseq  ;;  %s344_s1 = inlined_call_operand.vmem [shape: bf16[128,128], index: 1, kind: input, shape index: {}]   ;;  %s345_s0 = inlined_call_operand.vmem [shape: bf16[32,128], index: 0, kind: input, shape index: {}]   ;;  %s346_s2 = inlined_call_operand.vmem [shape: f32[1,128], index: 2, kind: input, shape index: {}]   ;;  %s347_s3 = inlined_call_operand.vmem [shape: f32[32,128], index: 3, kind: output, shape index: {0}]   ;;  %s348_s4 = inlined_call_operand.vmem [shape: f32[8,128], index: 4, kind: output, shape index: {1}]  }
   0x1   :  { %v261_v0 = vld [vmem:[%s344_s1] sm:$0xff]   ;;  %v262_v1 = vld [vmem:[%s344_s1 + $0x8] sm:$0xff]   ;;  %v263_v2 = vld [vmem:[%s344_s1 + $0x10] sm:$0xff]  }
   0x2   :  { %241 = vmatprep.subr.bf16.mxu0 %v261_v0  ;;  %v264_v3 = vld [vmem:[%s344_s1 + $0x18] sm:$0xff]   ;;  %v269_v4 = vld [vmem:[%s345_s0] sm:$0xff]   ;;  %v266_v6 = vld [vmem:[%s344_s1 + $0x28] sm:$0xff]   ;;  %v159_v37 = vshrl.u32 %v158_v32, 7 }
   0x3   :  { %242 = vmatpush3.bf16.msra.mxu0 %v261_v0  ;;  %257 = vmatprep.mubr.bf16.mxu0 %v269_v4  ;;  %v265_v5 = vld [vmem:[%s344_s1 + $0x20] sm:$0xff]   ;;  %v267_v7 = vld [vmem:[%s344_s1 + $0x30] sm:$0xff]   ;;  %v268_v8 = vld [vmem:[%s344_s1 + $0x38] sm:$0xff]  }
   0x4   :  { %243 = vmatprep.subr.bf16.mxu0 %v262_v1  ;;  %v270_v9 = vld [vmem:[%s345_s0 + $0x8] sm:$0xff]   ;;  %v220_v10 = vld [vmem:[%s346_s2] ss:$0 sm:$0xff]  ;;  %vm206_vm0 = vcmp.eq.s32.totalorder %v159_v37, 0  ;;  %vm208_vm1 = vcmp.eq.s32.totalorder %v159_v37, 1 }
   0x7   :  { %244 = vmatpush3.bf16.msra.mxu0 %v262_v1 }
   0x8   :  { %245 = vmatprep.subr.bf16.mxu0 %v263_v2 }
   0xb   :  { %246 = vmatpush3.bf16.msra.mxu0 %v263_v2 }
   0xc   :  { %247 = vmatprep.subr.bf16.mxu0 %v264_v3 }
   0xf   :  { %248 = vmatpush3.bf16.msra.mxu0 %v264_v3 }
  0x10   :  { %249 = vmatprep.subr.bf16.mxu0 %v265_v5 }
  0x13   :  { %250 = vmatpush3.bf16.msra.mxu0 %v265_v5 }
  0x14   :  { %251 = vmatprep.subr.bf16.mxu0 %v266_v6 }
  0x17   :  { %252 = vmatpush3.bf16.msra.mxu0 %v266_v6 }
  0x18   :  { %253 = vmatprep.subr.bf16.mxu0 %v267_v7 }
  0x1b   :  { %254 = vmatpush3.bf16.msra.mxu0 %v267_v7 }
  0x1c   :  { %255 = vmatprep.subr.bf16.mxu0 %v268_v8 }
  0x1f   :  { %256 = vmatpush3.bf16.msra.mxu0 %v268_v8 }
  0x22   :  { %258 = vmatmul.mubr.bf16.vlgmr.msra.gmra.mrb[0].mxu0 %v270_v9 }
  0xf5   :  { %v259_v11 = vpop.f32.mrb[0].mxu0 }
  0xf6   :  { %v147_v12 = vadd.f32 %v259_v11, %v220_v10  ;;  %v138_v13 = vpop.f32.mrb[1].mxu0 }
  0xf7   :  { %v139_v14 = vadd.f32 %v220_v10, %v138_v13  ;;  %v260_v15 = vpop.f32.mrb[2].mxu0 }
  0xf8   :  { %155 = vst [vmem:[%s347_s3 + $0x10] sm:$0xff] %v147_v12  ;;  %v150_v16 = vadd.f32 %v260_v15, %v220_v10  ;;  %v141_v17 = vpop.f32.mrb[3].mxu0  ;;  %v195_v22 = vmul.f32 %v147_v12, %v147_v12 }
  0xf9   :  { %153 = vst [vmem:[%s347_s3] sm:$0xff] %v139_v14  ;;  %v142_v18 = vadd.f32 %v220_v10, %v141_v17  ;;  %v193_v19 = vmul.f32 %v139_v14, %v139_v14 }
  0xfa   :  { %156 = vst [vmem:[%s347_s3 + $0x18] sm:$0xff] %v150_v16  ;;  %v196_v25 = vmul.f32 %v150_v16, %v150_v16 }
  0xfb   :  { %154 = vst [vmem:[%s347_s3 + $0x8] sm:$0xff] %v142_v18  ;;  %v184_v20 = vadd.f32 %v142_v18, %v139_v14  ;;  %v194_v21 = vmul.f32 %v142_v18, %v142_v18 }
  0xfd   :  { %v185_v23 = vadd.f32 %v184_v20, %v147_v12  ;;  %v197_v24 = vadd.f32 %v194_v21, %v193_v19 }
  0xff   :  { %v186_v26 = vadd.f32 %v185_v23, %v150_v16  ;;  %v198_v27 = vadd.f32 %v197_v24, %v195_v22 }
 0x101   :  { %v187_v28 = vrot.slane %v186_v26, 4  ;;  %v199_v29 = vadd.f32 %v198_v27, %v196_v25 }
 0x103   :  { %v188_v30 = vadd.f32 %v187_v28, %v186_v26  ;;  %v200_v31 = vrot.slane %v199_v29, 4 }
 0x105   :  { %v189_v33 = vrot.slane %v188_v30, 2  ;;  %v201_v34 = vadd.f32 %v200_v31, %v199_v29 }
 0x107   :  { %v190_v35 = vadd.f32 %v189_v33, %v188_v30  ;;  %v202_v36 = vrot.slane %v201_v34, 2 }
 0x109   :  { %v191_v38 = vrot.slane %v190_v35, 1  ;;  %v203_v39 = vadd.f32 %v202_v36, %v201_v34 }
 0x10b   :  { %v192_v40 = vadd.f32 %v191_v38, %v190_v35  ;;  %v204_v41 = vrot.slane %v203_v39, 1 }
 0x10d   :  { %v205_v42 = vadd.f32 %v204_v41, %v203_v39  ;;  %v207_v43 = vsel %vm206_vm0, %v192_v40, 0.0 }
 0x10f   :  { %v209_v44 = vsel %vm208_vm1, %v205_v42, 0.0 }
 0x110   :  { %v210_v45 = vadd.f32 %v209_v44, %v207_v43 }
 0x112   :  { %211 = vst [vmem:[%s348_s4] sm:$0xff] %v210_v45 }

// kernel: conv_residual_encoder_block.18
= control target key start
LH: loop header
LB: loop body
LE: loop exit
PB: predicated region body
PF: predicated region fallthrough
CT: control target
= control target key end

     0   :  { %s335_s9 = smov 0   ;;  %s355_s0 = inlined_call_operand.vmem [shape: f32[4,16], index: 0, kind: input, shape index: {}]   ;;  %s356_s1 = inlined_call_operand.vmem [shape: f32[2,16,128], index: 1, kind: input, shape index: {}]   ;;  %s357_s2 = inlined_call_operand.vmem [shape: f32[2,4,128], index: 2, kind: output, shape index: {}]  }
   0x1 LB: > { %s273_s10 = sadd.s32 4294967295, %s315_s9   ;;  %p277_p0 = scmp.ge.s32.totalorder %s315_s9, 1  ;;  %s315_s9 = sphi %s335_s9, %s12_s9  }
   0x2   : > { %p112_p1 = scmp.lt.s32.totalorder %s315_s9, 3 }
   0x4   : > { %p113_p2 = pnand %p277_p0, %p112_p1 }
   0x5   : > { %p133_p3 = scmp.lt.s32.totalorder (!%p113_p2), %s273_s10, 1  ;;  %v317_v0 = vmov (!%p113_p2), 0.0|0.0   ;;  %vm318_vm0 = vmmov (!%p113_p2), 0   ;;  %v319_v1 = vmov (!%p113_p2), 0.0   ;;  %v142_v5 = vld [vmem:[%s355_s0] sm:$0xf] (!%p113_p2) }
   0x6   : > { %116 = sbr.rel (%p113_p2) target bundleno = 235 (0xeb), region = 28  ;;  %295 = vmatprep.subr.bf16.mxu0 (!%p113_p2), %v317_v0  ;;  %292 = vmatprep.mubr.msk.f32.mxu0 (!%p113_p2), %vm318_vm0, %v319_v1  ;;  %vm145_vm1 = vcmask (!%p113_p2), 130048  }
   0xd   : > { %s359_s10 = smov (!%p133_p3, %s273_s10), 1 }
   0xe   : > { %s284_s11 = sshll.u32 %s359_s10, 4  ;;  %s280_s17 = sshll.u32 %s359_s10, 2 }
   0xf   : > { %s137_s14 = scalar_lea.vmem %s356_s1, %s284_s11  ;;  %s141_s20 = scalar_lea.vmem %s357_s2, %s280_s17 }
  0x10   : > { %v143_v2 = vld [vmem:[%s137_s14] sm:$0xff]  ;;  %v144_v3 = vld [vmem:[%s137_s14 + $0x8] sm:$0xff] }
  0x11   : > { %v296_v4 = vpack.c.bf16 %v144_v3, %v143_v2 }
  0x13   : > { %297 = vmatpush3.bf16.msra.mxu0 %v296_v4 }
  0x16   : > { %293 = vmatmul.mubr.msk.f32.vlgmr.msra.gmra.mrb[0].mxu0 %vm145_vm1, %v142_v5 }
  0xe9   : > { %v215_v6 = vpop.f32.mrb[0].mxu0 }
  0xea   : > { %219 = vst [vmem:[%s141_s20] sm:$0xf] %v215_v6  ;;  %v294_v7 = vpop.f32.mrb[1].mxu0 }
  0xeb PF: > { %s12_s9 = sadd.s32 1, %s315_s9  }
  0xec   : > { %p9_p4 = scmp.ge.s32.totalorder %s12_s9, 4  }
  0xee   :  { %11 = sbr.rel (!%p9_p4) target bundleno = 1 (0x1), region = 58 }

// kernel: conv_residual_encoder_block.19
= control target key start
LH: loop header
LB: loop body
LE: loop exit
PB: predicated region body
PF: predicated region fallthrough
CT: control target
= control target key end

     0   :  { %s336_s9 = smov 0   ;;  %s356_s0 = inlined_call_operand.vmem [shape: f32[4,16], index: 0, kind: input, shape index: {}]   ;;  %s357_s1 = inlined_call_operand.vmem [shape: f32[2,16,32], index: 1, kind: input, shape index: {}]   ;;  %s358_s2 = inlined_call_operand.vmem [shape: f32[2,4,32], index: 2, kind: output, shape index: {}]  }
   0x1 LB: > { %s274_s10 = sadd.s32 4294967295, %s316_s9   ;;  %p278_p0 = scmp.ge.s32.totalorder %s316_s9, 1  ;;  %s316_s9 = sphi %s336_s9, %s12_s9  }
   0x2   : > { %p112_p1 = scmp.lt.s32.totalorder %s316_s9, 3 }
   0x4   : > { %p113_p2 = pnand %p278_p0, %p112_p1 }
   0x5   : > { %p133_p3 = scmp.lt.s32.totalorder (!%p113_p2), %s274_s10, 1  ;;  %v318_v0 = vmov (!%p113_p2), 0.0|0.0   ;;  %vm319_vm0 = vmmov (!%p113_p2), 0   ;;  %v320_v1 = vmov (!%p113_p2), 0.0   ;;  %v142_v5 = vld [vmem:[%s356_s0] sm:$0xf] (!%p113_p2) }
   0x6   : > { %116 = sbr.rel (%p113_p2) target bundleno = 235 (0xeb), region = 28  ;;  %296 = vmatprep.subr.bf16.mxu0 (!%p113_p2), %v318_v0  ;;  %293 = vmatprep.mubr.msk.f32.mxu0 (!%p113_p2), %vm319_vm0, %v320_v1  ;;  %vm145_vm1 = vcmask (!%p113_p2), 130048   ;;  %vm219_vm2 = vcmask (!%p113_p2), 257024  }
   0xd   : > { %s360_s10 = smov (!%p133_p3, %s274_s10), 1 }
   0xe   : > { %s285_s11 = sshll.u32 %s360_s10, 4  ;;  %s281_s17 = sshll.u32 %s360_s10, 2 }
   0xf   : > { %s137_s14 = scalar_lea.vmem %s357_s1, %s285_s11  ;;  %s141_s20 = scalar_lea.vmem %s358_s2, %s281_s17 }
  0x10   : > { %v143_v2 = vld [vmem:[%s137_s14] sm:$0xff]  ;;  %v144_v3 = vld [vmem:[%s137_s14 + $0x8] sm:$0xff] }
  0x11   : > { %v297_v4 = vpack.c.bf16 %v144_v3, %v143_v2 }
  0x13   : > { %298 = vmatpush3.bf16.msra.mxu0 %v297_v4 }
  0x16   : > { %294 = vmatmul.mubr.msk.f32.vlgmr.msra.gmra.mrb[0].mxu0 %vm145_vm1, %v142_v5 }
  0xe9   : > { %v215_v6 = vpop.f32.mrb[0].mxu0 }
  0xea   : > { %220 = vst.msk [vmem:[%s141_s20] sm:$0xf] %vm219_vm2, %v215_v6  ;;  %v295_v7 = vpop.f32.mrb[1].mxu0 }
  0xeb PF: > { %s12_s9 = sadd.s32 1, %s316_s9  }
  0xec   : > { %p9_p4 = scmp.ge.s32.totalorder %s12_s9, 4  }
  0xee   :  { %11 = sbr.rel (!%p9_p4) target bundleno = 1 (0x1), region = 58 }

// kernel: conv_residual_encoder_block.31
= control target key start
LH: loop header
LB: loop body
LE: loop exit
PB: predicated region body
PF: predicated region fallthrough
CT: control target
= control target key end

     0   :  { %s226_s0 = inlined_call_operand.vmem [shape: f32[32,128], index: 0, kind: input, shape index: {}]   ;;  %s227_s1 = inlined_call_operand.vmem [shape: f32[8,128], index: 1, kind: input, shape index: {}]   ;;  %s228_s2 = inlined_call_operand.vmem [shape: f32[1,128], index: 2, kind: input, shape index: {}]   ;;  %s229_s3 = inlined_call_operand.vmem [shape: f32[1,128], index: 3, kind: input, shape index: {}]   ;;  %s230_s4 = inlined_call_operand.vmem [shape: f32[32,128], index: 4, kind: input, shape index: {}]   ;;  %s231_s5 = inlined_call_operand.hbm [shape: f32[32,128], index: 5, kind: output, shape index: {}]  }
   0x1   :  { %v21_v0 = vld [vmem:[%s227_s1] sm:$0xff] }
   0x2   :  { %v24_v1 = vmul.f32 0.03125, %v21_v0 }
   0x4   :  { %v25_v2 = vmul.f32 %v24_v1, %v24_v1 }
   0x5   :  { %10 = vsyncpa [#allocation3], 0  ;;  %v147_v7 = vmov 1966171168   ;;  %v37_v9 = vlaneseq  ;;  %v22_v16 = vld [vmem:[%s228_s2] sm:$0x1] }
   0x6   :  { %v27_v3 = vrot.slane %v25_v2, 7  ;;  %v35_v8 = vunpack.c.l.s4 %v147_v7  ;;  %v23_v19 = vld [vmem:[%s229_s3] sm:$0x1]  ;;  %v54_v22 = vld [vmem:[%s226_s0 + $0x8] sm:$0xff]  ;;  %v55_v23 = vld [vmem:[%s226_s0 + $0x10] sm:$0xff]  ;;  %s148_s11 = smov [#allocation2]  }
   0x7   :  { %v38_v11 = vshrl.u32 %v37_v9, 7  ;;  %v53_v21 = vld [vmem:[%s226_s0] sm:$0xff]  ;;  %v56_v26 = vld [vmem:[%s226_s0 + $0x18] sm:$0xff]  ;;  %v90_v38 = vld [vmem:[%s230_s4 + $0x8] sm:$0xff]  ;;  %s106_s12 = sshll.u32 %s148_s11, 4  ;;  %s107_s12 = int_to_ptr.vmem [resolvable:$true] %s106_s12 }
   0x8   :  { %v29_v4 = vsub.f32 %v24_v1, %v27_v3  ;;  %v36_v10 = vunpack.c.0.s8 %v35_v8  ;;  %v89_v34 = vld [vmem:[%s230_s4] sm:$0xff]  ;;  %v91_v39 = vld [vmem:[%s230_s4 + $0x10] sm:$0xff]  ;;  %v92_v40 = vld [vmem:[%s230_s4 + $0x18] sm:$0xff]  ;;  %s123_s4 = scalar_lea.vmem %s107_s12, 512  ;;  %p128_p1 = scmp.lt.s32.totalorder %s107_s12, %s107_s12 }
   0x9   :  { %v60_v18 = vsub.s32 0, %v38_v11  ;;  %p124_p0 = scmp.ne.s32.totalorder %s107_s12, %s123_s4  ;;  %p129_p2 = scmp.lt.s32.totalorder %s123_s4, %s123_s4 }
   0xa   :  { %v30_v5 = vmax.f32 %v29_v4, 0.0  ;;  %v39_v12 = vsub.s32 %v36_v10, %v38_v11 }
   0xb   :  { %p130_p3 = por %p129_p2, %p128_p1 }
   0xc   :  { %v31_v6 = vadd.f32 1e-05, %v30_v5 }
   0xd   :  { %p131_p4 = pnand %p130_p3, %p124_p0 }
   0xe   :  { %121 = vrsqrt.f32 %v31_v6 }
  0x18   :  { %v122_v13 = vpop.eup %121 }
  0x19   :  { %v40_v14 = vrot.slane %v122_v13, %v39_v12 }
  0x1b   :  { %v41_v15 = vcombine.high %v40_v14, %v40_v14 }
  0x1d   :  { %v48_v17 = vrot.slane %v41_v15, %v39_v12 }
  0x1f   :  { %v50_v20 = vmul.f32 %v48_v17, %v22_v16 }
  0x21   :  { %v51_v24 = vmul.f32 %v50_v20, %v24_v1  ;;  %v61_v25 = vrot.slane %v50_v20, %v60_v18 }
  0x23   :  { %v52_v27 = vsub.f32 %v23_v19, %v51_v24  ;;  %v63_v28 = vmul.f32 %v61_v25, %v53_v21  ;;  %v64_v29 = vmul.f32 %v61_v25, %v54_v22  ;;  %v65_v30 = vmul.f32 %v61_v25, %v55_v23 }
  0x24   :  { %v66_v31 = vmul.f32 %v61_v25, %v56_v26 }
  0x25   :  { %v71_v32 = vrot.slane %v52_v27, %v60_v18 }
  0x27   :  { %v73_v33 = vadd.f32 %v71_v32, %v63_v28  ;;  %v74_v35 = vadd.f32 %v71_v32, %v64_v29  ;;  %v75_v36 = vadd.f32 %v71_v32, %v65_v30  ;;  %v76_v37 = vadd.f32 %v71_v32, %v66_v31 }
  0x29   :  { %vm77_vm0 = vcmp.ge.f32.partialorder %v73_v33, 0.0  ;;  %v81_v41 = vmul.f32 0.1, %v73_v33  ;;  %vm78_vm1 = vcmp.ge.f32.partialorder %v74_v35, 0.0  ;;  %v82_v42 = vmul.f32 0.1, %v74_v35 }
  0x2a   :  { %vm79_vm2 = vcmp.ge.f32.partialorder %v75_v36, 0.0  ;;  %v83_v43 = vmul.f32 0.1, %v75_v36  ;;  %vm80_vm3 = vcmp.ge.f32.partialorder %v76_v37, 0.0  ;;  %v84_v44 = vmul.f32 0.1, %v76_v37 }
  0x2b   :  { %v85_v45 = vsel %vm77_vm0, %v73_v33, %v81_v41  ;;  %v86_v46 = vsel %vm78_vm1, %v74_v35, %v82_v42 }
  0x2c   :  { %v93_v47 = vadd.f32 %v89_v34, %v85_v45  ;;  %v94_v48 = vadd.f32 %v90_v38, %v86_v46  ;;  %v87_v49 = vsel %vm79_vm2, %v75_v36, %v83_v43  ;;  %v88_v50 = vsel %vm80_vm3, %v76_v37, %v84_v44 }
  0x2d   :  { %v95_v51 = vadd.f32 %v91_v39, %v87_v49  ;;  %v96_v52 = vadd.f32 %v92_v40, %v88_v50 }
  0x2e   :  { %97 = vst [vmem:[#allocation2] sm:$0xff] %v93_v47  ;;  %98 = vst [vmem:[#allocation2 + $0x8] sm:$0xff] %v94_v48 }
  0x2f   :  { %99 = vst [vmem:[#allocation2 + $0x10] sm:$0xff] %v95_v51  ;;  %100 = vst [vmem:[#allocation2 + $0x18] sm:$0xff] %v96_v52 }
  0x30   :  { %134 = shalt.err (!%p131_p4)
}
  0x31   :  { %s135_s15 = scalar_lea.hbm %s231_s5, 512 }
  0x32   :  { %p136_p5 = scmp.ne.s32.totalorder %s231_s5, %s135_s15  ;;  %p139_p6 = scmp.lt.u32.totalorder %s135_s15, %s231_s5 }
  0x34   :  { %p141_p7 = pnand %p139_p6, %p136_p5 }
  0x36   :  { %144 = shalt.err (!%p141_p7)
}
  0x37   :  { %s149_s20 = smov 128   ;;  %s150_s21 = smov 8  }
  0x38   :  { %112 = dma.vmem_to_hbm [thread:$0]  %s107_s12, 512, %s231_s5, [#allocation3], %s149_s20, %s149_s20, %s150_s21  }
  0x39   :  { %145 = dma.done.wait [#allocation3], 512  }
  0x3a   :  { %146 = vsyncadd [#allocation3], 4294966784 }
  0x3b   :  { %116 = vsyncpa [#allocation3], 1 }

</bundles_post_ra>
